<compile_context>
chip_gen: v7x
topology: tpu7x:2x2x1
jax: 0.10.0
libtpu: 0.0.40
codegen_flags: <defaults>
</compile_context>

<pallas_src>
import functools
import math

import jax
import jax.numpy as jnp
from jax import lax
from jax.experimental import pallas as pl
from jax.experimental.pallas import tpu as pltpu

LEAKY_SLOPE = 0.01   # F.leaky_relu default negative_slope
BN_EPS = 1e-5
MASK_VAL = 1e8


def _leaky_relu(v):
    return jnp.where(v > 0, v, LEAKY_SLOPE * v)


# ----------------------------------------------------------------------------
# Fused kernel: one grid step = one batch element, all layers.
# ----------------------------------------------------------------------------
def _gnn_nl_fused_kernel(x_ref, w1_ref, b1_ref, wl_ref, bl_ref,
                         wa_ref, wb_ref, fb_ref, out_ref,
                         *, num_hidden, feat_offsets, hid, way):
    n = x_ref.shape[1]
    d_last = x_ref.shape[2]
    ow = wa_ref.shape[2]

    x = x_ref[0]                                   # (N, D_last), channels past
                                                   # the current width are zero

    # Diagonal (W_id) mask and channel-placement iotas, built once.
    row = lax.broadcasted_iota(jnp.int32, (n, n), 0)
    col = lax.broadcasted_iota(jnp.int32, (n, n), 1)
    diag = jnp.where(row == col, MASK_VAL, 0.0).astype(jnp.float32)
    pr = lax.broadcasted_iota(jnp.int32, (ow, d_last), 0)
    pc = lax.broadcasted_iota(jnp.int32, (ow, d_last), 1)

    # ---- Hidden layers (unrolled at trace time): full N x N adjacency ----
    for l in range(num_hidden):
        # Wcompute: |x_i - x_j| -> 1x1 conv (+folded eval BN) -> leaky_relu
        #           -> 1x1 conv (width 1 -> VPU mul + lane reduce)
        #           -> diagonal mask -> softmax over j.
        diff = jnp.abs(x[:, None, :] - x[None, :, :]).reshape(n * n, d_last)
        h = jnp.dot(diff, w1_ref[l], preferred_element_type=jnp.float32) + b1_ref[l]
        h = _leaky_relu(h)
        logits = jnp.sum(h * wl_ref[l], axis=-1, keepdims=True) + bl_ref[l]
        logits = logits.reshape(n, n) - diag
        m = jnp.max(logits, axis=-1, keepdims=True)
        e = jnp.exp(logits - m)
        w_new = e * pl.reciprocal(jnp.sum(e, axis=-1, keepdims=True), approx=True)

        # Gconv: gmul (J=2) gives cat([x, W_new @ x]); the Linear splits into
        # wa (acts on x) + wb (acts on W_new @ x); eval BN folded.
        wx = jnp.dot(w_new, x, preferred_element_type=jnp.float32)
        y = (jnp.dot(x, wa_ref[l], preferred_element_type=jnp.float32)
             + jnp.dot(wx, wb_ref[l], preferred_element_type=jnp.float32)
             + fb_ref[l])
        y = _leaky_relu(y)                         # applied by GNN_nl on x_new

        # x = concat([x, y], -1) realized as a placement matmul into the
        # pre-padded channel slab (avoids in-kernel lane concatenation).
        off = feat_offsets[l]
        sel = ((pc == pr + off) & (pr < hid)).astype(jnp.float32)
        x = x + jnp.dot(y, sel, preferred_element_type=jnp.float32)

    # ---- Last layer: the model returns out[:, 0, :], so only node 0 of the
    #      adjacency (row 0 softmax) and of the final Gconv are needed. ----
    l = num_hidden
    diff0 = jnp.abs(x[0:1, :] - x)                               # (N, D_last)
    h0 = jnp.dot(diff0, w1_ref[l], preferred_element_type=jnp.float32) + b1_ref[l]
    h0 = _leaky_relu(h0)
    lg = jnp.sum(h0 * wl_ref[l], axis=-1, keepdims=True) + bl_ref[l]   # (N, 1)
    idx = lax.broadcasted_iota(jnp.int32, (n, 1), 0)
    lg = lg - jnp.where(idx == 0, MASK_VAL, 0.0)                 # W_id mask (i=0,j=0)
    m0 = jnp.max(lg, axis=0, keepdims=True)
    e0 = jnp.exp(lg - m0)
    w0 = e0 * pl.reciprocal(jnp.sum(e0, axis=0, keepdims=True), approx=True)  # (N, 1)
    wx0 = jnp.sum(w0 * x, axis=0, keepdims=True)                 # row 0 of W_new @ x
    y0 = (jnp.dot(x[0:1, :], wa_ref[l], preferred_element_type=jnp.float32)
          + jnp.dot(wx0, wb_ref[l], preferred_element_type=jnp.float32)
          + fb_ref[l])                                           # (1, ow), no BN/relu
    out_ref[0] = y0[:, 0:way]


def gnn_nl_forward(x, params, meta):
    B, N, d_in0 = x.shape
    num_hidden = meta["num_layers"]
    hid, way, d_last = meta["hid"], meta["way"], meta["d_last"]
    L = num_hidden + 1
    C = params["w1"].shape[-1]
    ow = params["wa"].shape[-1]
    feat_offsets = tuple(d_in0 + hid * i for i in range(num_hidden))

    # Pad node features once to the final channel width (zeros beyond d_in0).
    x_pad = jnp.pad(x, ((0, 0), (0, 0), (0, d_last - d_in0)))

    kernel = functools.partial(_gnn_nl_fused_kernel, num_hidden=num_hidden,
                               feat_offsets=feat_offsets, hid=hid, way=way)

    out = pl.pallas_call(
        kernel,
        out_shape=jax.ShapeDtypeStruct((B, 1, way), jnp.float32),
        grid=(B,),
        in_specs=[
            pl.BlockSpec((1, N, d_last), lambda b: (b, 0, 0)),     # x (per batch)
            pl.BlockSpec((L, d_last, C), lambda b: (0, 0, 0)),     # w1 (folded BN)
            pl.BlockSpec((L, 1, C), lambda b: (0, 0, 0)),          # b1 (folded BN)
            pl.BlockSpec((L, 1, C), lambda b: (0, 0, 0)),          # wl (row form)
            pl.BlockSpec((L, 1, 1), lambda b: (0, 0, 0)),          # bl
            pl.BlockSpec((L, d_last, ow), lambda b: (0, 0, 0)),    # wa (folded BN)
            pl.BlockSpec((L, d_last, ow), lambda b: (0, 0, 0)),    # wb (folded BN)
            pl.BlockSpec((L, 1, ow), lambda b: (0, 0, 0)),         # fb (folded BN)
        ],
        out_specs=pl.BlockSpec((1, 1, way), lambda b: (b, 0, 0)),
        compiler_params=pltpu.CompilerParams(
            dimension_semantics=("parallel",)),      # v7x: batch over both TCs
    )(x_pad, params["w1"], params["b1"], params["wl"], params["bl"],
      params["wa"], params["wb"], params["fb"])
    return out[:, 0, :]                              # PyTorch: out[:, 0, :]


# ----------------------------------------------------------------------------
# Deterministic synthetic params (PyTorch-default-like bounds), eval BatchNorm
# folded, zero-padded to common widths and stacked per layer.
# ----------------------------------------------------------------------------
def _uniform(key, shape, bound):
    return jax.random.uniform(key, shape, jnp.float32, -bound, bound)


def init_gnn_nl_params(key, input_features, nf, way, num_layers=4):
    hid = nf // 2
    C = 2 * nf                                     # Wcompute ratio[0] = 2
    L = num_layers + 1
    d_last = input_features + hid * num_layers
    ow = max(hid, way)
    bn_scale = 1.0 / math.sqrt(1.0 + BN_EPS)       # eval BN (mean 0, var 1) folded

    keys = jax.random.split(key, 7 * L)
    packed = {k: [] for k in ("w1", "b1", "wl", "bl", "wa", "wb", "fb")}
    ref_layers = []
    for i in range(L):
        d_in = input_features + hid * i
        o = hid if i < num_layers else way
        k = keys[7 * i:7 * i + 7]

        cb = 1.0 / math.sqrt(d_in)
        w1 = _uniform(k[0], (d_in, C), cb) * bn_scale     # conv2d_1 (1x1) + bn_1
        b1 = _uniform(k[1], (1, C), cb) * bn_scale
        lb = 1.0 / math.sqrt(C)
        wl = _uniform(k[2], (C, 1), lb)                   # conv2d_last (1x1)
        bl = _uniform(k[3], (1, 1), lb)

        gb = 1.0 / math.sqrt(2 * d_in)                    # Linear fan_in = J*d_in
        gs = bn_scale if i < num_layers else 1.0          # Gconv BN only if bn_bool
        wa = _uniform(k[4], (d_in, o), gb) * gs           # acts on x (W_id part)
        wb = _uniform(k[5], (d_in, o), gb) * gs           # acts on W_new @ x
        fb = _uniform(k[6], (1, o), gb) * gs

        ref_layers.append((w1, b1, wl, bl, wa, wb, fb))

        packed["w1"].append(jnp.pad(w1, ((0, d_last - d_in), (0, 0))))
        packed["b1"].append(b1)
        packed["wl"].append(wl.T)                          # (1, C) row form
        packed["bl"].append(bl)
        packed["wa"].append(jnp.pad(wa, ((0, d_last - d_in), (0, ow - o))))
        packed["wb"].append(jnp.pad(wb, ((0, d_last - d_in), (0, ow - o))))
        packed["fb"].append(jnp.pad(fb, ((0, 0), (0, ow - o))))

    params = {k: jnp.stack(v) for k, v in packed.items()}
    meta = dict(num_layers=num_layers, hid=hid, way=way, d_last=d_last)
    return params, meta, ref_layers


# ----------------------------------------------------------------------------
# Pure-JAX reference (mirrors PyTorch GNN_nl eval forward) for verification.
# ----------------------------------------------------------------------------
def gnn_nl_reference(x, ref_layers, num_layers, way):
    B, N, _ = x.shape
    eye = jnp.eye(N, dtype=jnp.float32)
    for i, (w1, b1, wl, bl, wa, wb, fb) in enumerate(ref_layers):
        diff = jnp.abs(x[:, :, None, :] - x[:, None, :, :])         # (B,N,N,D)
        h = jnp.einsum('bijd,dc->bijc', diff, w1) + b1
        h = jnp.where(h > 0, h, LEAKY_SLOPE * h)
        logits = jnp.einsum('bijc,co->bijo', h, wl)[..., 0] + bl[0, 0]
        logits = logits - eye[None] * MASK_VAL
        W = jax.nn.softmax(logits, axis=-1)
        wx = jnp.einsum('bij,bjd->bid', W, x)
        y = (jnp.einsum('bnd,do->bno', x, wa)
             + jnp.einsum('bnd,do->bno', wx, wb) + fb)
        if i < num_layers:
            y = jnp.where(y > 0, y, LEAKY_SLOPE * y)
            x = jnp.concatenate([x, y], axis=-1)
        else:
            return y[:, 0, :]


if __name__ == "__main__":
    B, N = 2, 8                  # batch of tasks, 8 nodes (way*shot + query)
    input_features, nf, way = 16, 16, 4
    key = jax.random.PRNGKey(0)
    kx, kp = jax.random.split(key)
    x = jax.random.normal(kx, (B, N, input_features), jnp.float32)
    params, meta, ref_layers = init_gnn_nl_params(kp, input_features, nf, way)

    out = gnn_nl_forward(x, params, meta)
    out = jax.block_until_ready(out)
    assert out.shape == (B, way), out.shape
    assert bool(jnp.all(jnp.isfinite(out)))

    ref = gnn_nl_reference(x, ref_layers, meta["num_layers"], way)
    max_err = float(jnp.max(jnp.abs(out - ref)))
    assert bool(jnp.allclose(out, ref, rtol=5e-2, atol=5e-2)), f"max_err={max_err}"
    print("KERNEL_OK")
</pallas_src>

<mosaic_0001>
module attributes {stable_mosaic.version = 11 : i64} {
  func.func @_gnn_nl_fused_kernel(%arg0: i32, %arg1: memref<1x8x48xf32, #tpu.memory_space<vmem>>, %arg2: memref<5x48x32xf32, #tpu.memory_space<vmem>>, %arg3: memref<5x1x32xf32, #tpu.memory_space<vmem>>, %arg4: memref<5x1x32xf32, #tpu.memory_space<vmem>>, %arg5: memref<5x1x1xf32, #tpu.memory_space<vmem>>, %arg6: memref<5x48x8xf32, #tpu.memory_space<vmem>>, %arg7: memref<5x48x8xf32, #tpu.memory_space<vmem>>, %arg8: memref<5x1x8xf32, #tpu.memory_space<vmem>>, %arg9: memref<1x1x4xf32, #tpu.memory_space<vmem>>) attributes {dimension_semantics = [#tpu.dimension_semantics<parallel>], iteration_bounds = array<i64: 2>, scalar_prefetch = 0 : i64, scratch_operands = 0 : i64, tpu.core_type = #tpu.core_type<tc>, window_params = [{transform_indices = @transform_0, window_bounds = array<i64: 1, 8, 48>}, {pipeline_mode = #tpu.pipeline_mode<synchronous>, transform_indices = @transform_1, window_bounds = array<i64: 5, 48, 32>}, {pipeline_mode = #tpu.pipeline_mode<synchronous>, transform_indices = @transform_2, window_bounds = array<i64: 5, 1, 32>}, {pipeline_mode = #tpu.pipeline_mode<synchronous>, transform_indices = @transform_3, window_bounds = array<i64: 5, 1, 32>}, {pipeline_mode = #tpu.pipeline_mode<synchronous>, transform_indices = @transform_4, window_bounds = array<i64: 5, 1, 1>}, {pipeline_mode = #tpu.pipeline_mode<synchronous>, transform_indices = @transform_5, window_bounds = array<i64: 5, 48, 8>}, {pipeline_mode = #tpu.pipeline_mode<synchronous>, transform_indices = @transform_6, window_bounds = array<i64: 5, 48, 8>}, {pipeline_mode = #tpu.pipeline_mode<synchronous>, transform_indices = @transform_7, window_bounds = array<i64: 5, 1, 8>}, {transform_indices = @transform_8, window_bounds = array<i64: 1, 1, 4>}]} {
    %c0 = arith.constant 0 : index
    %c0_0 = arith.constant 0 : index
    %c0_1 = arith.constant 0 : index
    %0 = vector.load %arg1[%c0, %c0_0, %c0_1] : memref<1x8x48xf32, #tpu.memory_space<vmem>>, vector<1x8x48xf32>
    %1 = vector.shape_cast %0 : vector<1x8x48xf32> to vector<8x48xf32>
    %2 = tpu.iota {dimensions = array<i32: 0>} : vector<8x8xi32>
    %3 = tpu.iota {dimensions = array<i32: 1>} : vector<8x8xi32>
    %4 = arith.cmpi eq, %2, %3 : vector<8x8xi32>
    %cst = arith.constant 1.000000e+08 : f32
    %cst_2 = arith.constant 0.000000e+00 : f32
    %5 = vector.broadcast %cst : f32 to vector<8x8xf32>
    %6 = vector.broadcast %cst_2 : f32 to vector<8x8xf32>
    %7 = arith.select %4, %5, %6 : vector<8x8xi1>, vector<8x8xf32>
    %8 = tpu.iota {dimensions = array<i32: 0>} : vector<8x48xi32>
    %9 = tpu.iota {dimensions = array<i32: 1>} : vector<8x48xi32>
    %10 = vector.shape_cast %1 : vector<8x48xf32> to vector<8x1x48xf32>
    %11 = vector.shape_cast %1 : vector<8x48xf32> to vector<1x8x48xf32>
    %12 = vector.broadcast %10 : vector<8x1x48xf32> to vector<8x8x48xf32>
    %13 = vector.broadcast %11 : vector<1x8x48xf32> to vector<8x8x48xf32>
    %14 = arith.subf %12, %13 : vector<8x8x48xf32>
    %15 = math.absf %14 : vector<8x8x48xf32>
    %16 = vector.shape_cast %15 : vector<8x8x48xf32> to vector<64x48xf32>
    %c0_3 = arith.constant 0 : index
    %c0_4 = arith.constant 0 : index
    %c0_5 = arith.constant 0 : index
    %17 = vector.load %arg2[%c0_3, %c0_4, %c0_5] : memref<5x48x32xf32, #tpu.memory_space<vmem>>, vector<1x48x32xf32>
    %18 = vector.shape_cast %17 : vector<1x48x32xf32> to vector<48x32xf32>
    %cst_6 = arith.constant dense<0.000000e+00> : vector<64x32xf32>
    %19 = tpu.matmul %16, %18, %cst_6 {dimension_numbers = #tpu.dot_dimension_numbers<[1], [0], [0], [1], [0, 0, 1, 1], [], []>} : vector<64x48xf32>, vector<48x32xf32>, vector<64x32xf32> -> vector<64x32xf32>
    %c0_7 = arith.constant 0 : index
    %c0_8 = arith.constant 0 : index
    %c0_9 = arith.constant 0 : index
    %20 = vector.load %arg3[%c0_7, %c0_8, %c0_9] : memref<5x1x32xf32, #tpu.memory_space<vmem>>, vector<1x1x32xf32>
    %21 = vector.shape_cast %20 : vector<1x1x32xf32> to vector<1x32xf32>
    %22 = vector.broadcast %21 : vector<1x32xf32> to vector<64x32xf32>
    %23 = arith.addf %19, %22 : vector<64x32xf32>
    %cst_10 = arith.constant 0.000000e+00 : f32
    %24 = vector.broadcast %cst_10 : f32 to vector<64x32xf32>
    %25 = arith.cmpf ogt, %23, %24 : vector<64x32xf32>
    %cst_11 = arith.constant 0.00999999977 : f32
    %26 = vector.broadcast %cst_11 : f32 to vector<64x32xf32>
    %27 = arith.mulf %26, %23 : vector<64x32xf32>
    %28 = arith.select %25, %23, %27 : vector<64x32xi1>, vector<64x32xf32>
    %c0_12 = arith.constant 0 : index
    %c0_13 = arith.constant 0 : index
    %c0_14 = arith.constant 0 : index
    %29 = vector.load %arg4[%c0_12, %c0_13, %c0_14] : memref<5x1x32xf32, #tpu.memory_space<vmem>>, vector<1x1x32xf32>
    %30 = vector.shape_cast %29 : vector<1x1x32xf32> to vector<1x32xf32>
    %31 = vector.broadcast %30 : vector<1x32xf32> to vector<64x32xf32>
    %32 = arith.mulf %28, %31 : vector<64x32xf32>
    %cst_15 = arith.constant dense<0.000000e+00> : vector<64xf32>
    %33 = vector.multi_reduction <add>, %32, %cst_15 [1] : vector<64x32xf32> to vector<64xf32>
    %34 = vector.shape_cast %33 : vector<64xf32> to vector<64x1xf32>
    %c0_16 = arith.constant 0 : index
    %c0_17 = arith.constant 0 : index
    %c0_18 = arith.constant 0 : index
    %35 = vector.load %arg5[%c0_16, %c0_17, %c0_18] : memref<5x1x1xf32, #tpu.memory_space<vmem>>, vector<1x1x1xf32>
    %36 = vector.shape_cast %35 : vector<1x1x1xf32> to vector<1x1xf32>
    %37 = vector.broadcast %36 : vector<1x1xf32> to vector<64x1xf32>
    %38 = arith.addf %34, %37 : vector<64x1xf32>
    %39 = vector.shape_cast %38 : vector<64x1xf32> to vector<8x8xf32>
    %40 = arith.subf %39, %7 : vector<8x8xf32>
    %cst_19 = arith.constant dense<0xFF800000> : vector<8xf32>
    %41 = vector.multi_reduction <maximumf>, %40, %cst_19 [1] : vector<8x8xf32> to vector<8xf32>
    %42 = vector.shape_cast %41 : vector<8xf32> to vector<8x1xf32>
    %43 = vector.broadcast %42 : vector<8x1xf32> to vector<8x8xf32>
    %44 = arith.subf %40, %43 : vector<8x8xf32>
    %45 = math.exp %44 : vector<8x8xf32>
    %cst_20 = arith.constant dense<0.000000e+00> : vector<8xf32>
    %46 = vector.multi_reduction <add>, %45, %cst_20 [1] : vector<8x8xf32> to vector<8xf32>
    %47 = vector.shape_cast %46 : vector<8xf32> to vector<8x1xf32>
    %48 = tpu.reciprocal %47 {approx = true} : vector<8x1xf32> -> vector<8x1xf32>
    %49 = vector.broadcast %48 : vector<8x1xf32> to vector<8x8xf32>
    %50 = arith.mulf %45, %49 : vector<8x8xf32>
    %cst_21 = arith.constant dense<0.000000e+00> : vector<8x48xf32>
    %51 = tpu.matmul %50, %1, %cst_21 {dimension_numbers = #tpu.dot_dimension_numbers<[1], [0], [0], [1], [0, 0, 1, 1], [], []>} : vector<8x8xf32>, vector<8x48xf32>, vector<8x48xf32> -> vector<8x48xf32>
    %c0_22 = arith.constant 0 : index
    %c0_23 = arith.constant 0 : index
    %c0_24 = arith.constant 0 : index
    %52 = vector.load %arg6[%c0_22, %c0_23, %c0_24] : memref<5x48x8xf32, #tpu.memory_space<vmem>>, vector<1x48x8xf32>
    %53 = vector.shape_cast %52 : vector<1x48x8xf32> to vector<48x8xf32>
    %cst_25 = arith.constant dense<0.000000e+00> : vector<8x8xf32>
    %54 = tpu.matmul %1, %53, %cst_25 {dimension_numbers = #tpu.dot_dimension_numbers<[1], [0], [0], [1], [0, 0, 1, 1], [], []>} : vector<8x48xf32>, vector<48x8xf32>, vector<8x8xf32> -> vector<8x8xf32>
    %c0_26 = arith.constant 0 : index
    %c0_27 = arith.constant 0 : index
    %c0_28 = arith.constant 0 : index
    %55 = vector.load %arg7[%c0_26, %c0_27, %c0_28] : memref<5x48x8xf32, #tpu.memory_space<vmem>>, vector<1x48x8xf32>
    %56 = vector.shape_cast %55 : vector<1x48x8xf32> to vector<48x8xf32>
    %cst_29 = arith.constant dense<0.000000e+00> : vector<8x8xf32>
    %57 = tpu.matmul %51, %56, %cst_29 {dimension_numbers = #tpu.dot_dimension_numbers<[1], [0], [0], [1], [0, 0, 1, 1], [], []>} : vector<8x48xf32>, vector<48x8xf32>, vector<8x8xf32> -> vector<8x8xf32>
    %58 = arith.addf %54, %57 : vector<8x8xf32>
    %c0_30 = arith.constant 0 : index
    %c0_31 = arith.constant 0 : index
    %c0_32 = arith.constant 0 : index
    %59 = vector.load %arg8[%c0_30, %c0_31, %c0_32] : memref<5x1x8xf32, #tpu.memory_space<vmem>>, vector<1x1x8xf32>
    %60 = vector.shape_cast %59 : vector<1x1x8xf32> to vector<1x8xf32>
    %61 = vector.broadcast %60 : vector<1x8xf32> to vector<8x8xf32>
    %62 = arith.addf %58, %61 : vector<8x8xf32>
    %cst_33 = arith.constant 0.000000e+00 : f32
    %63 = vector.broadcast %cst_33 : f32 to vector<8x8xf32>
    %64 = arith.cmpf ogt, %62, %63 : vector<8x8xf32>
    %cst_34 = arith.constant 0.00999999977 : f32
    %65 = vector.broadcast %cst_34 : f32 to vector<8x8xf32>
    %66 = arith.mulf %65, %62 : vector<8x8xf32>
    %67 = arith.select %64, %62, %66 : vector<8x8xi1>, vector<8x8xf32>
    %c16_i32 = arith.constant 16 : i32
    %68 = vector.broadcast %c16_i32 : i32 to vector<8x48xi32>
    %69 = arith.addi %8, %68 : vector<8x48xi32>
    %70 = arith.cmpi eq, %9, %69 : vector<8x48xi32>
    %c8_i32 = arith.constant 8 : i32
    %71 = vector.broadcast %c8_i32 : i32 to vector<8x48xi32>
    %72 = arith.cmpi slt, %8, %71 : vector<8x48xi32>
    %73 = arith.andi %70, %72 : vector<8x48xi1>
    %74 = arith.extui %73 : vector<8x48xi1> to vector<8x48xi32>
    %75 = arith.sitofp %74 : vector<8x48xi32> to vector<8x48xf32>
    %cst_35 = arith.constant dense<0.000000e+00> : vector<8x48xf32>
    %76 = tpu.matmul %67, %75, %cst_35 {dimension_numbers = #tpu.dot_dimension_numbers<[1], [0], [0], [1], [0, 0, 1, 1], [], []>} : vector<8x8xf32>, vector<8x48xf32>, vector<8x48xf32> -> vector<8x48xf32>
    %77 = arith.addf %1, %76 : vector<8x48xf32>
    %78 = vector.shape_cast %77 : vector<8x48xf32> to vector<8x1x48xf32>
    %79 = vector.shape_cast %77 : vector<8x48xf32> to vector<1x8x48xf32>
    %80 = vector.broadcast %78 : vector<8x1x48xf32> to vector<8x8x48xf32>
    %81 = vector.broadcast %79 : vector<1x8x48xf32> to vector<8x8x48xf32>
    %82 = arith.subf %80, %81 : vector<8x8x48xf32>
    %83 = math.absf %82 : vector<8x8x48xf32>
    %84 = vector.shape_cast %83 : vector<8x8x48xf32> to vector<64x48xf32>
    %c1 = arith.constant 1 : index
    %c0_36 = arith.constant 0 : index
    %c0_37 = arith.constant 0 : index
    %85 = vector.load %arg2[%c1, %c0_36, %c0_37] : memref<5x48x32xf32, #tpu.memory_space<vmem>>, vector<1x48x32xf32>
    %86 = vector.shape_cast %85 : vector<1x48x32xf32> to vector<48x32xf32>
    %cst_38 = arith.constant dense<0.000000e+00> : vector<64x32xf32>
    %87 = tpu.matmul %84, %86, %cst_38 {dimension_numbers = #tpu.dot_dimension_numbers<[1], [0], [0], [1], [0, 0, 1, 1], [], []>} : vector<64x48xf32>, vector<48x32xf32>, vector<64x32xf32> -> vector<64x32xf32>
    %c1_39 = arith.constant 1 : index
    %c0_40 = arith.constant 0 : index
    %c0_41 = arith.constant 0 : index
    %88 = vector.load %arg3[%c1_39, %c0_40, %c0_41] : memref<5x1x32xf32, #tpu.memory_space<vmem>>, vector<1x1x32xf32>
    %89 = vector.shape_cast %88 : vector<1x1x32xf32> to vector<1x32xf32>
    %90 = vector.broadcast %89 : vector<1x32xf32> to vector<64x32xf32>
    %91 = arith.addf %87, %90 : vector<64x32xf32>
    %cst_42 = arith.constant 0.000000e+00 : f32
    %92 = vector.broadcast %cst_42 : f32 to vector<64x32xf32>
    %93 = arith.cmpf ogt, %91, %92 : vector<64x32xf32>
    %cst_43 = arith.constant 0.00999999977 : f32
    %94 = vector.broadcast %cst_43 : f32 to vector<64x32xf32>
    %95 = arith.mulf %94, %91 : vector<64x32xf32>
    %96 = arith.select %93, %91, %95 : vector<64x32xi1>, vector<64x32xf32>
    %c1_44 = arith.constant 1 : index
    %c0_45 = arith.constant 0 : index
    %c0_46 = arith.constant 0 : index
    %97 = vector.load %arg4[%c1_44, %c0_45, %c0_46] : memref<5x1x32xf32, #tpu.memory_space<vmem>>, vector<1x1x32xf32>
    %98 = vector.shape_cast %97 : vector<1x1x32xf32> to vector<1x32xf32>
    %99 = vector.broadcast %98 : vector<1x32xf32> to vector<64x32xf32>
    %100 = arith.mulf %96, %99 : vector<64x32xf32>
    %cst_47 = arith.constant dense<0.000000e+00> : vector<64xf32>
    %101 = vector.multi_reduction <add>, %100, %cst_47 [1] : vector<64x32xf32> to vector<64xf32>
    %102 = vector.shape_cast %101 : vector<64xf32> to vector<64x1xf32>
    %c1_48 = arith.constant 1 : index
    %c0_49 = arith.constant 0 : index
    %c0_50 = arith.constant 0 : index
    %103 = vector.load %arg5[%c1_48, %c0_49, %c0_50] : memref<5x1x1xf32, #tpu.memory_space<vmem>>, vector<1x1x1xf32>
    %104 = vector.shape_cast %103 : vector<1x1x1xf32> to vector<1x1xf32>
    %105 = vector.broadcast %104 : vector<1x1xf32> to vector<64x1xf32>
    %106 = arith.addf %102, %105 : vector<64x1xf32>
    %107 = vector.shape_cast %106 : vector<64x1xf32> to vector<8x8xf32>
    %108 = arith.subf %107, %7 : vector<8x8xf32>
    %cst_51 = arith.constant dense<0xFF800000> : vector<8xf32>
    %109 = vector.multi_reduction <maximumf>, %108, %cst_51 [1] : vector<8x8xf32> to vector<8xf32>
    %110 = vector.shape_cast %109 : vector<8xf32> to vector<8x1xf32>
    %111 = vector.broadcast %110 : vector<8x1xf32> to vector<8x8xf32>
    %112 = arith.subf %108, %111 : vector<8x8xf32>
    %113 = math.exp %112 : vector<8x8xf32>
    %cst_52 = arith.constant dense<0.000000e+00> : vector<8xf32>
    %114 = vector.multi_reduction <add>, %113, %cst_52 [1] : vector<8x8xf32> to vector<8xf32>
    %115 = vector.shape_cast %114 : vector<8xf32> to vector<8x1xf32>
    %116 = tpu.reciprocal %115 {approx = true} : vector<8x1xf32> -> vector<8x1xf32>
    %117 = vector.broadcast %116 : vector<8x1xf32> to vector<8x8xf32>
    %118 = arith.mulf %113, %117 : vector<8x8xf32>
    %cst_53 = arith.constant dense<0.000000e+00> : vector<8x48xf32>
    %119 = tpu.matmul %118, %77, %cst_53 {dimension_numbers = #tpu.dot_dimension_numbers<[1], [0], [0], [1], [0, 0, 1, 1], [], []>} : vector<8x8xf32>, vector<8x48xf32>, vector<8x48xf32> -> vector<8x48xf32>
    %c1_54 = arith.constant 1 : index
    %c0_55 = arith.constant 0 : index
    %c0_56 = arith.constant 0 : index
    %120 = vector.load %arg6[%c1_54, %c0_55, %c0_56] : memref<5x48x8xf32, #tpu.memory_space<vmem>>, vector<1x48x8xf32>
    %121 = vector.shape_cast %120 : vector<1x48x8xf32> to vector<48x8xf32>
    %cst_57 = arith.constant dense<0.000000e+00> : vector<8x8xf32>
    %122 = tpu.matmul %77, %121, %cst_57 {dimension_numbers = #tpu.dot_dimension_numbers<[1], [0], [0], [1], [0, 0, 1, 1], [], []>} : vector<8x48xf32>, vector<48x8xf32>, vector<8x8xf32> -> vector<8x8xf32>
    %c1_58 = arith.constant 1 : index
    %c0_59 = arith.constant 0 : index
    %c0_60 = arith.constant 0 : index
    %123 = vector.load %arg7[%c1_58, %c0_59, %c0_60] : memref<5x48x8xf32, #tpu.memory_space<vmem>>, vector<1x48x8xf32>
    %124 = vector.shape_cast %123 : vector<1x48x8xf32> to vector<48x8xf32>
    %cst_61 = arith.constant dense<0.000000e+00> : vector<8x8xf32>
    %125 = tpu.matmul %119, %124, %cst_61 {dimension_numbers = #tpu.dot_dimension_numbers<[1], [0], [0], [1], [0, 0, 1, 1], [], []>} : vector<8x48xf32>, vector<48x8xf32>, vector<8x8xf32> -> vector<8x8xf32>
    %126 = arith.addf %122, %125 : vector<8x8xf32>
    %c1_62 = arith.constant 1 : index
    %c0_63 = arith.constant 0 : index
    %c0_64 = arith.constant 0 : index
    %127 = vector.load %arg8[%c1_62, %c0_63, %c0_64] : memref<5x1x8xf32, #tpu.memory_space<vmem>>, vector<1x1x8xf32>
    %128 = vector.shape_cast %127 : vector<1x1x8xf32> to vector<1x8xf32>
    %129 = vector.broadcast %128 : vector<1x8xf32> to vector<8x8xf32>
    %130 = arith.addf %126, %129 : vector<8x8xf32>
    %cst_65 = arith.constant 0.000000e+00 : f32
    %131 = vector.broadcast %cst_65 : f32 to vector<8x8xf32>
    %132 = arith.cmpf ogt, %130, %131 : vector<8x8xf32>
    %cst_66 = arith.constant 0.00999999977 : f32
    %133 = vector.broadcast %cst_66 : f32 to vector<8x8xf32>
    %134 = arith.mulf %133, %130 : vector<8x8xf32>
    %135 = arith.select %132, %130, %134 : vector<8x8xi1>, vector<8x8xf32>
    %c24_i32 = arith.constant 24 : i32
    %136 = vector.broadcast %c24_i32 : i32 to vector<8x48xi32>
    %137 = arith.addi %8, %136 : vector<8x48xi32>
    %138 = arith.cmpi eq, %9, %137 : vector<8x48xi32>
    %c8_i32_67 = arith.constant 8 : i32
    %139 = vector.broadcast %c8_i32_67 : i32 to vector<8x48xi32>
    %140 = arith.cmpi slt, %8, %139 : vector<8x48xi32>
    %141 = arith.andi %138, %140 : vector<8x48xi1>
    %142 = arith.extui %141 : vector<8x48xi1> to vector<8x48xi32>
    %143 = arith.sitofp %142 : vector<8x48xi32> to vector<8x48xf32>
    %cst_68 = arith.constant dense<0.000000e+00> : vector<8x48xf32>
    %144 = tpu.matmul %135, %143, %cst_68 {dimension_numbers = #tpu.dot_dimension_numbers<[1], [0], [0], [1], [0, 0, 1, 1], [], []>} : vector<8x8xf32>, vector<8x48xf32>, vector<8x48xf32> -> vector<8x48xf32>
    %145 = arith.addf %77, %144 : vector<8x48xf32>
    %146 = vector.shape_cast %145 : vector<8x48xf32> to vector<8x1x48xf32>
    %147 = vector.shape_cast %145 : vector<8x48xf32> to vector<1x8x48xf32>
    %148 = vector.broadcast %146 : vector<8x1x48xf32> to vector<8x8x48xf32>
    %149 = vector.broadcast %147 : vector<1x8x48xf32> to vector<8x8x48xf32>
    %150 = arith.subf %148, %149 : vector<8x8x48xf32>
    %151 = math.absf %150 : vector<8x8x48xf32>
    %152 = vector.shape_cast %151 : vector<8x8x48xf32> to vector<64x48xf32>
    %c2 = arith.constant 2 : index
    %c0_69 = arith.constant 0 : index
    %c0_70 = arith.constant 0 : index
    %153 = vector.load %arg2[%c2, %c0_69, %c0_70] : memref<5x48x32xf32, #tpu.memory_space<vmem>>, vector<1x48x32xf32>
    %154 = vector.shape_cast %153 : vector<1x48x32xf32> to vector<48x32xf32>
    %cst_71 = arith.constant dense<0.000000e+00> : vector<64x32xf32>
    %155 = tpu.matmul %152, %154, %cst_71 {dimension_numbers = #tpu.dot_dimension_numbers<[1], [0], [0], [1], [0, 0, 1, 1], [], []>} : vector<64x48xf32>, vector<48x32xf32>, vector<64x32xf32> -> vector<64x32xf32>
    %c2_72 = arith.constant 2 : index
    %c0_73 = arith.constant 0 : index
    %c0_74 = arith.constant 0 : index
    %156 = vector.load %arg3[%c2_72, %c0_73, %c0_74] : memref<5x1x32xf32, #tpu.memory_space<vmem>>, vector<1x1x32xf32>
    %157 = vector.shape_cast %156 : vector<1x1x32xf32> to vector<1x32xf32>
    %158 = vector.broadcast %157 : vector<1x32xf32> to vector<64x32xf32>
    %159 = arith.addf %155, %158 : vector<64x32xf32>
    %cst_75 = arith.constant 0.000000e+00 : f32
    %160 = vector.broadcast %cst_75 : f32 to vector<64x32xf32>
    %161 = arith.cmpf ogt, %159, %160 : vector<64x32xf32>
    %cst_76 = arith.constant 0.00999999977 : f32
    %162 = vector.broadcast %cst_76 : f32 to vector<64x32xf32>
    %163 = arith.mulf %162, %159 : vector<64x32xf32>
    %164 = arith.select %161, %159, %163 : vector<64x32xi1>, vector<64x32xf32>
    %c2_77 = arith.constant 2 : index
    %c0_78 = arith.constant 0 : index
    %c0_79 = arith.constant 0 : index
    %165 = vector.load %arg4[%c2_77, %c0_78, %c0_79] : memref<5x1x32xf32, #tpu.memory_space<vmem>>, vector<1x1x32xf32>
    %166 = vector.shape_cast %165 : vector<1x1x32xf32> to vector<1x32xf32>
    %167 = vector.broadcast %166 : vector<1x32xf32> to vector<64x32xf32>
    %168 = arith.mulf %164, %167 : vector<64x32xf32>
    %cst_80 = arith.constant dense<0.000000e+00> : vector<64xf32>
    %169 = vector.multi_reduction <add>, %168, %cst_80 [1] : vector<64x32xf32> to vector<64xf32>
    %170 = vector.shape_cast %169 : vector<64xf32> to vector<64x1xf32>
    %c2_81 = arith.constant 2 : index
    %c0_82 = arith.constant 0 : index
    %c0_83 = arith.constant 0 : index
    %171 = vector.load %arg5[%c2_81, %c0_82, %c0_83] : memref<5x1x1xf32, #tpu.memory_space<vmem>>, vector<1x1x1xf32>
    %172 = vector.shape_cast %171 : vector<1x1x1xf32> to vector<1x1xf32>
    %173 = vector.broadcast %172 : vector<1x1xf32> to vector<64x1xf32>
    %174 = arith.addf %170, %173 : vector<64x1xf32>
    %175 = vector.shape_cast %174 : vector<64x1xf32> to vector<8x8xf32>
    %176 = arith.subf %175, %7 : vector<8x8xf32>
    %cst_84 = arith.constant dense<0xFF800000> : vector<8xf32>
    %177 = vector.multi_reduction <maximumf>, %176, %cst_84 [1] : vector<8x8xf32> to vector<8xf32>
    %178 = vector.shape_cast %177 : vector<8xf32> to vector<8x1xf32>
    %179 = vector.broadcast %178 : vector<8x1xf32> to vector<8x8xf32>
    %180 = arith.subf %176, %179 : vector<8x8xf32>
    %181 = math.exp %180 : vector<8x8xf32>
    %cst_85 = arith.constant dense<0.000000e+00> : vector<8xf32>
    %182 = vector.multi_reduction <add>, %181, %cst_85 [1] : vector<8x8xf32> to vector<8xf32>
    %183 = vector.shape_cast %182 : vector<8xf32> to vector<8x1xf32>
    %184 = tpu.reciprocal %183 {approx = true} : vector<8x1xf32> -> vector<8x1xf32>
    %185 = vector.broadcast %184 : vector<8x1xf32> to vector<8x8xf32>
    %186 = arith.mulf %181, %185 : vector<8x8xf32>
    %cst_86 = arith.constant dense<0.000000e+00> : vector<8x48xf32>
    %187 = tpu.matmul %186, %145, %cst_86 {dimension_numbers = #tpu.dot_dimension_numbers<[1], [0], [0], [1], [0, 0, 1, 1], [], []>} : vector<8x8xf32>, vector<8x48xf32>, vector<8x48xf32> -> vector<8x48xf32>
    %c2_87 = arith.constant 2 : index
    %c0_88 = arith.constant 0 : index
    %c0_89 = arith.constant 0 : index
    %188 = vector.load %arg6[%c2_87, %c0_88, %c0_89] : memref<5x48x8xf32, #tpu.memory_space<vmem>>, vector<1x48x8xf32>
    %189 = vector.shape_cast %188 : vector<1x48x8xf32> to vector<48x8xf32>
    %cst_90 = arith.constant dense<0.000000e+00> : vector<8x8xf32>
    %190 = tpu.matmul %145, %189, %cst_90 {dimension_numbers = #tpu.dot_dimension_numbers<[1], [0], [0], [1], [0, 0, 1, 1], [], []>} : vector<8x48xf32>, vector<48x8xf32>, vector<8x8xf32> -> vector<8x8xf32>
    %c2_91 = arith.constant 2 : index
    %c0_92 = arith.constant 0 : index
    %c0_93 = arith.constant 0 : index
    %191 = vector.load %arg7[%c2_91, %c0_92, %c0_93] : memref<5x48x8xf32, #tpu.memory_space<vmem>>, vector<1x48x8xf32>
    %192 = vector.shape_cast %191 : vector<1x48x8xf32> to vector<48x8xf32>
    %cst_94 = arith.constant dense<0.000000e+00> : vector<8x8xf32>
    %193 = tpu.matmul %187, %192, %cst_94 {dimension_numbers = #tpu.dot_dimension_numbers<[1], [0], [0], [1], [0, 0, 1, 1], [], []>} : vector<8x48xf32>, vector<48x8xf32>, vector<8x8xf32> -> vector<8x8xf32>
    %194 = arith.addf %190, %193 : vector<8x8xf32>
    %c2_95 = arith.constant 2 : index
    %c0_96 = arith.constant 0 : index
    %c0_97 = arith.constant 0 : index
    %195 = vector.load %arg8[%c2_95, %c0_96, %c0_97] : memref<5x1x8xf32, #tpu.memory_space<vmem>>, vector<1x1x8xf32>
    %196 = vector.shape_cast %195 : vector<1x1x8xf32> to vector<1x8xf32>
    %197 = vector.broadcast %196 : vector<1x8xf32> to vector<8x8xf32>
    %198 = arith.addf %194, %197 : vector<8x8xf32>
    %cst_98 = arith.constant 0.000000e+00 : f32
    %199 = vector.broadcast %cst_98 : f32 to vector<8x8xf32>
    %200 = arith.cmpf ogt, %198, %199 : vector<8x8xf32>
    %cst_99 = arith.constant 0.00999999977 : f32
    %201 = vector.broadcast %cst_99 : f32 to vector<8x8xf32>
    %202 = arith.mulf %201, %198 : vector<8x8xf32>
    %203 = arith.select %200, %198, %202 : vector<8x8xi1>, vector<8x8xf32>
    %c32_i32 = arith.constant 32 : i32
    %204 = vector.broadcast %c32_i32 : i32 to vector<8x48xi32>
    %205 = arith.addi %8, %204 : vector<8x48xi32>
    %206 = arith.cmpi eq, %9, %205 : vector<8x48xi32>
    %c8_i32_100 = arith.constant 8 : i32
    %207 = vector.broadcast %c8_i32_100 : i32 to vector<8x48xi32>
    %208 = arith.cmpi slt, %8, %207 : vector<8x48xi32>
    %209 = arith.andi %206, %208 : vector<8x48xi1>
    %210 = arith.extui %209 : vector<8x48xi1> to vector<8x48xi32>
    %211 = arith.sitofp %210 : vector<8x48xi32> to vector<8x48xf32>
    %cst_101 = arith.constant dense<0.000000e+00> : vector<8x48xf32>
    %212 = tpu.matmul %203, %211, %cst_101 {dimension_numbers = #tpu.dot_dimension_numbers<[1], [0], [0], [1], [0, 0, 1, 1], [], []>} : vector<8x8xf32>, vector<8x48xf32>, vector<8x48xf32> -> vector<8x48xf32>
    %213 = arith.addf %145, %212 : vector<8x48xf32>
    %214 = vector.shape_cast %213 : vector<8x48xf32> to vector<8x1x48xf32>
    %215 = vector.shape_cast %213 : vector<8x48xf32> to vector<1x8x48xf32>
    %216 = vector.broadcast %214 : vector<8x1x48xf32> to vector<8x8x48xf32>
    %217 = vector.broadcast %215 : vector<1x8x48xf32> to vector<8x8x48xf32>
    %218 = arith.subf %216, %217 : vector<8x8x48xf32>
    %219 = math.absf %218 : vector<8x8x48xf32>
    %220 = vector.shape_cast %219 : vector<8x8x48xf32> to vector<64x48xf32>
    %c3 = arith.constant 3 : index
    %c0_102 = arith.constant 0 : index
    %c0_103 = arith.constant 0 : index
    %221 = vector.load %arg2[%c3, %c0_102, %c0_103] : memref<5x48x32xf32, #tpu.memory_space<vmem>>, vector<1x48x32xf32>
    %222 = vector.shape_cast %221 : vector<1x48x32xf32> to vector<48x32xf32>
    %cst_104 = arith.constant dense<0.000000e+00> : vector<64x32xf32>
    %223 = tpu.matmul %220, %222, %cst_104 {dimension_numbers = #tpu.dot_dimension_numbers<[1], [0], [0], [1], [0, 0, 1, 1], [], []>} : vector<64x48xf32>, vector<48x32xf32>, vector<64x32xf32> -> vector<64x32xf32>
    %c3_105 = arith.constant 3 : index
    %c0_106 = arith.constant 0 : index
    %c0_107 = arith.constant 0 : index
    %224 = vector.load %arg3[%c3_105, %c0_106, %c0_107] : memref<5x1x32xf32, #tpu.memory_space<vmem>>, vector<1x1x32xf32>
    %225 = vector.shape_cast %224 : vector<1x1x32xf32> to vector<1x32xf32>
    %226 = vector.broadcast %225 : vector<1x32xf32> to vector<64x32xf32>
    %227 = arith.addf %223, %226 : vector<64x32xf32>
    %cst_108 = arith.constant 0.000000e+00 : f32
    %228 = vector.broadcast %cst_108 : f32 to vector<64x32xf32>
    %229 = arith.cmpf ogt, %227, %228 : vector<64x32xf32>
    %cst_109 = arith.constant 0.00999999977 : f32
    %230 = vector.broadcast %cst_109 : f32 to vector<64x32xf32>
    %231 = arith.mulf %230, %227 : vector<64x32xf32>
    %232 = arith.select %229, %227, %231 : vector<64x32xi1>, vector<64x32xf32>
    %c3_110 = arith.constant 3 : index
    %c0_111 = arith.constant 0 : index
    %c0_112 = arith.constant 0 : index
    %233 = vector.load %arg4[%c3_110, %c0_111, %c0_112] : memref<5x1x32xf32, #tpu.memory_space<vmem>>, vector<1x1x32xf32>
    %234 = vector.shape_cast %233 : vector<1x1x32xf32> to vector<1x32xf32>
    %235 = vector.broadcast %234 : vector<1x32xf32> to vector<64x32xf32>
    %236 = arith.mulf %232, %235 : vector<64x32xf32>
    %cst_113 = arith.constant dense<0.000000e+00> : vector<64xf32>
    %237 = vector.multi_reduction <add>, %236, %cst_113 [1] : vector<64x32xf32> to vector<64xf32>
    %238 = vector.shape_cast %237 : vector<64xf32> to vector<64x1xf32>
    %c3_114 = arith.constant 3 : index
    %c0_115 = arith.constant 0 : index
    %c0_116 = arith.constant 0 : index
    %239 = vector.load %arg5[%c3_114, %c0_115, %c0_116] : memref<5x1x1xf32, #tpu.memory_space<vmem>>, vector<1x1x1xf32>
    %240 = vector.shape_cast %239 : vector<1x1x1xf32> to vector<1x1xf32>
    %241 = vector.broadcast %240 : vector<1x1xf32> to vector<64x1xf32>
    %242 = arith.addf %238, %241 : vector<64x1xf32>
    %243 = vector.shape_cast %242 : vector<64x1xf32> to vector<8x8xf32>
    %244 = arith.subf %243, %7 : vector<8x8xf32>
    %cst_117 = arith.constant dense<0xFF800000> : vector<8xf32>
    %245 = vector.multi_reduction <maximumf>, %244, %cst_117 [1] : vector<8x8xf32> to vector<8xf32>
    %246 = vector.shape_cast %245 : vector<8xf32> to vector<8x1xf32>
    %247 = vector.broadcast %246 : vector<8x1xf32> to vector<8x8xf32>
    %248 = arith.subf %244, %247 : vector<8x8xf32>
    %249 = math.exp %248 : vector<8x8xf32>
    %cst_118 = arith.constant dense<0.000000e+00> : vector<8xf32>
    %250 = vector.multi_reduction <add>, %249, %cst_118 [1] : vector<8x8xf32> to vector<8xf32>
    %251 = vector.shape_cast %250 : vector<8xf32> to vector<8x1xf32>
    %252 = tpu.reciprocal %251 {approx = true} : vector<8x1xf32> -> vector<8x1xf32>
    %253 = vector.broadcast %252 : vector<8x1xf32> to vector<8x8xf32>
    %254 = arith.mulf %249, %253 : vector<8x8xf32>
    %cst_119 = arith.constant dense<0.000000e+00> : vector<8x48xf32>
    %255 = tpu.matmul %254, %213, %cst_119 {dimension_numbers = #tpu.dot_dimension_numbers<[1], [0], [0], [1], [0, 0, 1, 1], [], []>} : vector<8x8xf32>, vector<8x48xf32>, vector<8x48xf32> -> vector<8x48xf32>
    %c3_120 = arith.constant 3 : index
    %c0_121 = arith.constant 0 : index
    %c0_122 = arith.constant 0 : index
    %256 = vector.load %arg6[%c3_120, %c0_121, %c0_122] : memref<5x48x8xf32, #tpu.memory_space<vmem>>, vector<1x48x8xf32>
    %257 = vector.shape_cast %256 : vector<1x48x8xf32> to vector<48x8xf32>
    %cst_123 = arith.constant dense<0.000000e+00> : vector<8x8xf32>
    %258 = tpu.matmul %213, %257, %cst_123 {dimension_numbers = #tpu.dot_dimension_numbers<[1], [0], [0], [1], [0, 0, 1, 1], [], []>} : vector<8x48xf32>, vector<48x8xf32>, vector<8x8xf32> -> vector<8x8xf32>
    %c3_124 = arith.constant 3 : index
    %c0_125 = arith.constant 0 : index
    %c0_126 = arith.constant 0 : index
    %259 = vector.load %arg7[%c3_124, %c0_125, %c0_126] : memref<5x48x8xf32, #tpu.memory_space<vmem>>, vector<1x48x8xf32>
    %260 = vector.shape_cast %259 : vector<1x48x8xf32> to vector<48x8xf32>
    %cst_127 = arith.constant dense<0.000000e+00> : vector<8x8xf32>
    %261 = tpu.matmul %255, %260, %cst_127 {dimension_numbers = #tpu.dot_dimension_numbers<[1], [0], [0], [1], [0, 0, 1, 1], [], []>} : vector<8x48xf32>, vector<48x8xf32>, vector<8x8xf32> -> vector<8x8xf32>
    %262 = arith.addf %258, %261 : vector<8x8xf32>
    %c3_128 = arith.constant 3 : index
    %c0_129 = arith.constant 0 : index
    %c0_130 = arith.constant 0 : index
    %263 = vector.load %arg8[%c3_128, %c0_129, %c0_130] : memref<5x1x8xf32, #tpu.memory_space<vmem>>, vector<1x1x8xf32>
    %264 = vector.shape_cast %263 : vector<1x1x8xf32> to vector<1x8xf32>
    %265 = vector.broadcast %264 : vector<1x8xf32> to vector<8x8xf32>
    %266 = arith.addf %262, %265 : vector<8x8xf32>
    %cst_131 = arith.constant 0.000000e+00 : f32
    %267 = vector.broadcast %cst_131 : f32 to vector<8x8xf32>
    %268 = arith.cmpf ogt, %266, %267 : vector<8x8xf32>
    %cst_132 = arith.constant 0.00999999977 : f32
    %269 = vector.broadcast %cst_132 : f32 to vector<8x8xf32>
    %270 = arith.mulf %269, %266 : vector<8x8xf32>
    %271 = arith.select %268, %266, %270 : vector<8x8xi1>, vector<8x8xf32>
    %c40_i32 = arith.constant 40 : i32
    %272 = vector.broadcast %c40_i32 : i32 to vector<8x48xi32>
    %273 = arith.addi %8, %272 : vector<8x48xi32>
    %274 = arith.cmpi eq, %9, %273 : vector<8x48xi32>
    %c8_i32_133 = arith.constant 8 : i32
    %275 = vector.broadcast %c8_i32_133 : i32 to vector<8x48xi32>
    %276 = arith.cmpi slt, %8, %275 : vector<8x48xi32>
    %277 = arith.andi %274, %276 : vector<8x48xi1>
    %278 = arith.extui %277 : vector<8x48xi1> to vector<8x48xi32>
    %279 = arith.sitofp %278 : vector<8x48xi32> to vector<8x48xf32>
    %cst_134 = arith.constant dense<0.000000e+00> : vector<8x48xf32>
    %280 = tpu.matmul %271, %279, %cst_134 {dimension_numbers = #tpu.dot_dimension_numbers<[1], [0], [0], [1], [0, 0, 1, 1], [], []>} : vector<8x8xf32>, vector<8x48xf32>, vector<8x48xf32> -> vector<8x48xf32>
    %281 = arith.addf %213, %280 : vector<8x48xf32>
    %282 = vector.extract_strided_slice %281 {offsets = [0, 0], sizes = [1, 48], strides = [1, 1]} : vector<8x48xf32> to vector<1x48xf32>
    %283 = vector.broadcast %282 : vector<1x48xf32> to vector<8x48xf32>
    %284 = arith.subf %283, %281 : vector<8x48xf32>
    %285 = math.absf %284 : vector<8x48xf32>
    %c4 = arith.constant 4 : index
    %c0_135 = arith.constant 0 : index
    %c0_136 = arith.constant 0 : index
    %286 = vector.load %arg2[%c4, %c0_135, %c0_136] : memref<5x48x32xf32, #tpu.memory_space<vmem>>, vector<1x48x32xf32>
    %287 = vector.shape_cast %286 : vector<1x48x32xf32> to vector<48x32xf32>
    %cst_137 = arith.constant dense<0.000000e+00> : vector<8x32xf32>
    %288 = tpu.matmul %285, %287, %cst_137 {dimension_numbers = #tpu.dot_dimension_numbers<[1], [0], [0], [1], [0, 0, 1, 1], [], []>} : vector<8x48xf32>, vector<48x32xf32>, vector<8x32xf32> -> vector<8x32xf32>
    %c4_138 = arith.constant 4 : index
    %c0_139 = arith.constant 0 : index
    %c0_140 = arith.constant 0 : index
    %289 = vector.load %arg3[%c4_138, %c0_139, %c0_140] : memref<5x1x32xf32, #tpu.memory_space<vmem>>, vector<1x1x32xf32>
    %290 = vector.shape_cast %289 : vector<1x1x32xf32> to vector<1x32xf32>
    %291 = vector.broadcast %290 : vector<1x32xf32> to vector<8x32xf32>
    %292 = arith.addf %288, %291 : vector<8x32xf32>
    %cst_141 = arith.constant 0.000000e+00 : f32
    %293 = vector.broadcast %cst_141 : f32 to vector<8x32xf32>
    %294 = arith.cmpf ogt, %292, %293 : vector<8x32xf32>
    %cst_142 = arith.constant 0.00999999977 : f32
    %295 = vector.broadcast %cst_142 : f32 to vector<8x32xf32>
    %296 = arith.mulf %295, %292 : vector<8x32xf32>
    %297 = arith.select %294, %292, %296 : vector<8x32xi1>, vector<8x32xf32>
    %c4_143 = arith.constant 4 : index
    %c0_144 = arith.constant 0 : index
    %c0_145 = arith.constant 0 : index
    %298 = vector.load %arg4[%c4_143, %c0_144, %c0_145] : memref<5x1x32xf32, #tpu.memory_space<vmem>>, vector<1x1x32xf32>
    %299 = vector.shape_cast %298 : vector<1x1x32xf32> to vector<1x32xf32>
    %300 = vector.broadcast %299 : vector<1x32xf32> to vector<8x32xf32>
    %301 = arith.mulf %297, %300 : vector<8x32xf32>
    %cst_146 = arith.constant dense<0.000000e+00> : vector<8xf32>
    %302 = vector.multi_reduction <add>, %301, %cst_146 [1] : vector<8x32xf32> to vector<8xf32>
    %303 = vector.shape_cast %302 : vector<8xf32> to vector<8x1xf32>
    %c4_147 = arith.constant 4 : index
    %c0_148 = arith.constant 0 : index
    %c0_149 = arith.constant 0 : index
    %304 = vector.load %arg5[%c4_147, %c0_148, %c0_149] : memref<5x1x1xf32, #tpu.memory_space<vmem>>, vector<1x1x1xf32>
    %305 = vector.shape_cast %304 : vector<1x1x1xf32> to vector<1x1xf32>
    %306 = vector.broadcast %305 : vector<1x1xf32> to vector<8x1xf32>
    %307 = arith.addf %303, %306 : vector<8x1xf32>
    %308 = tpu.iota {dimensions = array<i32: 0>} : vector<8x1xi32>
    %c0_i32 = arith.constant 0 : i32
    %309 = vector.broadcast %c0_i32 : i32 to vector<8x1xi32>
    %310 = arith.cmpi eq, %308, %309 : vector<8x1xi32>
    %cst_150 = arith.constant 1.000000e+08 : f32
    %cst_151 = arith.constant 0.000000e+00 : f32
    %311 = vector.broadcast %cst_150 : f32 to vector<8x1xf32>
    %312 = vector.broadcast %cst_151 : f32 to vector<8x1xf32>
    %313 = arith.select %310, %311, %312 : vector<8x1xi1>, vector<8x1xf32>
    %314 = arith.subf %307, %313 : vector<8x1xf32>
    %cst_152 = arith.constant dense<0xFF800000> : vector<1xf32>
    %315 = vector.multi_reduction <maximumf>, %314, %cst_152 [0] : vector<8x1xf32> to vector<1xf32>
    %316 = vector.shape_cast %315 : vector<1xf32> to vector<1x1xf32>
    %317 = vector.broadcast %316 : vector<1x1xf32> to vector<8x1xf32>
    %318 = arith.subf %314, %317 : vector<8x1xf32>
    %319 = math.exp %318 : vector<8x1xf32>
    %cst_153 = arith.constant dense<0.000000e+00> : vector<1xf32>
    %320 = vector.multi_reduction <add>, %319, %cst_153 [0] : vector<8x1xf32> to vector<1xf32>
    %321 = vector.shape_cast %320 : vector<1xf32> to vector<1x1xf32>
    %322 = tpu.reciprocal %321 {approx = true} : vector<1x1xf32> -> vector<1x1xf32>
    %323 = vector.broadcast %322 : vector<1x1xf32> to vector<8x1xf32>
    %324 = arith.mulf %319, %323 : vector<8x1xf32>
    %325 = vector.broadcast %324 : vector<8x1xf32> to vector<8x48xf32>
    %326 = arith.mulf %325, %281 : vector<8x48xf32>
    %cst_154 = arith.constant dense<0.000000e+00> : vector<48xf32>
    %327 = vector.multi_reduction <add>, %326, %cst_154 [0] : vector<8x48xf32> to vector<48xf32>
    %328 = vector.shape_cast %327 : vector<48xf32> to vector<1x48xf32>
    %329 = vector.extract_strided_slice %281 {offsets = [0, 0], sizes = [1, 48], strides = [1, 1]} : vector<8x48xf32> to vector<1x48xf32>
    %c4_155 = arith.constant 4 : index
    %c0_156 = arith.constant 0 : index
    %c0_157 = arith.constant 0 : index
    %330 = vector.load %arg6[%c4_155, %c0_156, %c0_157] : memref<5x48x8xf32, #tpu.memory_space<vmem>>, vector<1x48x8xf32>
    %331 = vector.shape_cast %330 : vector<1x48x8xf32> to vector<48x8xf32>
    %cst_158 = arith.constant dense<0.000000e+00> : vector<1x8xf32>
    %332 = tpu.matmul %329, %331, %cst_158 {dimension_numbers = #tpu.dot_dimension_numbers<[1], [0], [0], [1], [0, 0, 1, 1], [], []>} : vector<1x48xf32>, vector<48x8xf32>, vector<1x8xf32> -> vector<1x8xf32>
    %c4_159 = arith.constant 4 : index
    %c0_160 = arith.constant 0 : index
    %c0_161 = arith.constant 0 : index
    %333 = vector.load %arg7[%c4_159, %c0_160, %c0_161] : memref<5x48x8xf32, #tpu.memory_space<vmem>>, vector<1x48x8xf32>
    %334 = vector.shape_cast %333 : vector<1x48x8xf32> to vector<48x8xf32>
    %cst_162 = arith.constant dense<0.000000e+00> : vector<1x8xf32>
    %335 = tpu.matmul %328, %334, %cst_162 {dimension_numbers = #tpu.dot_dimension_numbers<[1], [0], [0], [1], [0, 0, 1, 1], [], []>} : vector<1x48xf32>, vector<48x8xf32>, vector<1x8xf32> -> vector<1x8xf32>
    %336 = arith.addf %332, %335 : vector<1x8xf32>
    %c4_163 = arith.constant 4 : index
    %c0_164 = arith.constant 0 : index
    %c0_165 = arith.constant 0 : index
    %337 = vector.load %arg8[%c4_163, %c0_164, %c0_165] : memref<5x1x8xf32, #tpu.memory_space<vmem>>, vector<1x1x8xf32>
    %338 = vector.shape_cast %337 : vector<1x1x8xf32> to vector<1x8xf32>
    %339 = arith.addf %336, %338 : vector<1x8xf32>
    %340 = vector.extract_strided_slice %339 {offsets = [0, 0], sizes = [1, 4], strides = [1, 1]} : vector<1x8xf32> to vector<1x4xf32>
    %c0_166 = arith.constant 0 : index
    %c0_167 = arith.constant 0 : index
    %c0_168 = arith.constant 0 : index
    %341 = vector.load %arg9[%c0_166, %c0_167, %c0_168] : memref<1x1x4xf32, #tpu.memory_space<vmem>>, vector<1x1x4xf32>
    %342 = vector.shape_cast %341 : vector<1x1x4xf32> to vector<1x4xf32>
    %343 = vector.shape_cast %340 : vector<1x4xf32> to vector<1x1x4xf32>
    tpu.vector_store %arg9[%c0_166, %c0_167, %c0_168], %343 {strides = array<i32>} : memref<1x1x4xf32, #tpu.memory_space<vmem>>, vector<1x1x4xf32>,
    return
  }
  func.func @transform_0(%arg0: i32) -> (i32, i32, i32) {
    %c0_i32 = arith.constant 0 : i32
    %c0_i32_0 = arith.constant 0 : i32
    %c0_i32_1 = arith.constant 0 : i32
    return %arg0, %c0_i32, %c0_i32_0 : i32, i32, i32
  }
  func.func @transform_1(%arg0: i32) -> (i32, i32, i32) {
    %c0_i32 = arith.constant 0 : i32
    %c0_i32_0 = arith.constant 0 : i32
    %c0_i32_1 = arith.constant 0 : i32
    %c0_i32_2 = arith.constant 0 : i32
    return %c0_i32, %c0_i32_0, %c0_i32_1 : i32, i32, i32
  }
  func.func @transform_2(%arg0: i32) -> (i32, i32, i32) {
    %c0_i32 = arith.constant 0 : i32
    %c0_i32_0 = arith.constant 0 : i32
    %c0_i32_1 = arith.constant 0 : i32
    %c0_i32_2 = arith.constant 0 : i32
    return %c0_i32, %c0_i32_0, %c0_i32_1 : i32, i32, i32
  }
  func.func @transform_3(%arg0: i32) -> (i32, i32, i32) {
    %c0_i32 = arith.constant 0 : i32
    %c0_i32_0 = arith.constant 0 : i32
    %c0_i32_1 = arith.constant 0 : i32
    %c0_i32_2 = arith.constant 0 : i32
    return %c0_i32, %c0_i32_0, %c0_i32_1 : i32, i32, i32
  }
  func.func @transform_4(%arg0: i32) -> (i32, i32, i32) {
    %c0_i32 = arith.constant 0 : i32
    %c0_i32_0 = arith.constant 0 : i32
    %c0_i32_1 = arith.constant 0 : i32
    %c0_i32_2 = arith.constant 0 : i32
    return %c0_i32, %c0_i32_0, %c0_i32_1 : i32, i32, i32
  }
  func.func @transform_5(%arg0: i32) -> (i32, i32, i32) {
    %c0_i32 = arith.constant 0 : i32
    %c0_i32_0 = arith.constant 0 : i32
    %c0_i32_1 = arith.constant 0 : i32
    %c0_i32_2 = arith.constant 0 : i32
    return %c0_i32, %c0_i32_0, %c0_i32_1 : i32, i32, i32
  }
  func.func @transform_6(%arg0: i32) -> (i32, i32, i32) {
    %c0_i32 = arith.constant 0 : i32
    %c0_i32_0 = arith.constant 0 : i32
    %c0_i32_1 = arith.constant 0 : i32
    %c0_i32_2 = arith.constant 0 : i32
    return %c0_i32, %c0_i32_0, %c0_i32_1 : i32, i32, i32
  }
  func.func @transform_7(%arg0: i32) -> (i32, i32, i32) {
    %c0_i32 = arith.constant 0 : i32
    %c0_i32_0 = arith.constant 0 : i32
    %c0_i32_1 = arith.constant 0 : i32
    %c0_i32_2 = arith.constant 0 : i32
    return %c0_i32, %c0_i32_0, %c0_i32_1 : i32, i32, i32
  }
  func.func @transform_8(%arg0: i32) -> (i32, i32, i32) {
    %c0_i32 = arith.constant 0 : i32
    %c0_i32_0 = arith.constant 0 : i32
    %c0_i32_1 = arith.constant 0 : i32
    return %arg0, %c0_i32, %c0_i32_0 : i32, i32, i32
  }
}

</mosaic_0001>

<bundles_post_ra>
// kernel: tpu_custom_call.1
= control target key start
LH: loop header
LB: loop body
LE: loop exit
PB: predicated region body
PF: predicated region fallthrough
CT: control target
= control target key end

     0   :  { %13 = vsyncpa [#allocation3], 0  ;;  %s6902_s0 = inlined_call_operand.vmem [shape: f32[2,8,48], index: 0, kind: input, shape index: {}]   ;;  %s6903_s1 = inlined_call_operand.vmem [shape: f32[5,48,32], index: 1, kind: input, shape index: {}]   ;;  %s6904_s2 = inlined_call_operand.vmem [shape: f32[5,1,32], index: 2, kind: input, shape index: {}]   ;;  %s6905_s3 = inlined_call_operand.vmem [shape: f32[5,1,32], index: 3, kind: input, shape index: {}]   ;;  %s6906_s4 = inlined_call_operand.vmem [shape: f32[5,1,1], index: 4, kind: input, shape index: {}]   ;;  %s6907_s5 = inlined_call_operand.vmem [shape: f32[5,48,8], index: 5, kind: input, shape index: {}]   ;;  %s6908_s6 = inlined_call_operand.vmem [shape: f32[5,48,8], index: 6, kind: input, shape index: {}]   ;;  %s6909_s7 = inlined_call_operand.vmem [shape: f32[5,1,8], index: 7, kind: input, shape index: {}]   ;;  %s6910_s8 = inlined_call_operand.hbm [shape: f32[2,1,4], index: 8, kind: output, shape index: {}]  }
   0x1   :  { %15 = vsyncpa [#allocation3 + $0x1], 0  ;;  %s5758_s27 = smov 0   ;;  %s5760_s28 = smov 0  }
   0x2   :  { %s5762_s29 = smov 0   ;;  %s5764_s30 = smov 0  }
   0x3 LB: > { %s5779_s9 = sadd.s32 4294967295, %s5704_s30   ;;  %s4747_s10 = sadd.s32 4294967294, %s5704_s30   ;;  %s5704_s30 = sphi %s5764_s30, %s6916_s30   ;;  %s5700_s29 = sphi %s5762_s29, %s6915_s29   ;;  %s5696_s28 = sphi %s5760_s28, %s6914_s28   ;;  %s5692_s27 = sphi %s5758_s27, %s6913_s27  }
   0x4   : > { %s5783_s11 = sadd.s32 1, %s5704_s30   ;;  %s201_s12 = sadd.s32 1, %s5700_s29 }
   0x5   : > { %s198_s13 = ssub.s32 %s5704_s30, %s5783_s11  ;;  %p211_p0 = scmp.ne.s32.totalorder %s5700_s29, %s5696_s28 }
   0x6   : > { %p199_p1 = scmp.eq.s32.totalorder %s198_s13, 0  ;;  %p212_p2 = scmp.eq.s32.totalorder %s5779_s9, 1 }
   0x7   : > { %p217_p3 = scmp.ne.s32.totalorder %s5696_s28, %s5692_s27  ;;  %p218_p4 = scmp.eq.s32.totalorder %s4747_s10, 1 }
   0x8   : > { %s5794_s14 = scalar_select %p199_p1, %s5700_s29, %s201_s12  }
   0x9   : > { %p5796_p5 = por %p212_p2, %p211_p0  ;;  %p5800_p6 = por %p218_p4, %p217_p3 }
   0xa   : > { %p4750_p7 = scmp.ge.s32.totalorder %s5704_s30, 1  ;;  %p264_p8 = scmp.lt.s32.totalorder %s5704_s30, 3 }
   0xc   : > { %p265_p9 = pnand %p4750_p7, %p264_p8 }
   0xd   : > { %v413_v0 = vld [vmem:[%s6903_s1] sm:$0xff] (!%p265_p9)  ;;  %v414_v1 = vld [vmem:[%s6903_s1 + $0x8] sm:$0xff] (!%p265_p9)  ;;  %v415_v2 = vld [vmem:[%s6903_s1 + $0x10] sm:$0xff] (!%p265_p9)  ;;  %p296_p10 = scmp.lt.s32.totalorder (!%p265_p9), %s5779_s9, 1  ;;  %v301_v3 = vlaneseq (!%p265_p9)  ;;  %v5706_v6 = vmov (!%p265_p9), 1966171168  }
   0xe   : > { %268 = sbr.rel (%p265_p9) target bundleno = 8053 (0x1f75), region = 52  ;;  %v5371_v4 = vpack.c.bf16 (!%p265_p9), %v414_v1, %v413_v0  ;;  %v416_v5 = vld [vmem:[%s6903_s1 + $0x18] sm:$0xff] (!%p265_p9)  ;;  %v310_v7 = vunpack.c.l.s4 (!%p265_p9), %v5706_v6  ;;  %v417_v9 = vld [vmem:[%s6903_s1 + $0x20] sm:$0xff] (!%p265_p9)  ;;  %v418_v10 = vld [vmem:[%s6903_s1 + $0x28] sm:$0xff] (!%p265_p9)  ;;  %v5707_v13 = vmov (!%p265_p9), 0.0   ;;  %vm426_vm1 = vcmask (!%p265_p9), 392192  }
   0xf   : > { %v5375_v8 = vpack.c.bf16 (!%p265_p9), %v416_v5, %v415_v2  ;;  %v5826_v11 = vshrl.u32 (!%p265_p9), %v301_v3, 7  ;;  %v5828_v12 = vand.u32 (!%p265_p9), 127, %v301_v3  ;;  %5094 = vmatprep.subr.mxu1 (!%p265_p9), %v5707_v13  ;;  %v5379_v17 = vpack.c.bf16 (!%p265_p9), %v418_v10, %v417_v9  ;;  %v4761_v10 = vld [vmem:[%s6905_s3] ss:$0 sm:$0xff] (!%p265_p9)  ;;  %s294_s19 = sand.u32 (!%p265_p9), 1, %s5696_s28   ;;  %s4918_s22 = sshll.u32 (!%p265_p9), %s5779_s9, 4 }
  0x10   : > { %5372 = vmatprep.subr.bf16.mxu0 (!%p265_p9), %v5371_v4  ;;  %v311_v14 = vunpack.c.0.s8 (!%p265_p9), %v310_v7  ;;  %vm595_vm4 = vcmask (!%p265_p9), 261120   ;;  %vm772_vm11 = vcmask (!%p265_p9), 1041409   ;;  %vm774_vm12 = vcmask (!%p265_p9), 1042434   ;;  %s295_s23 = scalar_lea.vmem (!%p265_p9), [#allocation2], %s294_s19  ;;  %s6860_s10 = scalar_lea.hbm (!%p265_p9), %s6910_s8, %s4918_s22 }
  0x11   : > { %5374 = vmatpush3.bf16.msra.mxu0 (!%p265_p9), %v5371_v4  ;;  %v5832_v15 = vsub.s32 (!%p265_p9), 0, %v5826_v11  ;;  %vm305_vm0 = vcmp.eq.s32.totalorder (!%p265_p9), %v5826_v11, %v5828_v12  ;;  %v5837_v16 = vsub.s32 (!%p265_p9), 1, %v5826_v11  ;;  %v5849_v20 = vsub.s32 (!%p265_p9), 2, %v5826_v11  ;;  %v4752_v4 = vld [vmem:[%s6904_s2] ss:$0 sm:$0xff] (!%p265_p9)  ;;  %s4692_s24 = sshll.u32 (!%p265_p9), %s295_s23, 4  ;;  %s6862_s24 = int_to_ptr.vmem [resolvable:$true] %s4692_s24 }
  0x12   : > { %5376 = vmatprep.subr.bf16.mxu0 (!%p265_p9), %v5375_v8  ;;  %v5843_v18 = vsub.s32 (!%p265_p9), %v311_v14, %v5826_v11  ;;  %v5846_v19 = vsel (!%p265_p9), %vm305_vm0, 1e+08, %v5707_v13  ;;  %v5858_v24 = vsub.s32 (!%p265_p9), 4, %v5826_v11  ;;  %v5868_v28 = vsub.s32 (!%p265_p9), 3, %v5826_v11  ;;  %s4680_s12 = scalar_lea.sflag (!%p265_p9), [#allocation3], %s294_s19 }
  0x13   : > { %v646_v22 = vrot.slane (!%p265_p9), %v5846_v19, %v5837_v16  ;;  %v639_v23 = vrot.slane (!%p265_p9), %v5846_v19, %v5832_v15  ;;  %v653_v27 = vrot.slane (!%p265_p9), %v5846_v19, %v5849_v20  ;;  %v5875_v33 = vsub.s32 (!%p265_p9), 5, %v5826_v11 }
  0x14   : > { %v667_v29 = vrot.slane (!%p265_p9), %v5846_v19, %v5858_v24  ;;  %v660_v39 = vrot.slane (!%p265_p9), %v5846_v19, %v5868_v28  ;;  %vm776_vm13 = vcmask (!%p265_p9), 1043459   ;;  %vm778_vm14 = vcmask (!%p265_p9), 1044484  }
  0x15   : > { %s297_s13 = scalar_select %p296_p10, %s5779_s9, 1  ;;  %5378 = vmatpush3.bf16.msra.mxu0 %v5375_v8  ;;  %648 = vbcast.lane.b32.xlu1 %v646_v22, 256  ;;  %v674_v47 = vrot.slane %v5846_v19, %v5875_v33  ;;  %vm780_vm15 = vcmask 1045509   ;;  %vm782_vm0 = vcmask 1046534  }
  0x16   : > { %5380 = vmatprep.subr.bf16.mxu0 %v5379_v17  ;;  %641 = vbcast.lane.b32.xlu0 %v639_v23, 256  ;;  %s5712_s9 = smov [#allocation2]  }
  0x17   : > { %s4751_s17 = sshll.u32 %s297_s13, 3  ;;  %s5642_s13 = scalar_lea.vmem %s6862_s24, 16 }
  0x18   : > { %s299_s20 = scalar_lea.vmem %s6902_s0, %s4751_s17  ;;  %p5643_p11 = scmp.ne.s32.totalorder %s6862_s24, %s5642_s13 }
  0x19   : > { %v5851_v21 = vld [vmem:[%s299_s20] sm:$0xff]  ;;  %5382 = vmatpush3.bf16.msra.mxu0 %v5379_v17  ;;  %655 = vbcast.lane.b32.xlu1 %v653_v27, 256  ;;  %s5646_s17 = sshll.u32 %s5712_s9, 4  ;;  %s5647_s17 = int_to_ptr.vmem [resolvable:$false] %s5646_s17 }
  0x1a   : > { %v315_v25 = vrot.slane %v5851_v21, %v5843_v18  ;;  %v308_v26 = vcombine.high %v5851_v21, %v5851_v21  ;;  %5095 = vmatpush3.msra.mxu1 %v5851_v21  ;;  %669 = vbcast.lane.b32.xlu0 %v667_v29, 256  ;;  %p5644_p12 = pnand %p5643_p11, %p5796_p5  ;;  %s5648_s18 = scalar_lea.vmem %s5647_s17, 32 }
  0x1b   : > { %5158 = vmatprep.subr.mxu0 %v5707_v13  ;;  %p5649_p0 = scmp.lt.s32.totalorder %s6862_s24, %s5647_s17  ;;  %p5650_p1 = scmp.lt.s32.totalorder %s5648_s18, %s5642_s13 }
  0x1c   : > { %v323_v30 = vcombine.high %v315_v25, %v315_v25  ;;  %v331_v31 = vrot.slane %v315_v25, %v5843_v18  ;;  %v322_v32 = vrot.slane %v308_v26, %v5843_v18  ;;  %p5645_p13 = pneg %p5644_p12 }
  0x1d   : > { %662 = vbcast.lane.b32.xlu1 %v660_v39, 256  ;;  %p5651_p2 = por %p5650_p1, %p5649_p0 }
  0x1e   : > { %v353_v34 = vcombine.high %v331_v31, %v331_v31  ;;  %v360_v35 = vrot.slane %v331_v31, %v5832_v15  ;;  %v345_v36 = vrot.slane %v323_v30, %v5843_v18  ;;  %v338_v37 = vrot.slane %v322_v32, %v5843_v18 }
  0x1f   : > { %v324_v38 = vcombine.high %v322_v32, %v322_v32  ;;  %p5652_p3 = pnand %p5651_p2, %p5645_p13 }
  0x20   : > { %v397_v40 = vsub.f32 %v360_v35, %v5851_v21  ;;  %v364_v41 = vrot.slane %v345_v36, %v5832_v15  ;;  %v368_v42 = vrot.slane %v353_v34, %v5832_v15  ;;  %v355_v43 = vcombine.high %v345_v36, %v345_v36 }
  0x21   : > { %v376_v44 = vrot.slane %v338_v37, %v5832_v15  ;;  %v352_v45 = vrot.slane %v324_v38, %v5843_v18  ;;  %v354_v46 = vcombine.high %v338_v37, %v338_v37  ;;  %676 = vbcast.lane.b32.xlu1 %v674_v47, 256 }
  0x22   : > { %v405_v48 = vand.u32 2147483647, %v397_v40  ;;  %v398_v49 = vsub.f32 %v364_v41, %v5851_v21  ;;  %v399_v50 = vsub.f32 %v368_v42, %v5851_v21  ;;  %v372_v51 = vrot.slane %v355_v43, %v5832_v15 }
  0x23   : > { %v401_v52 = vsub.f32 %v376_v44, %v5851_v21  ;;  %v380_v53 = vrot.slane %v352_v45, %v5832_v15  ;;  %v384_v54 = vrot.slane %v354_v46, %v5832_v15  ;;  %v356_v55 = vcombine.high %v352_v45, %v352_v45 }
  0x24   : > { %5082 = vmatprep.mubr.msk.f32.mxu0 %vm426_vm1, %v405_v48  ;;  %v406_v56 = vand.u32 2147483647, %v398_v49  ;;  %v407_v57 = vand.u32 2147483647, %v399_v50  ;;  %v400_v58 = vsub.f32 %v372_v51, %v5851_v21 }
  0x25   : > { %v402_v60 = vsub.f32 %v380_v53, %v5851_v21  ;;  %v388_v61 = vrot.slane %v356_v55, %v5832_v15  ;;  %v409_v62 = vand.u32 2147483647, %v401_v52  ;;  %v403_v63 = vsub.f32 %v384_v54, %v5851_v21 }
  0x26   : > { %5083 = vmatmul.mubr.msk.f32.vlgmr.msra.gmra.mrb[0].mxu0 %vm426_vm1, %v406_v56  ;;  %v408_v59 = vand.u32 2147483647, %v400_v58 }
  0x27   : > { %5085 = vmatprep.mubr.msk.f32.mxu0 %vm426_vm1, %v407_v57  ;;  %v410_v0 = vand.u32 2147483647, %v402_v60  ;;  %v404_v1 = vsub.f32 %v388_v61, %v5851_v21  ;;  %v411_v2 = vand.u32 2147483647, %v403_v63 }
  0x29   : > { %v412_v3 = vand.u32 2147483647, %v404_v1 }
  0x2a   : > { %5086 = vmatmul.mubr.msk.f32.gmra.mrb[2].mxu0 %vm426_vm1, %v408_v59 }
  0x2b   : > { %5088 = vmatprep.mubr.msk.f32.mxu0 %vm426_vm1, %v409_v62 }
  0x2e   : > { %5089 = vmatmul.mubr.msk.f32.gmra.mrb[4].mxu0 %vm426_vm1, %v410_v0 }
  0x2f   : > { %5091 = vmatprep.mubr.msk.f32.mxu0 %vm426_vm1, %v411_v2  ;;  %v5708_v2 = vmov 0  }
  0x30   : > { %5563 = vset.pattern.permute.xlu1 %v5708_v2  ;;  %5564 = vset.pattern.permute.xlu0 %v5708_v2 }
  0x32   : > { %5092 = vmatmul.mubr.msk.f32.gmra.mrb[6].mxu0 %vm426_vm1, %v412_v3  ;;  %v5924_v3 = vsub.s32 7, %v5826_v11 }
  0xf9   : > { %v5084_v5 = vpop.f32.mrb[0].mxu0 }
  0xfa   : > { %v523_v6 = vadd.f32 %v5084_v5, %v4752_v4  ;;  %v517_v7 = vpop.f32.mrb[1].mxu0  ;;  %v688_v5 = vrot.slane %v5846_v19, %v5924_v3 }
  0xfb   : > { %v518_v8 = vadd.f32 %v4752_v4, %v517_v7  ;;  %v5933_v7 = vpop.permute.xlu1 %648 }
  0xfc   : > { %vm557_vm2 = vcmp.gt.f32.partialorder %v523_v6, 0.0  ;;  %v565_v9 = vmul.f32 0.01, %v523_v6 }
  0xfd   : > { %vm556_vm3 = vcmp.gt.f32.partialorder %v518_v8, 0.0  ;;  %v564_v14 = vmul.f32 0.01, %v518_v8  ;;  %v5087_v17 = vpop.f32.mrb[2].mxu0 }
  0xfe   : > { %v533_v22 = vadd.f32 %v5087_v17, %v4752_v4  ;;  %v527_v23 = vpop.f32.mrb[3].mxu0  ;;  %v573_v25 = vsel %vm557_vm2, %v523_v6, %v565_v9  ;;  %v5937_v9 = vpop.permute.xlu0 %641  ;;  %v4762_v17 = vld [vmem:[%s6906_s4] ss:$0 sm:$0xff]  ;;  %vm784_vm2 = vcmask 1047559  }
  0xff   : > { %v528_v26 = vadd.f32 %v4752_v4, %v527_v23  ;;  %v588_v27 = vmul.f32 %v4761_v10, %v573_v25  ;;  %v572_v29 = vsel %vm556_vm3, %v518_v8, %v564_v14  ;;  %v5935_v8 = vpop.permute.xlu1 %655  ;;  %vm787_vm3 = vcmask 64512  }
 0x100   : > { %vm559_vm5 = vcmp.gt.f32.partialorder %v533_v22, 0.0  ;;  %v567_v30 = vmul.f32 0.01, %v533_v22  ;;  %v587_v31 = vmul.f32 %v4761_v10, %v572_v29 }
 0x101   : > { %vm558_vm6 = vcmp.gt.f32.partialorder %v528_v26, 0.0  ;;  %v566_v32 = vmul.f32 0.01, %v528_v26  ;;  %v5090_v34 = vpop.f32.mrb[4].mxu0  ;;  %v599_v35 = vsel %vm595_vm4, %v588_v27, 0.0 }
 0x102   : > { %v543_v36 = vadd.f32 %v5090_v34, %v4752_v4  ;;  %600 = vadd.xlane.f32.xlu0 %v599_v35  ;;  %v537_v37 = vpop.f32.mrb[5].mxu0  ;;  %v575_v38 = vsel %vm559_vm5, %v533_v22, %v567_v30  ;;  %v596_v43 = vsel %vm595_vm4, %v587_v31, 0.0  ;;  %v5941_v14 = vpop.permute.xlu0 %669  ;;  %vm5709_vm5 = vmmov 0  }
 0x103   : > { %v538_v39 = vadd.f32 %v4752_v4, %v537_v37  ;;  %v590_v40 = vmul.f32 %v4761_v10, %v575_v38  ;;  %v574_v41 = vsel %vm558_vm6, %v528_v26, %v566_v32  ;;  %5096 = vmatprep.mubr.msk.f32.mxu1 %vm5709_vm5, %v5707_v13  ;;  %5160 = vmatprep.mubr.msk.f32.mxu0 %vm5709_vm5, %v5707_v13 }
 0x104   : > { %vm561_vm7 = vcmp.gt.f32.partialorder %v543_v36, 0.0  ;;  %v569_v42 = vmul.f32 0.01, %v543_v36  ;;  %v589_v47 = vmul.f32 %v4761_v10, %v574_v41 }
 0x105   : > { %vm560_vm8 = vcmp.gt.f32.partialorder %v538_v39, 0.0  ;;  %v568_v44 = vmul.f32 0.01, %v538_v39  ;;  %v5093_v45 = vpop.f32.mrb[6].mxu0  ;;  %v605_v46 = vsel %vm595_vm4, %v590_v40, 0.0 }
 0x106   : > { %v553_v48 = vadd.f32 %v5093_v45, %v4752_v4  ;;  %597 = vadd.xlane.f32.xlu0 %v596_v43  ;;  %606 = vadd.xlane.f32.xlu1 %v605_v46  ;;  %v547_v49 = vpop.f32.mrb[7].mxu0  ;;  %v577_v50 = vsel %vm561_vm7, %v543_v36, %v569_v42  ;;  %v602_v56 = vsel %vm595_vm4, %v589_v47, 0.0 }
 0x107   : > { %v548_v51 = vadd.f32 %v4752_v4, %v547_v49  ;;  %v576_v52 = vsel %vm560_vm8, %v538_v39, %v568_v44  ;;  %v592_v57 = vmul.f32 %v4761_v10, %v577_v50  ;;  %v5927_v4 = vsub.s32 6, %v5826_v11 }
 0x108   : > { %vm563_vm9 = vcmp.gt.f32.partialorder %v553_v48, 0.0  ;;  %v571_v53 = vmul.f32 0.01, %v553_v48  ;;  %v591_v54 = vmul.f32 %v4761_v10, %v576_v52 }
 0x109   : > { %vm562_vm10 = vcmp.gt.f32.partialorder %v548_v51, 0.0  ;;  %v570_v55 = vmul.f32 0.01, %v548_v51  ;;  %v611_v62 = vsel %vm595_vm4, %v592_v57, 0.0  ;;  %v681_v6 = vrot.slane %v5846_v19, %v5927_v4 }
 0x10a   : > { %603 = vadd.xlane.f32.xlu1 %v602_v56  ;;  %v608_v58 = vsel %vm595_vm4, %v591_v54, 0.0  ;;  %v579_v59 = vsel %vm563_vm9, %v553_v48, %v571_v53 }
 0x10b   : > { %609 = vadd.xlane.f32.xlu0 %v608_v58  ;;  %v578_v60 = vsel %vm562_vm10, %v548_v51, %v570_v55  ;;  %v594_v63 = vmul.f32 %v4761_v10, %v579_v59  ;;  %v5986_v51 = vsub.s32 %v5828_v12, %v5826_v11 }
 0x10c   : > { %v593_v61 = vmul.f32 %v4761_v10, %v578_v60  ;;  %v5939_v10 = vpop.permute.xlu1 %662 }
 0x10d   : > { %v617_v1 = vsel %vm595_vm4, %v594_v63, 0.0 }
 0x10e   : > { %612 = vadd.xlane.f32.xlu1 %v611_v62  ;;  %v614_v0 = vsel %vm595_vm4, %v593_v61, 0.0 }
 0x10f   : > { %615 = vadd.xlane.f32.xlu0 %v614_v0 }
 0x110   : > { %v5946_v22 = vpop.permute.xlu1 %676 }
 0x112   : > { %618 = vadd.xlane.f32.xlu1 %v617_v1 }
 0x123   : > { %690 = vbcast.lane.b32.xlu1 %v688_v5, 256 }
 0x125   : > { %683 = vbcast.lane.b32.xlu0 %v681_v6, 256 }
 0x18f   : > { %v601_v23 = vpop.xlane.xlu0 %600 }
 0x190   : > { %v628_v19 = vadd.f32 %v4762_v17, %v601_v23 }
 0x192   : > { %v5949_v25 = vsub.f32 %v628_v19, %v5933_v7 }
 0x193   : > { %v598_v26 = vpop.xlane.xlu0 %597  ;;  %v607_v27 = vpop.xlane.xlu1 %606 }
 0x194   : > { %v627_v29 = vadd.f32 %v4762_v17, %v598_v26  ;;  %720 = vperm.xlu1 %5563, %v5949_v25   ;;  %v630_v31 = vadd.f32 %v4762_v17, %v607_v27 }
 0x196   : > { %v5953_v30 = vsub.f32 %v627_v29, %v5937_v9  ;;  %v5957_v36 = vsub.f32 %v630_v31, %v5939_v10 }
 0x197   : > { %v604_v32 = vpop.xlane.xlu1 %603 }
 0x198   : > { %v629_v34 = vadd.f32 %v4762_v17, %v604_v32  ;;  %v610_v35 = vpop.xlane.xlu0 %609  ;;  %717 = vperm.xlu0 %5564, %v5953_v30  }
 0x199   : > { %v631_v38 = vadd.f32 %v4762_v17, %v610_v35 }
 0x19a   : > { %v5960_v37 = vsub.f32 %v629_v34, %v5935_v8 }
 0x19b   : > { %v613_v39 = vpop.xlane.xlu1 %612  ;;  %v5965_v42 = vsub.f32 %v631_v38, %v5941_v14 }
 0x19c   : > { %v632_v40 = vadd.f32 %v4762_v17, %v613_v39  ;;  %723 = vperm.xlu1 %5563, %v5960_v37   ;;  %726 = vperm.xlu0 %5564, %v5957_v36   ;;  %v616_v41 = vpop.xlane.xlu0 %615 }
 0x19d   : > { %v633_v44 = vadd.f32 %v4762_v17, %v616_v41 }
 0x19e   : > { %v5968_v43 = vsub.f32 %v632_v40, %v5946_v22 }
 0x19f   : > { %v619_v45 = vpop.xlane.xlu1 %618 }
 0x1a0   : > { %729 = vperm.xlu1 %5563, %v5965_v42   ;;  %732 = vperm.xlu0 %5564, %v5968_v43   ;;  %v5972_v46 = vpop.permute.xlu0 %683  ;;  %v634_v48 = vadd.f32 %v4762_v17, %v619_v45 }
 0x1a1   : > { %v5975_v47 = vsub.f32 %v633_v44, %v5972_v46 }
 0x1a3   : > { %v5977_v49 = vpop.permute.xlu1 %690 }
 0x1a4   : > { %735 = vperm.xlu1 %5563, %v5975_v47   ;;  %v5981_v50 = vsub.f32 %v634_v48, %v5977_v49 }
 0x1a6   : > { %738 = vperm.xlu0 %5564, %v5981_v50  }
 0x213   : > { %v721_v52 = vpop.permute.xlu1 %720 }
 0x214   : > { %v747_v55 = vrot.slane %v721_v52, %v5986_v51 }
 0x217   : > { %v718_v53 = vpop.permute.xlu0 %717 }
 0x218   : > { %v743_v54 = vrot.slane %v718_v53, %v5986_v51 }
 0x21a   : > { %v773_v59 = vsel %vm772_vm11, %v747_v55, %v743_v54 }
 0x21b   : > { %v724_v56 = vpop.permute.xlu1 %723  ;;  %v727_v57 = vpop.permute.xlu0 %726 }
 0x21c   : > { %v751_v58 = vrot.slane %v724_v56, %v5986_v51  ;;  %v755_v60 = vrot.slane %v727_v57, %v5986_v51 }
 0x21e   : > { %v775_v61 = vsel %vm774_vm12, %v751_v58, %v773_v59 }
 0x21f   : > { %v730_v62 = vpop.permute.xlu1 %729  ;;  %v733_v63 = vpop.permute.xlu0 %732  ;;  %v777_v1 = vsel %vm776_vm13, %v755_v60, %v775_v61 }
 0x220   : > { %v759_v0 = vrot.slane %v730_v62, %v5986_v51  ;;  %v763_v2 = vrot.slane %v733_v63, %v5986_v51 }
 0x222   : > { %v779_v5 = vsel %vm778_vm14, %v759_v0, %v777_v1 }
 0x223   : > { %v736_v6 = vpop.permute.xlu1 %735  ;;  %v781_v19 = vsel %vm780_vm15, %v763_v2, %v779_v5 }
 0x224   : > { %v767_v17 = vrot.slane %v736_v6, %v5986_v51 }
 0x225   : > { %v739_v23 = vpop.permute.xlu0 %738 }
 0x226   : > { %v771_v26 = vrot.slane %v739_v23, %v5986_v51  ;;  %v783_v27 = vsel %vm782_vm0, %v767_v17, %v781_v19 }
 0x228   : > { %v785_v29 = vsel %vm784_vm2, %v771_v26, %v783_v27 }
 0x229   : > { %v788_v31 = vsel %vm787_vm3, %v785_v29, -inf }
 0x22a   : > { %789 = vmax.xlane.f32.xlu1 %v788_v31 }
 0x2b7   : > { %v790_v32 = vpop.xlane.xlu1 %789 }
 0x2b8   : > { %v795_v34 = vrot.slane %v790_v32, %v5832_v15  ;;  %v799_v35 = vrot.slane %v790_v32, %v5837_v16  ;;  %v803_v38 = vrot.slane %v790_v32, %v5849_v20  ;;  %v807_v44 = vrot.slane %v790_v32, %v5868_v28 }
 0x2b9   : > { %v811_v52 = vrot.slane %v790_v32, %v5858_v24  ;;  %v815_v55 = vrot.slane %v790_v32, %v5875_v33  ;;  %v819_v57 = vrot.slane %v790_v32, %v5927_v4  ;;  %v823_v60 = vrot.slane %v790_v32, %v5924_v3 }
 0x2ba   : > { %v832_v39 = vsub.f32 %v5953_v30, %v795_v34  ;;  %v833_v40 = vsub.f32 %v5949_v25, %v799_v35  ;;  %v834_v48 = vsub.f32 %v5960_v37, %v803_v38  ;;  %v835_v54 = vsub.f32 %v5957_v36, %v807_v44 }
 0x2bb   : > { %v836_v30 = vsub.f32 %v5965_v42, %v811_v52  ;;  %v837_v37 = vsub.f32 %v5968_v43, %v815_v55  ;;  %v838_v61 = vsub.f32 %v5975_v47, %v819_v57  ;;  %v839_v63 = vsub.f32 %v5981_v50, %v823_v60 }
 0x2bc   : > { %v840_v41 = vmul.f32 1.442695, %v832_v39  ;;  %v842_v45 = vmul.f32 1.442695, %v833_v40  ;;  %v844_v53 = vmul.f32 1.442695, %v834_v48 }
 0x2bd   : > { %v846_v56 = vmul.f32 1.442695, %v835_v54  ;;  %v848_v58 = vmul.f32 1.442695, %v836_v30  ;;  %v850_v36 = vmul.f32 1.442695, %v837_v37 }
 0x2be   : > { %5566 = vpow2.f32 %v840_v41  ;;  %v852_v42 = vmul.f32 1.442695, %v838_v61  ;;  %v854_v1 = vmul.f32 1.442695, %v839_v63 }
 0x2bf   : > { %5568 = vpow2.f32 %v842_v45 }
 0x2c0   : > { %5570 = vpow2.f32 %v844_v53 }
 0x2c1   : > { %5572 = vpow2.f32 %v846_v56 }
 0x2c2   : > { %5574 = vpow2.f32 %v848_v58 }
 0x2c3   : > { %5576 = vpow2.f32 %v850_v36 }
 0x2c4   : > { %5578 = vpow2.f32 %v852_v42 }
 0x2c5   : > { %5580 = vpow2.f32 %v854_v1 }
 0x2c8   : > { %v5567_v25 = vpop.eup %5566 }
 0x2c9   : > { %865 = vperm.xlu0 %5564, %v5567_v25   ;;  %v5569_v59 = vpop.eup %5568 }
 0x2ca   : > { %v5571_v62 = vpop.eup %5570 }
 0x2cb   : > { %v5573_v0 = vpop.eup %5572 }
 0x2cc   : > { %v5575_v2 = vpop.eup %5574 }
 0x2cd   : > { %868 = vperm.xlu0 %5564, %v5569_v59   ;;  %v5577_v43 = vpop.eup %5576 }
 0x2ce   : > { %v5579_v5 = vpop.eup %5578 }
 0x2cf   : > { %v5581_v6 = vpop.eup %5580 }
 0x2d1   : > { %871 = vperm.xlu0 %5564, %v5571_v62  }
 0x2d5   : > { %874 = vperm.xlu0 %5564, %v5573_v0  }
 0x2d9   : > { %877 = vperm.xlu0 %5564, %v5575_v2  }
 0x2dd   : > { %880 = vperm.xlu0 %5564, %v5577_v43  }
 0x2e1   : > { %883 = vperm.xlu0 %5564, %v5579_v5  }
 0x2e5   : > { %886 = vperm.xlu0 %5564, %v5581_v6  }
 0x348   : > { %v866_v47 = vpop.permute.xlu0 %865 }
 0x349   : > { %v891_v31 = vrot.slane %v866_v47, %v5986_v51 }
 0x34c   : > { %v869_v17 = vpop.permute.xlu0 %868 }
 0x34d   : > { %v895_v50 = vrot.slane %v869_v17, %v5986_v51 }
 0x34f   : > { %v920_v38 = vsel %vm772_vm11, %v895_v50, %v891_v31 }
 0x350   : > { %v872_v23 = vpop.permute.xlu0 %871 }
 0x351   : > { %v899_v29 = vrot.slane %v872_v23, %v5986_v51 }
 0x353   : > { %v921_v40 = vsel %vm774_vm12, %v899_v29, %v920_v38 }
 0x354   : > { %v875_v19 = vpop.permute.xlu0 %874 }
 0x355   : > { %v903_v32 = vrot.slane %v875_v19, %v5986_v51 }
 0x357   : > { %v922_v44 = vsel %vm776_vm13, %v903_v32, %v921_v40 }
 0x358   : > { %v878_v26 = vpop.permute.xlu0 %877 }
 0x359   : > { %v907_v34 = vrot.slane %v878_v26, %v5986_v51 }
 0x35b   : > { %v923_v45 = vsel %vm778_vm14, %v907_v34, %v922_v44 }
 0x35c   : > { %v881_v27 = vpop.permute.xlu0 %880 }
 0x35d   : > { %v911_v39 = vrot.slane %v881_v27, %v5986_v51 }
 0x35f   : > { %v924_v53 = vsel %vm780_vm15, %v911_v39, %v923_v45 }
 0x360   : > { %v884_v35 = vpop.permute.xlu0 %883 }
 0x361   : > { %v915_v41 = vrot.slane %v884_v35, %v5986_v51 }
 0x363   : > { %v925_v54 = vsel %vm782_vm0, %v915_v41, %v924_v53 }
 0x364   : > { %v887_v48 = vpop.permute.xlu0 %886 }
 0x365   : > { %v919_v52 = vrot.slane %v887_v48, %v5986_v51  ;;  %v1130_v48 = vld [vmem:[%s6908_s6] sm:$0xff] }
 0x367   : > { %v926_v55 = vsel %vm784_vm2, %v919_v52, %v925_v54  ;;  %v1131_v52 = vld [vmem:[%s6908_s6 + $0x8] sm:$0xff] }
 0x368   : > { %v928_v56 = vsel %vm787_vm3, %v926_v55, 0.0 }
 0x369   : > { %929 = vadd.xlane.f32.xlu0 %v928_v56 }
 0x3f6   : > { %v930_v30 = vpop.xlane.xlu0 %929 }
 0x3f7   : > { %5582 = vrcp.f32 %v930_v30  ;;  %v5384_v30 = vpack.c.bf16 %v1131_v52, %v1130_v48  ;;  %v4773_v48 = vld [vmem:[%s6903_s1 + $0x48] sm:$0xff]  ;;  %v4774_v52 = vld [vmem:[%s6903_s1 + $0x50] sm:$0xff] }
 0x401   : > { %v5583_v57 = vpop.eup %5582 }
 0x402   : > { %v952_v58 = vrot.slane %v5583_v57, %v5858_v24  ;;  %v936_v37 = vrot.slane %v5583_v57, %v5832_v15  ;;  %v940_v61 = vrot.slane %v5583_v57, %v5837_v16  ;;  %v944_v63 = vrot.slane %v5583_v57, %v5849_v20 }
 0x403   : > { %v948_v47 = vrot.slane %v5583_v57, %v5868_v28  ;;  %v956_v23 = vrot.slane %v5583_v57, %v5875_v33  ;;  %v964_v26 = vrot.slane %v5583_v57, %v5924_v3 }
 0x404   : > { %v977_v60 = vmul.f32 %v5575_v2, %v952_v58  ;;  %v973_v36 = vmul.f32 %v5567_v25, %v936_v37  ;;  %v974_v42 = vmul.f32 %v5569_v59, %v940_v61  ;;  %v975_v1 = vmul.f32 %v5571_v62, %v944_v63  ;;  %v1132_v58 = vld [vmem:[%s6908_s6 + $0x10] sm:$0xff]  ;;  %v1133_v37 = vld [vmem:[%s6908_s6 + $0x18] sm:$0xff]  ;;  %v1134_v61 = vld [vmem:[%s6908_s6 + $0x20] sm:$0xff] }
 0x405   : > { %v976_v17 = vmul.f32 %v5573_v0, %v948_v47  ;;  %v978_v19 = vmul.f32 %v5577_v43, %v956_v23  ;;  %v960_v2 = vrot.slane %v5583_v57, %v5927_v4  ;;  %v980_v59 = vmul.f32 %v5581_v6, %v964_v26  ;;  %v1125_v47 = vld [vmem:[%s6907_s5 + $0x8] sm:$0xff]  ;;  %v1126_v23 = vld [vmem:[%s6907_s5 + $0x10] sm:$0xff] }
 0x406   : > { %1002 = vperm.xlu0 %5564, %v977_v60   ;;  %990 = vperm.xlu1 %5563, %v973_v36   ;;  %v5710_v62 = vmov 0.0|0.0   ;;  %v5387_v36 = vpack.c.bf16 %v1133_v37, %v1132_v58 }
 0x407   : > { %v979_v25 = vmul.f32 %v5579_v5, %v960_v2  ;;  %5383 = vmatprep.subr.bf16.mxu1 %v5710_v62 }
 0x40a   : > { %993 = vperm.xlu1 %5563, %v974_v42   ;;  %v1135_v42 = vld [vmem:[%s6908_s6 + $0x28] sm:$0xff] }
 0x40b   : > { %v5390_v63 = vpack.c.bf16 %v1135_v42, %v1134_v61 }
 0x40e   : > { %996 = vperm.xlu1 %5563, %v975_v1   ;;  %v1124_v1 = vld [vmem:[%s6907_s5] sm:$0xff] }
 0x412   : > { %999 = vperm.xlu1 %5563, %v976_v17   ;;  %v5393_v17 = vpack.c.bf16 %v1125_v47, %v1124_v1 }
 0x416   : > { %1005 = vperm.xlu1 %5563, %v978_v19   ;;  %v1127_v19 = vld [vmem:[%s6907_s5 + $0x18] sm:$0xff] }
 0x417   : > { %v5396_v26 = vpack.c.bf16 %v1127_v19, %v1126_v23 }
 0x41a   : > { %1008 = vperm.xlu1 %5563, %v979_v25  }
 0x41e   : > { %1011 = vperm.xlu1 %5563, %v980_v59   ;;  %v1128_v59 = vld [vmem:[%s6907_s5 + $0x20] sm:$0xff] }
 0x485   : > { %v991_v0 = vpop.permute.xlu1 %990  ;;  %v1003_v34 = vpop.permute.xlu0 %1002 }
 0x486   : > { %v1016_v31 = vrot.slane %v991_v0, %v5986_v51  ;;  %v1032_v44 = vrot.slane %v1003_v34, %v5986_v51  ;;  %v1129_v0 = vld [vmem:[%s6907_s5 + $0x28] sm:$0xff] }
 0x489   : > { %v994_v43 = vpop.permute.xlu1 %993 }
 0x48a   : > { %v1020_v5 = vrot.slane %v994_v43, %v5986_v51  ;;  %v5399_v43 = vpack.c.bf16 %v1129_v0, %v1128_v59 }
 0x48c   : > { %v1045_v35 = vsel %vm772_vm11, %v1020_v5, %v1016_v31  ;;  %v4766_v31 = vld [vmem:[%s6909_s7] ss:$0 sm:$0xff] }
 0x48d   : > { %v997_v27 = vpop.permute.xlu1 %996 }
 0x48e   : > { %v1024_v29 = vrot.slane %v997_v27, %v5986_v51  ;;  %v1292_v27 = vadd.s32 16, %v5826_v11 }
 0x490   : > { %v1046_v38 = vsel %vm774_vm12, %v1024_v29, %v1045_v35  ;;  %vm1293_vm6 = vcmp.eq.s32.totalorder %v5828_v12, %v1292_v27 }
 0x491   : > { %v1000_v50 = vpop.permute.xlu1 %999 }
 0x492   : > { %v1028_v32 = vrot.slane %v1000_v50, %v5986_v51  ;;  %v5711_v50 = vmov 1.0  }
 0x494   : > { %v1047_v40 = vsel %vm776_vm13, %v1028_v32, %v1046_v38 }
 0x495   : > { %v1006_v6 = vpop.permute.xlu1 %1005  ;;  %v1048_v53 = vsel %vm778_vm14, %v1032_v44, %v1047_v40  ;;  %v4770_v40 = vld [vmem:[%s6903_s1 + $0x30] sm:$0xff] }
 0x496   : > { %v1036_v41 = vrot.slane %v1006_v6, %v5986_v51 }
 0x498   : > { %v1049_v55 = vsel %vm780_vm15, %v1036_v41, %v1048_v53  ;;  %v4771_v41 = vld [vmem:[%s6903_s1 + $0x38] sm:$0xff] }
 0x499   : > { %v1009_v39 = vpop.permute.xlu1 %1008  ;;  %v5401_v44 = vpack.c.bf16 %v4771_v41, %v4770_v40  ;;  %v4794_v40 = vld [vmem:[%s6907_s5 + $0x48] sm:$0xff] }
 0x49a   : > { %v1040_v45 = vrot.slane %v1009_v39, %v5986_v51 }
 0x49c   : > { %v1050_v57 = vsel %vm782_vm0, %v1040_v45, %v1049_v55  ;;  %v4772_v45 = vld [vmem:[%s6903_s1 + $0x40] sm:$0xff] }
 0x49d   : > { %v1012_v54 = vpop.permute.xlu1 %1011  ;;  %v5405_v53 = vpack.c.bf16 %v4773_v48, %v4772_v45 }
 0x49e   : > { %v1044_v56 = vrot.slane %v1012_v54, %v5986_v51  ;;  %v4775_v54 = vld [vmem:[%s6903_s1 + $0x58] sm:$0xff] }
 0x49f   : > { %v5409_v55 = vpack.c.bf16 %v4775_v54, %v4774_v52 }
 0x4a0   : > { %v1051_v60 = vsel %vm784_vm2, %v1044_v56, %v1050_v57 }
 0x4a1   : > { %5097 = vmatmul.mubr.msk.f32.vlgmr.msra.gmra.mrb[0].mxu1 %vm787_vm3, %v1051_v60 }
 0x4a2   : > { %5385 = vmatpush3.bf16.msra.mxu1 %v5384_v30  ;;  %5111 = vmatprep.mubr.msk.f32.mxu1 %vm5709_vm5, %v5707_v13 }
 0x4a3   : > { %5386 = vmatprep.subr.bf16.mxu1 %v5710_v62 }
 0x4a6   : > { %5388 = vmatpush3.bf16.msra.mxu1 %v5387_v36 }
 0x4a7   : > { %5389 = vmatprep.subr.bf16.mxu1 %v5710_v62 }
 0x4aa   : > { %5391 = vmatpush3.bf16.msra.mxu1 %v5390_v63 }
 0x4ab   : > { %5392 = vmatprep.subr.bf16.mxu1 %v5710_v62 }
 0x574   : > { %v1120_v2 = vpop.f32.mrb[0].mxu1 }
 0x575   : > { %v5098_v25 = vpop.f32.mrb[1].mxu1  ;;  %5112 = vmatmul.mubr.msk.f32.vlgmr.msra.gmra.mrb[2].mxu1 %vm426_vm1, %v1120_v2 }
 0x576   : > { %5394 = vmatpush3.bf16.msra.mxu1 %v5393_v17  ;;  %5126 = vmatprep.mubr.msk.f32.mxu1 %vm5709_vm5, %v5707_v13  ;;  %v4791_v25 = vld [vmem:[%s6907_s5 + $0x30] sm:$0xff] }
 0x577   : > { %5395 = vmatprep.subr.bf16.mxu1 %v5710_v62 }
 0x57a   : > { %5397 = vmatpush3.bf16.msra.mxu1 %v5396_v26  ;;  %v4792_v26 = vld [vmem:[%s6907_s5 + $0x38] sm:$0xff] }
 0x57b   : > { %5398 = vmatprep.subr.bf16.mxu1 %v5710_v62 }
 0x57e   : > { %5400 = vmatpush3.bf16.msra.mxu1 %v5399_v43 }
 0x57f   : > { %5129 = vmatprep.subr.mxu1 %v5707_v13 }
 0x581   : > { %5127 = vmatmul.mubr.msk.f32.vlgmr.msra.gmra.mrb[4].mxu1 %vm426_vm1, %v5851_v21 }
 0x582   : > { %5131 = vmatprep.mubr.msk.f32.mxu1 %vm5709_vm5, %v5707_v13  ;;  %5130 = vmatpush3.msk.msra.mxu1 %vm1293_vm6, %v5711_v50 }
 0x583   : > { %5402 = vmatprep.subr.bf16.mxu1 %v5401_v44 }
 0x648   : > { %v1205_v5 = vpop.f32.mrb[2].mxu1 }
 0x649   : > { %v5113_v29 = vpop.f32.mrb[3].mxu1 }
 0x654   : > { %v1277_v6 = vpop.f32.mrb[4].mxu1 }
 0x655   : > { %v1278_v32 = vadd.f32 %v1277_v6, %v1205_v5  ;;  %v5128_v34 = vpop.f32.mrb[5].mxu1 }
 0x657   : > { %v1288_v35 = vadd.f32 %v4766_v31, %v1278_v32  ;;  %v5423_v31 = vpack.c.bf16 %v4792_v26, %v4791_v25 }
 0x659   : > { %vm1289_vm7 = vcmp.gt.f32.partialorder %v1288_v35, 0.0  ;;  %v1290_v38 = vmul.f32 0.01, %v1288_v35 }
 0x65b   : > { %v1291_v39 = vsel %vm1289_vm7, %v1288_v35, %v1290_v38 }
 0x65c   : > { %5132 = vmatmul.mubr.msk.f32.vlgmr.msra.gmra.mrb[6].mxu1 %vm787_vm3, %v1291_v39  ;;  %v4793_v39 = vld [vmem:[%s6907_s5 + $0x40] sm:$0xff] }
 0x65d   : > { %5404 = vmatpush3.bf16.msra.mxu1 %v5401_v44  ;;  %v5426_v48 = vpack.c.bf16 %v4794_v40, %v4793_v39 }
 0x65e   : > { %5406 = vmatprep.subr.bf16.mxu1 %v5405_v53 }
 0x661   : > { %5408 = vmatpush3.bf16.msra.mxu1 %v5405_v53 }
 0x662   : > { %5410 = vmatprep.subr.bf16.mxu1 %v5409_v55 }
 0x665   : > { %5412 = vmatpush3.bf16.msra.mxu1 %v5409_v55  ;;  %v4795_v55 = vld [vmem:[%s6907_s5 + $0x50] sm:$0xff] }
 0x666   : > { %5422 = vmatprep.subr.bf16.mxu1 %v5710_v62 }
 0x72f   : > { %v1367_v56 = vpop.f32.mrb[6].mxu1 }
 0x730   : > { %v6143_v30 = vadd.f32 %v1367_v56, %v5851_v21  ;;  %v5133_v57 = vpop.f32.mrb[7].mxu1  ;;  %v4796_v56 = vld [vmem:[%s6907_s5 + $0x58] sm:$0xff] }
 0x732   : > { %5159 = vmatpush3.msra.mxu0 %v6143_v30  ;;  %v1380_v58 = vrot.slane %v6143_v30, %v5843_v18  ;;  %v1373_v37 = vcombine.high %v6143_v30, %v6143_v30 }
 0x733   : > { %5413 = vmatprep.subr.bf16.mxu0 %v5710_v62 }
 0x734   : > { %v1388_v60 = vcombine.high %v1380_v58, %v1380_v58  ;;  %v1396_v36 = vrot.slane %v1380_v58, %v5843_v18  ;;  %v1387_v61 = vrot.slane %v1373_v37, %v5843_v18  ;;  %v5429_v37 = vpack.c.bf16 %v4796_v56, %v4795_v55 }
 0x736   : > { %v1425_v42 = vrot.slane %v1396_v36, %v5832_v15  ;;  %v1410_v21 = vrot.slane %v1388_v60, %v5843_v18  ;;  %v1418_v63 = vcombine.high %v1396_v36, %v1396_v36  ;;  %v1403_v1 = vrot.slane %v1387_v61, %v5843_v18 }
 0x737   : > { %v1389_v47 = vcombine.high %v1387_v61, %v1387_v61 }
 0x738   : > { %v1462_v17 = vsub.f32 %v1425_v42, %v6143_v30  ;;  %v1429_v23 = vrot.slane %v1410_v21, %v5832_v15  ;;  %v1433_v19 = vrot.slane %v1418_v63, %v5832_v15  ;;  %v1420_v2 = vcombine.high %v1410_v21, %v1410_v21  ;;  %v4777_v21 = vld [vmem:[%s6904_s2 + $0x1] ss:$0 sm:$0xff] }
 0x739   : > { %v1441_v59 = vrot.slane %v1403_v1, %v5832_v15  ;;  %v1417_v0 = vrot.slane %v1389_v47, %v5843_v18  ;;  %v1419_v43 = vcombine.high %v1403_v1, %v1403_v1 }
 0x73a   : > { %v1470_v27 = vand.u32 2147483647, %v1462_v17  ;;  %v1463_v5 = vsub.f32 %v1429_v23, %v6143_v30  ;;  %v1464_v29 = vsub.f32 %v1433_v19, %v6143_v30  ;;  %v1437_v6 = vrot.slane %v1420_v2, %v5832_v15  ;;  %v4787_v19 = vld [vmem:[%s6905_s3 + $0x1] ss:$0 sm:$0xff] }
 0x73b   : > { %v1445_v32 = vrot.slane %v1417_v0, %v5832_v15  ;;  %v1421_v41 = vcombine.high %v1417_v0, %v1417_v0  ;;  %v1466_v44 = vsub.f32 %v1441_v59, %v6143_v30  ;;  %v1449_v45 = vrot.slane %v1419_v43, %v5832_v15 }
 0x73c   : > { %5146 = vmatprep.mubr.msk.f32.mxu1 %vm426_vm1, %v1470_v27  ;;  %v1471_v34 = vand.u32 2147483647, %v1463_v5  ;;  %v1472_v35 = vand.u32 2147483647, %v1464_v29  ;;  %v1465_v38 = vsub.f32 %v1437_v6, %v6143_v30 }
 0x73d   : > { %v1467_v53 = vsub.f32 %v1445_v32, %v6143_v30  ;;  %v1453_v54 = vrot.slane %v1421_v41, %v5832_v15  ;;  %v1474_v57 = vand.u32 2147483647, %v1466_v44  ;;  %v1468_v58 = vsub.f32 %v1449_v45, %v6143_v30 }
 0x73e   : > { %5147 = vmatmul.mubr.msk.f32.vlgmr.msra.gmra.mrb[8].mxu1 %vm426_vm1, %v1471_v34  ;;  %v1473_v52 = vand.u32 2147483647, %v1465_v38 }
 0x73f   : > { %5149 = vmatprep.mubr.msk.f32.mxu1 %vm426_vm1, %v1472_v35  ;;  %5424 = vmatpush3.bf16.msra.mxu1 %v5423_v31  ;;  %v1475_v60 = vand.u32 2147483647, %v1467_v53  ;;  %v1469_v36 = vsub.f32 %v1453_v54, %v6143_v30  ;;  %v1476_v61 = vand.u32 2147483647, %v1468_v58 }
 0x740   : > { %5425 = vmatprep.subr.bf16.mxu1 %v5710_v62 }
 0x741   : > { %v1477_v42 = vand.u32 2147483647, %v1469_v36 }
 0x742   : > { %5150 = vmatmul.mubr.msk.f32.gmra.mrb[10].mxu1 %vm426_vm1, %v1473_v52 }
 0x743   : > { %5152 = vmatprep.mubr.msk.f32.mxu1 %vm426_vm1, %v1474_v57  ;;  %5427 = vmatpush3.bf16.msra.mxu1 %v5426_v48 }
 0x744   : > { %5428 = vmatprep.subr.bf16.mxu1 %v5710_v62 }
 0x746   : > { %5153 = vmatmul.mubr.msk.f32.gmra.mrb[12].mxu1 %vm426_vm1, %v1475_v60 }
 0x747   : > { %5155 = vmatprep.mubr.msk.f32.mxu1 %vm426_vm1, %v1476_v61  ;;  %5430 = vmatpush3.bf16.msra.mxu1 %v5429_v37 }
 0x748   : > { %5222 = vmatprep.subr.mxu1 %v5707_v13 }
 0x74a   : > { %5156 = vmatmul.mubr.msk.f32.gmra.mrb[14].mxu1 %vm426_vm1, %v1477_v42 }
 0x74b   : > { %5190 = vmatprep.mubr.msk.f32.mxu1 %vm5709_vm5, %v5707_v13 }
 0x74e   : > { %5191 = vmatmul.mubr.msk.f32.vlgmr.msra.gmra.mrb[16].mxu1 %vm426_vm1, %v6143_v30 }
 0x74f   : > { %5224 = vmatprep.mubr.msk.f32.mxu1 %vm5709_vm5, %v5707_v13 }
 0x811   : > { %v5148_v63 = vpop.f32.mrb[8].mxu1 }
 0x812   : > { %v1589_v1 = vadd.f32 %v5148_v63, %v4777_v21  ;;  %v1583_v47 = vpop.f32.mrb[9].mxu1 }
 0x813   : > { %v1584_v17 = vadd.f32 %v4777_v21, %v1583_v47 }
 0x814   : > { %vm1623_vm8 = vcmp.gt.f32.partialorder %v1589_v1, 0.0  ;;  %v1631_v23 = vmul.f32 0.01, %v1589_v1 }
 0x815   : > { %vm1622_vm9 = vcmp.gt.f32.partialorder %v1584_v17, 0.0  ;;  %v1630_v2 = vmul.f32 0.01, %v1584_v17  ;;  %v5151_v25 = vpop.f32.mrb[10].mxu1 }
 0x816   : > { %v1599_v26 = vadd.f32 %v5151_v25, %v4777_v21  ;;  %v1593_v59 = vpop.f32.mrb[11].mxu1  ;;  %v1639_v0 = vsel %vm1623_vm8, %v1589_v1, %v1631_v23 }
 0x817   : > { %v1594_v43 = vadd.f32 %v4777_v21, %v1593_v59  ;;  %v1655_v27 = vmul.f32 %v4787_v19, %v1639_v0  ;;  %v1638_v5 = vsel %vm1622_vm9, %v1584_v17, %v1630_v2 }
 0x818   : > { %vm1625_vm10 = vcmp.gt.f32.partialorder %v1599_v26, 0.0  ;;  %v1633_v29 = vmul.f32 0.01, %v1599_v26  ;;  %v1654_v6 = vmul.f32 %v4787_v19, %v1638_v5 }
 0x819   : > { %vm1624_vm6 = vcmp.gt.f32.partialorder %v1594_v43, 0.0  ;;  %v1632_v31 = vmul.f32 0.01, %v1594_v43  ;;  %v5154_v32 = vpop.f32.mrb[12].mxu1  ;;  %v1665_v34 = vsel %vm595_vm4, %v1655_v27, 0.0 }
 0x81a   : > { %v1609_v35 = vadd.f32 %v5154_v32, %v4777_v21  ;;  %1666 = vadd.xlane.f32.xlu0 %v1665_v34  ;;  %v1603_v38 = vpop.f32.mrb[13].mxu1  ;;  %v1662_v39 = vsel %vm595_vm4, %v1654_v6, 0.0  ;;  %v1641_v40 = vsel %vm1625_vm10, %v1599_v26, %v1633_v29  ;;  %v4789_v27 = vld [vmem:[%s6906_s4 + $0x1] ss:$0 sm:$0xff] }
 0x81b   : > { %v1604_v41 = vadd.f32 %v4777_v21, %v1603_v38  ;;  %1663 = vadd.xlane.f32.xlu1 %v1662_v39  ;;  %v1657_v44 = vmul.f32 %v4787_v19, %v1641_v40  ;;  %v1640_v45 = vsel %vm1624_vm6, %v1594_v43, %v1632_v31 }
 0x81c   : > { %vm1627_vm7 = vcmp.gt.f32.partialorder %v1609_v35, 0.0  ;;  %v1635_v48 = vmul.f32 0.01, %v1609_v35  ;;  %v1656_v52 = vmul.f32 %v4787_v19, %v1640_v45 }
 0x81d   : > { %vm1626_vm8 = vcmp.gt.f32.partialorder %v1604_v41, 0.0  ;;  %v1634_v53 = vmul.f32 0.01, %v1604_v41  ;;  %v5157_v54 = vpop.f32.mrb[14].mxu1  ;;  %v1671_v55 = vsel %vm595_vm4, %v1657_v44, 0.0 }
 0x81e   : > { %v1619_v56 = vadd.f32 %v5157_v54, %v4777_v21  ;;  %1672 = vadd.xlane.f32.xlu0 %v1671_v55  ;;  %v1613_v57 = vpop.f32.mrb[15].mxu1  ;;  %v1668_v58 = vsel %vm595_vm4, %v1656_v52, 0.0  ;;  %v1643_v37 = vsel %vm1627_vm7, %v1609_v35, %v1635_v48 }
 0x81f   : > { %v1614_v60 = vadd.f32 %v4777_v21, %v1613_v57  ;;  %1669 = vadd.xlane.f32.xlu1 %v1668_v58  ;;  %v1659_v36 = vmul.f32 %v4787_v19, %v1643_v37  ;;  %v1642_v61 = vsel %vm1626_vm8, %v1604_v41, %v1634_v53 }
 0x820   : > { %vm1629_vm9 = vcmp.gt.f32.partialorder %v1619_v56, 0.0  ;;  %v1637_v42 = vmul.f32 0.01, %v1619_v56  ;;  %v1658_v63 = vmul.f32 %v4787_v19, %v1642_v61 }
 0x821   : > { %vm1628_vm10 = vcmp.gt.f32.partialorder %v1614_v60, 0.0  ;;  %v1636_v1 = vmul.f32 0.01, %v1614_v60  ;;  %v6217_v47 = vpop.f32.mrb[16].mxu1  ;;  %v1677_v17 = vsel %vm595_vm4, %v1659_v36, 0.0 }
 0x822   : > { %1678 = vadd.xlane.f32.xlu0 %v1677_v17  ;;  %v5192_v23 = vpop.f32.mrb[17].mxu1  ;;  %v1674_v2 = vsel %vm595_vm4, %v1658_v63, 0.0  ;;  %v1645_v25 = vsel %vm1629_vm9, %v1619_v56, %v1637_v42 }
 0x823   : > { %1675 = vadd.xlane.f32.xlu1 %v1674_v2  ;;  %v1661_v26 = vmul.f32 %v4787_v19, %v1645_v25  ;;  %v1644_v21 = vsel %vm1628_vm10, %v1614_v60, %v1636_v1 }
 0x824   : > { %v1660_v59 = vmul.f32 %v4787_v19, %v1644_v21 }
 0x825   : > { %v1683_v0 = vsel %vm595_vm4, %v1661_v26, 0.0 }
 0x826   : > { %1684 = vadd.xlane.f32.xlu0 %v1683_v0  ;;  %v1680_v43 = vsel %vm595_vm4, %v1660_v59, 0.0 }
 0x827   : > { %1681 = vadd.xlane.f32.xlu1 %v1680_v43 }
 0x8a7   : > { %v1667_v5 = vpop.xlane.xlu0 %1666 }
 0x8a8   : > { %v1695_v29 = vadd.f32 %v4789_v27, %v1667_v5  ;;  %v1664_v6 = vpop.xlane.xlu1 %1663 }
 0x8a9   : > { %v1694_v31 = vadd.f32 %v4789_v27, %v1664_v6 }
 0x8aa   : > { %v1703_v32 = vsub.f32 %v1695_v29, %v5933_v7 }
 0x8ab   : > { %v1702_v34 = vsub.f32 %v1694_v31, %v5937_v9  ;;  %v1673_v35 = vpop.xlane.xlu0 %1672 }
 0x8ac   : > { %v1697_v19 = vadd.f32 %v4789_v27, %v1673_v35  ;;  %1722 = vperm.xlu0 %5564, %v1703_v32   ;;  %v1670_v38 = vpop.xlane.xlu1 %1669 }
 0x8ad   : > { %1719 = vperm.xlu1 %5563, %v1702_v34   ;;  %v1696_v40 = vadd.f32 %v4789_v27, %v1670_v38 }
 0x8ae   : > { %v1705_v39 = vsub.f32 %v1697_v19, %v5939_v10 }
 0x8af   : > { %v1679_v41 = vpop.xlane.xlu0 %1678  ;;  %v1704_v52 = vsub.f32 %v1696_v40, %v5935_v8 }
 0x8b0   : > { %v1699_v44 = vadd.f32 %v4789_v27, %v1679_v41  ;;  %v1676_v45 = vpop.xlane.xlu1 %1675 }
 0x8b1   : > { %1728 = vperm.xlu1 %5563, %v1705_v39   ;;  %v1698_v53 = vadd.f32 %v4789_v27, %v1676_v45 }
 0x8b2   : > { %v1707_v48 = vsub.f32 %v1699_v44, %v5946_v22 }
 0x8b3   : > { %v1685_v54 = vpop.xlane.xlu0 %1684  ;;  %v1706_v58 = vsub.f32 %v1698_v53, %v5941_v14 }
 0x8b4   : > { %v1701_v55 = vadd.f32 %v4789_v27, %v1685_v54  ;;  %1734 = vperm.xlu0 %5564, %v1707_v48   ;;  %v1682_v56 = vpop.xlane.xlu1 %1681 }
 0x8b5   : > { %1725 = vperm.xlu1 %5563, %v1704_v52   ;;  %v1700_v37 = vadd.f32 %v4789_v27, %v1682_v56 }
 0x8b6   : > { %v6232_v57 = vsub.f32 %v1701_v55, %v5977_v49 }
 0x8b7   : > { %v1708_v60 = vsub.f32 %v1700_v37, %v5972_v46 }
 0x8b8   : > { %1740 = vperm.xlu0 %5564, %v6232_v57  }
 0x8b9   : > { %1731 = vperm.xlu1 %5563, %v1706_v58  }
 0x8bd   : > { %1737 = vperm.xlu1 %5563, %v1708_v60  }
 0x92b   : > { %v1723_v61 = vpop.permute.xlu0 %1722 }
 0x92c   : > { %v1720_v36 = vpop.permute.xlu1 %1719  ;;  %v1749_v63 = vrot.slane %v1723_v61, %v5986_v51 }
 0x92d   : > { %v1745_v1 = vrot.slane %v1720_v36, %v5986_v51 }
 0x92f   : > { %v1774_v25 = vsel %vm772_vm11, %v1749_v63, %v1745_v1 }
 0x930   : > { %v1729_v42 = vpop.permute.xlu1 %1728 }
 0x931   : > { %v1757_v21 = vrot.slane %v1729_v42, %v5986_v51 }
 0x933   : > { %v1735_v23 = vpop.permute.xlu0 %1734 }
 0x934   : > { %v1726_v17 = vpop.permute.xlu1 %1725  ;;  %v1765_v29 = vrot.slane %v1735_v23, %v5986_v51 }
 0x935   : > { %v1753_v2 = vrot.slane %v1726_v17, %v5986_v51 }
 0x937   : > { %v1775_v26 = vsel %vm774_vm12, %v1753_v2, %v1774_v25  ;;  %v1741_v27 = vpop.permute.xlu0 %1740 }
 0x938   : > { %v1732_v59 = vpop.permute.xlu1 %1731  ;;  %v1776_v43 = vsel %vm776_vm13, %v1757_v21, %v1775_v26  ;;  %v1773_v35 = vrot.slane %v1741_v27, %v5986_v51 }
 0x939   : > { %v1761_v0 = vrot.slane %v1732_v59, %v5986_v51 }
 0x93b   : > { %v1777_v5 = vsel %vm778_vm14, %v1761_v0, %v1776_v43 }
 0x93c   : > { %v1738_v6 = vpop.permute.xlu1 %1737  ;;  %v1778_v19 = vsel %vm780_vm15, %v1765_v29, %v1777_v5 }
 0x93d   : > { %v1769_v31 = vrot.slane %v1738_v6, %v5986_v51 }
 0x93f   : > { %v1779_v38 = vsel %vm782_vm0, %v1769_v31, %v1778_v19 }
 0x940   : > { %v1780_v40 = vsel %vm784_vm2, %v1773_v35, %v1779_v38 }
 0x941   : > { %v1782_v41 = vsel %vm787_vm3, %v1780_v40, -inf }
 0x942   : > { %1783 = vmax.xlane.f32.xlu1 %v1782_v41 }
 0x9cf   : > { %v1784_v44 = vpop.xlane.xlu1 %1783 }
 0x9d0   : > { %v1789_v45 = vrot.slane %v1784_v44, %v5832_v15  ;;  %v1793_v53 = vrot.slane %v1784_v44, %v5837_v16  ;;  %v1797_v54 = vrot.slane %v1784_v44, %v5849_v20  ;;  %v1801_v36 = vrot.slane %v1784_v44, %v5868_v28 }
 0x9d1   : > { %v1805_v63 = vrot.slane %v1784_v44, %v5858_v24  ;;  %v1809_v23 = vrot.slane %v1784_v44, %v5875_v33  ;;  %v1817_v59 = vrot.slane %v1784_v44, %v5924_v3 }
 0x9d2   : > { %v1826_v55 = vsub.f32 %v1702_v34, %v1789_v45  ;;  %v1827_v56 = vsub.f32 %v1703_v32, %v1793_v53  ;;  %v1828_v61 = vsub.f32 %v1704_v52, %v1797_v54  ;;  %v1829_v1 = vsub.f32 %v1705_v39, %v1801_v36 }
 0x9d3   : > { %v1830_v2 = vsub.f32 %v1706_v58, %v1805_v63  ;;  %v1813_v32 = vrot.slane %v1784_v44, %v5927_v4  ;;  %v1831_v34 = vsub.f32 %v1707_v48, %v1809_v23  ;;  %v1833_v58 = vsub.f32 %v6232_v57, %v1817_v59 }
 0x9d4   : > { %v1834_v37 = vmul.f32 1.442695, %v1826_v55  ;;  %v1836_v42 = vmul.f32 1.442695, %v1827_v56  ;;  %v1838_v17 = vmul.f32 1.442695, %v1828_v61 }
 0x9d5   : > { %v1840_v25 = vmul.f32 1.442695, %v1829_v1  ;;  %v1842_v21 = vmul.f32 1.442695, %v1830_v2  ;;  %v1832_v0 = vsub.f32 %v1708_v60, %v1813_v32  ;;  %v1844_v39 = vmul.f32 1.442695, %v1831_v34 }
 0x9d6   : > { %5584 = vpow2.f32 %v1834_v37  ;;  %v1848_v29 = vmul.f32 1.442695, %v1833_v58 }
 0x9d7   : > { %5586 = vpow2.f32 %v1836_v42  ;;  %v1846_v27 = vmul.f32 1.442695, %v1832_v0 }
 0x9d8   : > { %5588 = vpow2.f32 %v1838_v17 }
 0x9d9   : > { %5590 = vpow2.f32 %v1840_v25 }
 0x9da   : > { %5592 = vpow2.f32 %v1842_v21 }
 0x9db   : > { %5594 = vpow2.f32 %v1844_v39 }
 0x9dc   : > { %5596 = vpow2.f32 %v1846_v27 }
 0x9dd   : > { %5598 = vpow2.f32 %v1848_v29 }
 0x9e0   : > { %v5585_v26 = vpop.eup %5584 }
 0x9e1   : > { %1859 = vperm.xlu0 %5564, %v5585_v26   ;;  %v5587_v52 = vpop.eup %5586 }
 0x9e2   : > { %v5589_v43 = vpop.eup %5588 }
 0x9e3   : > { %v5591_v5 = vpop.eup %5590 }
 0x9e4   : > { %v5593_v48 = vpop.eup %5592 }
 0x9e5   : > { %1862 = vperm.xlu0 %5564, %v5587_v52   ;;  %v5595_v6 = vpop.eup %5594 }
 0x9e6   : > { %v5597_v31 = vpop.eup %5596 }
 0x9e7   : > { %v5599_v60 = vpop.eup %5598 }
 0x9e9   : > { %1865 = vperm.xlu0 %5564, %v5589_v43  }
 0x9ed   : > { %1868 = vperm.xlu0 %5564, %v5591_v5  }
 0x9f1   : > { %1871 = vperm.xlu0 %5564, %v5593_v48  }
 0x9f5   : > { %1874 = vperm.xlu0 %5564, %v5595_v6  }
 0x9f9   : > { %1877 = vperm.xlu0 %5564, %v5597_v31  }
 0x9fd   : > { %1880 = vperm.xlu0 %5564, %v5599_v60  }
 0xa60   : > { %v1860_v35 = vpop.permute.xlu0 %1859 }
 0xa61   : > { %v1885_v53 = vrot.slane %v1860_v35, %v5986_v51 }
 0xa64   : > { %v1863_v19 = vpop.permute.xlu0 %1862 }
 0xa65   : > { %v1889_v44 = vrot.slane %v1863_v19, %v5986_v51 }
 0xa67   : > { %v1914_v37 = vsel %vm772_vm11, %v1889_v44, %v1885_v53 }
 0xa68   : > { %v1866_v38 = vpop.permute.xlu0 %1865 }
 0xa69   : > { %v1893_v45 = vrot.slane %v1866_v38, %v5986_v51 }
 0xa6b   : > { %v1915_v61 = vsel %vm774_vm12, %v1893_v45, %v1914_v37 }
 0xa6c   : > { %v1869_v40 = vpop.permute.xlu0 %1868 }
 0xa6d   : > { %v1897_v54 = vrot.slane %v1869_v40, %v5986_v51 }
 0xa6f   : > { %v1916_v63 = vsel %vm776_vm13, %v1897_v54, %v1915_v61 }
 0xa70   : > { %v1872_v57 = vpop.permute.xlu0 %1871 }
 0xa71   : > { %v1901_v55 = vrot.slane %v1872_v57, %v5986_v51 }
 0xa73   : > { %v1917_v1 = vsel %vm778_vm14, %v1901_v55, %v1916_v63 }
 0xa74   : > { %v1875_v41 = vpop.permute.xlu0 %1874 }
 0xa75   : > { %v1905_v36 = vrot.slane %v1875_v41, %v5986_v51 }
 0xa77   : > { %v1918_v23 = vsel %vm780_vm15, %v1905_v36, %v1917_v1 }
 0xa78   : > { %v1878_v56 = vpop.permute.xlu0 %1877 }
 0xa79   : > { %v1909_v42 = vrot.slane %v1878_v56, %v5986_v51 }
 0xa7b   : > { %v1919_v25 = vsel %vm782_vm0, %v1909_v42, %v1918_v23 }
 0xa7c   : > { %v1881_v17 = vpop.permute.xlu0 %1880 }
 0xa7d   : > { %v1913_v2 = vrot.slane %v1881_v17, %v5986_v51 }
 0xa7f   : > { %v1920_v32 = vsel %vm784_vm2, %v1913_v2, %v1919_v25  ;;  %v4797_v2 = vld [vmem:[%s6908_s6 + $0x30] sm:$0xff]  ;;  %v4798_v25 = vld [vmem:[%s6908_s6 + $0x38] sm:$0xff] }
 0xa80   : > { %v1922_v34 = vsel %vm787_vm3, %v1920_v32, 0.0 }
 0xa81   : > { %1923 = vadd.xlane.f32.xlu0 %v1922_v34 }
 0xb0e   : > { %v1924_v21 = vpop.xlane.xlu0 %1923 }
 0xb0f   : > { %5600 = vrcp.f32 %v1924_v21 }
 0xb19   : > { %v5601_v59 = vpop.eup %5600 }
 0xb1a   : > { %v1946_v0 = vrot.slane %v5601_v59, %v5858_v24  ;;  %v1930_v39 = vrot.slane %v5601_v59, %v5832_v15  ;;  %v1934_v29 = vrot.slane %v5601_v59, %v5837_v16  ;;  %v1938_v19 = vrot.slane %v5601_v59, %v5849_v20 }
 0xb1b   : > { %v1942_v40 = vrot.slane %v5601_v59, %v5868_v28  ;;  %v1950_v41 = vrot.slane %v5601_v59, %v5875_v33  ;;  %v1958_v45 = vrot.slane %v5601_v59, %v5924_v3 }
 0xb1c   : > { %v1971_v58 = vmul.f32 %v5593_v48, %v1946_v0  ;;  %v1967_v27 = vmul.f32 %v5585_v26, %v1930_v39  ;;  %v1968_v35 = vmul.f32 %v5587_v52, %v1934_v29  ;;  %v1969_v38 = vmul.f32 %v5589_v43, %v1938_v19  ;;  %v4801_v19 = vld [vmem:[%s6908_s6 + $0x50] sm:$0xff] }
 0xb1d   : > { %v1970_v57 = vmul.f32 %v5591_v5, %v1942_v40  ;;  %v1972_v44 = vmul.f32 %v5595_v6, %v1950_v41  ;;  %v1954_v48 = vrot.slane %v5601_v59, %v5927_v4  ;;  %v1974_v52 = vmul.f32 %v5599_v60, %v1958_v45 }
 0xb1e   : > { %1996 = vperm.xlu0 %5564, %v1971_v58   ;;  %1984 = vperm.xlu1 %5563, %v1967_v27   ;;  %v5414_v0 = vpack.c.bf16 %v4798_v25, %v4797_v2  ;;  %v4799_v58 = vld [vmem:[%s6908_s6 + $0x40] sm:$0xff]  ;;  %v4800_v27 = vld [vmem:[%s6908_s6 + $0x48] sm:$0xff] }
 0xb1f   : > { %v1973_v26 = vmul.f32 %v5597_v31, %v1954_v48 }
 0xb22   : > { %1987 = vperm.xlu1 %5563, %v1968_v35   ;;  %v5417_v35 = vpack.c.bf16 %v4800_v27, %v4799_v58 }
 0xb26   : > { %1990 = vperm.xlu1 %5563, %v1969_v38   ;;  %v4802_v38 = vld [vmem:[%s6908_s6 + $0x58] sm:$0xff] }
 0xb27   : > { %v5420_v40 = vpack.c.bf16 %v4802_v38, %v4801_v19 }
 0xb2a   : > { %1993 = vperm.xlu1 %5563, %v1970_v57  }
 0xb2e   : > { %1999 = vperm.xlu1 %5563, %v1972_v44   ;;  %v2289_v44 = vadd.s32 24, %v5826_v11 }
 0xb30   : > { %vm2290_vm6 = vcmp.eq.s32.totalorder %v5828_v12, %v2289_v44 }
 0xb32   : > { %2002 = vperm.xlu1 %5563, %v1973_v26   ;;  %v4806_v26 = vld [vmem:[%s6909_s7 + $0x1] ss:$0 sm:$0xff] }
 0xb36   : > { %2005 = vperm.xlu1 %5563, %v1974_v52  }
 0xb9d   : > { %v1985_v53 = vpop.permute.xlu1 %1984  ;;  %v1997_v61 = vpop.permute.xlu0 %1996 }
 0xb9e   : > { %v2010_v6 = vrot.slane %v1985_v53, %v5986_v51  ;;  %v2026_v17 = vrot.slane %v1997_v61, %v5986_v51  ;;  %v4815_v61 = vld [vmem:[%s6903_s1 + $0x88] sm:$0xff] }
 0xba1   : > { %v1988_v54 = vpop.permute.xlu1 %1987 }
 0xba2   : > { %v2014_v56 = vrot.slane %v1988_v54, %v5986_v51 }
 0xba4   : > { %v2039_v31 = vsel %vm772_vm11, %v2014_v56, %v2010_v6  ;;  %v4811_v56 = vld [vmem:[%s6903_s1 + $0x68] sm:$0xff]  ;;  %v4814_v6 = vld [vmem:[%s6903_s1 + $0x80] sm:$0xff] }
 0xba5   : > { %v1991_v43 = vpop.permute.xlu1 %1990 }
 0xba6   : > { %v2018_v5 = vrot.slane %v1991_v43, %v5986_v51 }
 0xba8   : > { %v2040_v42 = vsel %vm774_vm12, %v2018_v5, %v2039_v31  ;;  %v5439_v31 = vpack.c.bf16 %v4815_v61, %v4814_v6 }
 0xba9   : > { %v1994_v55 = vpop.permute.xlu1 %1993 }
 0xbaa   : > { %v2022_v36 = vrot.slane %v1994_v55, %v5986_v51  ;;  %v4810_v55 = vld [vmem:[%s6903_s1 + $0x60] sm:$0xff] }
 0xbab   : > { %v5431_v5 = vpack.c.bf16 %v4811_v56, %v4810_v55  ;;  %v4834_v55 = vld [vmem:[%s6907_s5 + $0x78] sm:$0xff] }
 0xbac   : > { %v2041_v63 = vsel %vm776_vm13, %v2022_v36, %v2040_v42 }
 0xbad   : > { %v2000_v37 = vpop.permute.xlu1 %1999  ;;  %v2042_v32 = vsel %vm778_vm14, %v2026_v17, %v2041_v63 }
 0xbae   : > { %v2030_v1 = vrot.slane %v2000_v37, %v5986_v51  ;;  %v4813_v37 = vld [vmem:[%s6903_s1 + $0x78] sm:$0xff] }
 0xbb0   : > { %v2043_v21 = vsel %vm780_vm15, %v2030_v1, %v2042_v32 }
 0xbb1   : > { %v2003_v60 = vpop.permute.xlu1 %2002 }
 0xbb2   : > { %v2034_v23 = vrot.slane %v2003_v60, %v5986_v51 }
 0xbb4   : > { %v2044_v39 = vsel %vm782_vm0, %v2034_v23, %v2043_v21 }
 0xbb5   : > { %v2006_v34 = vpop.permute.xlu1 %2005 }
 0xbb6   : > { %v2038_v59 = vrot.slane %v2006_v34, %v5986_v51 }
 0xbb8   : > { %v2045_v29 = vsel %vm784_vm2, %v2038_v59, %v2044_v39 }
 0xbb9   : > { %5161 = vmatmul.mubr.msk.f32.vlgmr.msra.gmra.mrb[8].mxu0 %vm787_vm3, %v2045_v29  ;;  %v4831_v29 = vld [vmem:[%s6907_s5 + $0x60] sm:$0xff] }
 0xbba   : > { %5415 = vmatpush3.bf16.msra.mxu0 %v5414_v0  ;;  %5175 = vmatprep.mubr.msk.f32.mxu0 %vm5709_vm5, %v5707_v13 }
 0xbbb   : > { %5416 = vmatprep.subr.bf16.mxu0 %v5710_v62 }
 0xbbe   : > { %5418 = vmatpush3.bf16.msra.mxu0 %v5417_v35  ;;  %v4832_v35 = vld [vmem:[%s6907_s5 + $0x68] sm:$0xff] }
 0xbbf   : > { %5419 = vmatprep.subr.bf16.mxu0 %v5710_v62 }
 0xbc2   : > { %5421 = vmatpush3.bf16.msra.mxu0 %v5420_v40 }
 0xbc3   : > { %5193 = vmatprep.subr.mxu0 %v5707_v13 }
 0xc8c   : > { %v2114_v57 = vpop.f32.mrb[8].mxu0 }
 0xc8d   : > { %v5162_v41 = vpop.f32.mrb[9].mxu0  ;;  %5176 = vmatmul.mubr.msk.f32.vlgmr.msra.gmra.mrb[10].mxu0 %vm426_vm1, %v2114_v57 }
 0xc8e   : > { %5195 = vmatprep.mubr.msk.f32.mxu0 %vm5709_vm5, %v5707_v13  ;;  %5194 = vmatpush3.msk.msra.mxu0 %vm2290_vm6, %v5711_v50 }
 0xc8f   : > { %5432 = vmatprep.subr.bf16.mxu0 %v5431_v5 }
 0xd60   : > { %v2201_v48 = vpop.f32.mrb[10].mxu0 }
 0xd61   : > { %v2274_v45 = vadd.f32 %v6217_v47, %v2201_v48  ;;  %v5177_v52 = vpop.f32.mrb[11].mxu0  ;;  %v4812_v47 = vld [vmem:[%s6903_s1 + $0x70] sm:$0xff] }
 0xd62   : > { %v5435_v36 = vpack.c.bf16 %v4813_v37, %v4812_v47 }
 0xd63   : > { %v2285_v53 = vadd.f32 %v4806_v26, %v2274_v45  ;;  %v5453_v26 = vpack.c.bf16 %v4832_v35, %v4831_v29 }
 0xd65   : > { %vm2286_vm7 = vcmp.gt.f32.partialorder %v2285_v53, 0.0  ;;  %v2287_v54 = vmul.f32 0.01, %v2285_v53 }
 0xd67   : > { %v2288_v43 = vsel %vm2286_vm7, %v2285_v53, %v2287_v54 }
 0xd68   : > { %5196 = vmatmul.mubr.msk.f32.vlgmr.msra.gmra.mrb[12].mxu0 %vm787_vm3, %v2288_v43  ;;  %v4833_v43 = vld [vmem:[%s6907_s5 + $0x70] sm:$0xff] }
 0xd69   : > { %5434 = vmatpush3.bf16.msra.mxu0 %v5431_v5  ;;  %v5456_v37 = vpack.c.bf16 %v4834_v55, %v4833_v43 }
 0xd6a   : > { %5436 = vmatprep.subr.bf16.mxu0 %v5435_v36 }
 0xd6d   : > { %5438 = vmatpush3.bf16.msra.mxu0 %v5435_v36 }
 0xd6e   : > { %5440 = vmatprep.subr.bf16.mxu0 %v5439_v31 }
 0xd71   : > { %5442 = vmatpush3.bf16.msra.mxu0 %v5439_v31  ;;  %v4835_v31 = vld [vmem:[%s6907_s5 + $0x80] sm:$0xff] }
 0xd72   : > { %5452 = vmatprep.subr.bf16.mxu0 %v5710_v62 }
 0xe3b   : > { %v2363_v42 = vpop.f32.mrb[12].mxu0 }
 0xe3c   : > { %v6356_v60 = vadd.f32 %v2363_v42, %v6143_v30  ;;  %v5197_v63 = vpop.f32.mrb[13].mxu0  ;;  %v4836_v42 = vld [vmem:[%s6907_s5 + $0x88] sm:$0xff] }
 0xe3e   : > { %5223 = vmatpush3.msra.mxu1 %v6356_v60  ;;  %v2376_v1 = vrot.slane %v6356_v60, %v5843_v18  ;;  %v2369_v17 = vcombine.high %v6356_v60, %v6356_v60 }
 0xe3f   : > { %5443 = vmatprep.subr.bf16.mxu1 %v5710_v62 }
 0xe40   : > { %v2384_v23 = vcombine.high %v2376_v1, %v2376_v1  ;;  %v2392_v2 = vrot.slane %v2376_v1, %v5843_v18  ;;  %v2383_v25 = vrot.slane %v2369_v17, %v5843_v18  ;;  %v5459_v17 = vpack.c.bf16 %v4836_v42, %v4835_v31 }
 0xe42   : > { %v2421_v32 = vrot.slane %v2392_v2, %v5832_v15  ;;  %v2406_v30 = vrot.slane %v2384_v23, %v5843_v18  ;;  %v2414_v34 = vcombine.high %v2392_v2, %v2392_v2  ;;  %v2399_v21 = vrot.slane %v2383_v25, %v5843_v18 }
 0xe43   : > { %v2385_v59 = vcombine.high %v2383_v25, %v2383_v25 }
 0xe44   : > { %v2458_v0 = vsub.f32 %v2421_v32, %v6356_v60  ;;  %v2425_v39 = vrot.slane %v2406_v30, %v5832_v15  ;;  %v2429_v58 = vrot.slane %v2414_v34, %v5832_v15  ;;  %v2416_v27 = vcombine.high %v2406_v30, %v2406_v30  ;;  %v4817_v30 = vld [vmem:[%s6904_s2 + $0x2] ss:$0 sm:$0xff] }
 0xe45   : > { %v2437_v19 = vrot.slane %v2399_v21, %v5832_v15  ;;  %v2413_v38 = vrot.slane %v2385_v59, %v5843_v18  ;;  %v2415_v40 = vcombine.high %v2399_v21, %v2399_v21 }
 0xe46   : > { %v2466_v57 = vand.u32 2147483647, %v2458_v0  ;;  %v2459_v41 = vsub.f32 %v2425_v39, %v6356_v60  ;;  %v2460_v44 = vsub.f32 %v2429_v58, %v6356_v60  ;;  %v2433_v48 = vrot.slane %v2416_v27, %v5832_v15  ;;  %v4827_v58 = vld [vmem:[%s6905_s3 + $0x2] ss:$0 sm:$0xff] }
 0xe47   : > { %v2441_v45 = vrot.slane %v2413_v38, %v5832_v15  ;;  %v2417_v56 = vcombine.high %v2413_v38, %v2413_v38  ;;  %v2462_v5 = vsub.f32 %v2437_v19, %v6356_v60  ;;  %v2445_v47 = vrot.slane %v2415_v40, %v5832_v15 }
 0xe48   : > { %5210 = vmatprep.mubr.msk.f32.mxu0 %vm426_vm1, %v2466_v57  ;;  %v2467_v52 = vand.u32 2147483647, %v2459_v41  ;;  %v2468_v53 = vand.u32 2147483647, %v2460_v44  ;;  %v2461_v54 = vsub.f32 %v2433_v48, %v6356_v60 }
 0xe49   : > { %v2463_v36 = vsub.f32 %v2441_v45, %v6356_v60  ;;  %v2449_v61 = vrot.slane %v2417_v56, %v5832_v15  ;;  %v2470_v63 = vand.u32 2147483647, %v2462_v5  ;;  %v2464_v1 = vsub.f32 %v2445_v47, %v6356_v60 }
 0xe4a   : > { %5211 = vmatmul.mubr.msk.f32.vlgmr.msra.gmra.mrb[14].mxu0 %vm426_vm1, %v2467_v52  ;;  %v2469_v6 = vand.u32 2147483647, %v2461_v54 }
 0xe4b   : > { %5213 = vmatprep.mubr.msk.f32.mxu0 %vm426_vm1, %v2468_v53  ;;  %5454 = vmatpush3.bf16.msra.mxu0 %v5453_v26  ;;  %v2471_v23 = vand.u32 2147483647, %v2463_v36  ;;  %v2465_v2 = vsub.f32 %v2449_v61, %v6356_v60  ;;  %v2472_v25 = vand.u32 2147483647, %v2464_v1 }
 0xe4c   : > { %5455 = vmatprep.subr.bf16.mxu0 %v5710_v62 }
 0xe4d   : > { %v2473_v32 = vand.u32 2147483647, %v2465_v2 }
 0xe4e   : > { %5214 = vmatmul.mubr.msk.f32.gmra.mrb[16].mxu0 %vm426_vm1, %v2469_v6 }
 0xe4f   : > { %5216 = vmatprep.mubr.msk.f32.mxu0 %vm426_vm1, %v2470_v63  ;;  %5457 = vmatpush3.bf16.msra.mxu0 %v5456_v37 }
 0xe50   : > { %5458 = vmatprep.subr.bf16.mxu0 %v5710_v62 }
 0xe52   : > { %5217 = vmatmul.mubr.msk.f32.gmra.mrb[18].mxu0 %vm426_vm1, %v2471_v23 }
 0xe53   : > { %5219 = vmatprep.mubr.msk.f32.mxu0 %vm426_vm1, %v2472_v25  ;;  %5460 = vmatpush3.bf16.msra.mxu0 %v5459_v17 }
 0xe54   : > { %5286 = vmatprep.subr.mxu0 %v5707_v13 }
 0xe56   : > { %5220 = vmatmul.mubr.msk.f32.gmra.mrb[20].mxu0 %vm426_vm1, %v2473_v32 }
 0xe57   : > { %5254 = vmatprep.mubr.msk.f32.mxu0 %vm5709_vm5, %v5707_v13 }
 0xe5a   : > { %5255 = vmatmul.mubr.msk.f32.vlgmr.msra.gmra.mrb[22].mxu0 %vm426_vm1, %v6356_v60 }
 0xe5b   : > { %5288 = vmatprep.mubr.msk.f32.mxu0 %vm5709_vm5, %v5707_v13 }
 0xf1d   : > { %v5212_v34 = vpop.f32.mrb[14].mxu0 }
 0xf1e   : > { %v2585_v21 = vadd.f32 %v5212_v34, %v4817_v30  ;;  %v2579_v59 = vpop.f32.mrb[15].mxu0 }
 0xf1f   : > { %v2580_v0 = vadd.f32 %v4817_v30, %v2579_v59 }
 0xf20   : > { %vm2619_vm8 = vcmp.gt.f32.partialorder %v2585_v21, 0.0  ;;  %v2627_v39 = vmul.f32 0.01, %v2585_v21 }
 0xf21   : > { %vm2618_vm9 = vcmp.gt.f32.partialorder %v2580_v0, 0.0  ;;  %v2626_v27 = vmul.f32 0.01, %v2580_v0  ;;  %v5215_v29 = vpop.f32.mrb[16].mxu0 }
 0xf22   : > { %v2595_v35 = vadd.f32 %v5215_v29, %v4817_v30  ;;  %v2589_v19 = vpop.f32.mrb[17].mxu0  ;;  %v2635_v38 = vsel %vm2619_vm8, %v2585_v21, %v2627_v39 }
 0xf23   : > { %v2590_v40 = vadd.f32 %v4817_v30, %v2589_v19  ;;  %v2651_v57 = vmul.f32 %v4827_v58, %v2635_v38  ;;  %v2634_v41 = vsel %vm2618_vm9, %v2580_v0, %v2626_v27 }
 0xf24   : > { %vm2621_vm10 = vcmp.gt.f32.partialorder %v2595_v35, 0.0  ;;  %v2629_v44 = vmul.f32 0.01, %v2595_v35  ;;  %v2650_v48 = vmul.f32 %v4827_v58, %v2634_v41 }
 0xf25   : > { %vm2620_vm6 = vcmp.gt.f32.partialorder %v2590_v40, 0.0  ;;  %v2628_v26 = vmul.f32 0.01, %v2590_v40  ;;  %v5218_v45 = vpop.f32.mrb[18].mxu0  ;;  %v2661_v52 = vsel %vm595_vm4, %v2651_v57, 0.0 }
 0xf26   : > { %v2605_v53 = vadd.f32 %v5218_v45, %v4817_v30  ;;  %2662 = vadd.xlane.f32.xlu0 %v2661_v52  ;;  %v2599_v54 = vpop.f32.mrb[19].mxu0  ;;  %v2658_v43 = vsel %vm595_vm4, %v2650_v48, 0.0  ;;  %v2637_v55 = vsel %vm2621_vm10, %v2595_v35, %v2629_v44  ;;  %v4829_v57 = vld [vmem:[%s6906_s4 + $0x2] ss:$0 sm:$0xff] }
 0xf27   : > { %v2600_v56 = vadd.f32 %v4817_v30, %v2599_v54  ;;  %2659 = vadd.xlane.f32.xlu1 %v2658_v43  ;;  %v2653_v5 = vmul.f32 %v4827_v58, %v2637_v55  ;;  %v2636_v47 = vsel %vm2620_vm6, %v2590_v40, %v2628_v26 }
 0xf28   : > { %vm2623_vm7 = vcmp.gt.f32.partialorder %v2605_v53, 0.0  ;;  %v2631_v37 = vmul.f32 0.01, %v2605_v53  ;;  %v2652_v6 = vmul.f32 %v4827_v58, %v2636_v47 }
 0xf29   : > { %vm2622_vm8 = vcmp.gt.f32.partialorder %v2600_v56, 0.0  ;;  %v2630_v36 = vmul.f32 0.01, %v2600_v56  ;;  %v5221_v61 = vpop.f32.mrb[20].mxu0  ;;  %v2667_v31 = vsel %vm595_vm4, %v2653_v5, 0.0 }
 0xf2a   : > { %v2615_v42 = vadd.f32 %v5221_v61, %v4817_v30  ;;  %2668 = vadd.xlane.f32.xlu0 %v2667_v31  ;;  %v2609_v63 = vpop.f32.mrb[21].mxu0  ;;  %v2664_v1 = vsel %vm595_vm4, %v2652_v6, 0.0  ;;  %v2639_v17 = vsel %vm2623_vm7, %v2605_v53, %v2631_v37 }
 0xf2b   : > { %v2610_v23 = vadd.f32 %v4817_v30, %v2609_v63  ;;  %2665 = vadd.xlane.f32.xlu1 %v2664_v1  ;;  %v2655_v2 = vmul.f32 %v4827_v58, %v2639_v17  ;;  %v2638_v25 = vsel %vm2622_vm8, %v2600_v56, %v2630_v36 }
 0xf2c   : > { %vm2625_vm9 = vcmp.gt.f32.partialorder %v2615_v42, 0.0  ;;  %v2633_v32 = vmul.f32 0.01, %v2615_v42  ;;  %v2654_v34 = vmul.f32 %v4827_v58, %v2638_v25 }
 0xf2d   : > { %vm2624_vm10 = vcmp.gt.f32.partialorder %v2610_v23, 0.0  ;;  %v2632_v21 = vmul.f32 0.01, %v2610_v23  ;;  %v6430_v59 = vpop.f32.mrb[22].mxu0  ;;  %v2673_v0 = vsel %vm595_vm4, %v2655_v2, 0.0 }
 0xf2e   : > { %2674 = vadd.xlane.f32.xlu0 %v2673_v0  ;;  %v5256_v39 = vpop.f32.mrb[23].mxu0  ;;  %v2670_v27 = vsel %vm595_vm4, %v2654_v34, 0.0  ;;  %v2641_v29 = vsel %vm2625_vm9, %v2615_v42, %v2633_v32 }
 0xf2f   : > { %2671 = vadd.xlane.f32.xlu1 %v2670_v27  ;;  %v2657_v35 = vmul.f32 %v4827_v58, %v2641_v29  ;;  %v2640_v30 = vsel %vm2624_vm10, %v2610_v23, %v2632_v21 }
 0xf30   : > { %v2656_v19 = vmul.f32 %v4827_v58, %v2640_v30 }
 0xf31   : > { %v2679_v38 = vsel %vm595_vm4, %v2657_v35, 0.0 }
 0xf32   : > { %2680 = vadd.xlane.f32.xlu0 %v2679_v38  ;;  %v2676_v40 = vsel %vm595_vm4, %v2656_v19, 0.0 }
 0xf33   : > { %2677 = vadd.xlane.f32.xlu1 %v2676_v40 }
 0xfb3   : > { %v2663_v41 = vpop.xlane.xlu0 %2662 }
 0xfb4   : > { %v2691_v44 = vadd.f32 %v4829_v57, %v2663_v41  ;;  %v2660_v48 = vpop.xlane.xlu1 %2659 }
 0xfb5   : > { %v2690_v26 = vadd.f32 %v4829_v57, %v2660_v48 }
 0xfb6   : > { %v2699_v45 = vsub.f32 %v2691_v44, %v5933_v7 }
 0xfb7   : > { %v2698_v52 = vsub.f32 %v2690_v26, %v5937_v9  ;;  %v2669_v53 = vpop.xlane.xlu0 %2668 }
 0xfb8   : > { %v2693_v58 = vadd.f32 %v4829_v57, %v2669_v53  ;;  %2718 = vperm.xlu0 %5564, %v2699_v45   ;;  %v2666_v54 = vpop.xlane.xlu1 %2665 }
 0xfb9   : > { %2715 = vperm.xlu1 %5563, %v2698_v52   ;;  %v2692_v55 = vadd.f32 %v4829_v57, %v2666_v54 }
 0xfba   : > { %v2701_v43 = vsub.f32 %v2693_v58, %v5939_v10 }
 0xfbb   : > { %v2675_v56 = vpop.xlane.xlu0 %2674  ;;  %v2700_v6 = vsub.f32 %v2692_v55, %v5935_v8 }
 0xfbc   : > { %v2695_v5 = vadd.f32 %v4829_v57, %v2675_v56  ;;  %v2672_v47 = vpop.xlane.xlu1 %2671 }
 0xfbd   : > { %2724 = vperm.xlu1 %5563, %v2701_v43   ;;  %v2694_v36 = vadd.f32 %v4829_v57, %v2672_v47 }
 0xfbe   : > { %v2703_v37 = vsub.f32 %v2695_v5, %v5946_v22 }
 0xfbf   : > { %v2681_v61 = vpop.xlane.xlu0 %2680  ;;  %v2702_v1 = vsub.f32 %v2694_v36, %v5941_v14 }
 0xfc0   : > { %v2697_v31 = vadd.f32 %v4829_v57, %v2681_v61  ;;  %2730 = vperm.xlu0 %5564, %v2703_v37   ;;  %v2678_v42 = vpop.xlane.xlu1 %2677 }
 0xfc1   : > { %2721 = vperm.xlu1 %5563, %v2700_v6   ;;  %v2696_v17 = vadd.f32 %v4829_v57, %v2678_v42 }
 0xfc2   : > { %v6445_v63 = vsub.f32 %v2697_v31, %v5977_v49 }
 0xfc3   : > { %v2704_v23 = vsub.f32 %v2696_v17, %v5972_v46 }
 0xfc4   : > { %2736 = vperm.xlu0 %5564, %v6445_v63  }
 0xfc5   : > { %2727 = vperm.xlu1 %5563, %v2702_v1  }
 0xfc9   : > { %2733 = vperm.xlu1 %5563, %v2704_v23  }
0x1037   : > { %v2719_v25 = vpop.permute.xlu0 %2718 }
0x1038   : > { %v2716_v2 = vpop.permute.xlu1 %2715  ;;  %v2745_v34 = vrot.slane %v2719_v25, %v5986_v51 }
0x1039   : > { %v2741_v21 = vrot.slane %v2716_v2, %v5986_v51 }
0x103b   : > { %v2770_v29 = vsel %vm772_vm11, %v2745_v34, %v2741_v21 }
0x103c   : > { %v2725_v32 = vpop.permute.xlu1 %2724 }
0x103d   : > { %v2753_v30 = vrot.slane %v2725_v32, %v5986_v51 }
0x103f   : > { %v2731_v39 = vpop.permute.xlu0 %2730 }
0x1040   : > { %v2722_v0 = vpop.permute.xlu1 %2721  ;;  %v2761_v44 = vrot.slane %v2731_v39, %v5986_v51 }
0x1041   : > { %v2749_v27 = vrot.slane %v2722_v0, %v5986_v51 }
0x1043   : > { %v2771_v35 = vsel %vm774_vm12, %v2749_v27, %v2770_v29  ;;  %v2737_v57 = vpop.permute.xlu0 %2736 }
0x1044   : > { %v2728_v19 = vpop.permute.xlu1 %2727  ;;  %v2772_v40 = vsel %vm776_vm13, %v2753_v30, %v2771_v35  ;;  %v2769_v53 = vrot.slane %v2737_v57, %v5986_v51 }
0x1045   : > { %v2757_v38 = vrot.slane %v2728_v19, %v5986_v51 }
0x1047   : > { %v2773_v41 = vsel %vm778_vm14, %v2757_v38, %v2772_v40 }
0x1048   : > { %v2734_v48 = vpop.permute.xlu1 %2733  ;;  %v2774_v58 = vsel %vm780_vm15, %v2761_v44, %v2773_v41 }
0x1049   : > { %v2765_v26 = vrot.slane %v2734_v48, %v5986_v51 }
0x104b   : > { %v2775_v54 = vsel %vm782_vm0, %v2765_v26, %v2774_v58 }
0x104c   : > { %v2776_v55 = vsel %vm784_vm2, %v2769_v53, %v2775_v54 }
0x104d   : > { %v2778_v56 = vsel %vm787_vm3, %v2776_v55, -inf }
0x104e   : > { %2779 = vmax.xlane.f32.xlu1 %v2778_v56 }
0x10db   : > { %v2780_v5 = vpop.xlane.xlu1 %2779 }
0x10dc   : > { %v2785_v47 = vrot.slane %v2780_v5, %v5832_v15  ;;  %v2789_v36 = vrot.slane %v2780_v5, %v5837_v16  ;;  %v2793_v61 = vrot.slane %v2780_v5, %v5849_v20  ;;  %v2797_v2 = vrot.slane %v2780_v5, %v5868_v28 }
0x10dd   : > { %v2801_v34 = vrot.slane %v2780_v5, %v5858_v24  ;;  %v2805_v39 = vrot.slane %v2780_v5, %v5875_v33  ;;  %v2813_v19 = vrot.slane %v2780_v5, %v5924_v3 }
0x10de   : > { %v2822_v31 = vsub.f32 %v2698_v52, %v2785_v47  ;;  %v2823_v42 = vsub.f32 %v2699_v45, %v2789_v36  ;;  %v2824_v25 = vsub.f32 %v2700_v6, %v2793_v61  ;;  %v2825_v21 = vsub.f32 %v2701_v43, %v2797_v2 }
0x10df   : > { %v2826_v27 = vsub.f32 %v2702_v1, %v2801_v34  ;;  %v2809_v45 = vrot.slane %v2780_v5, %v5927_v4  ;;  %v2827_v52 = vsub.f32 %v2703_v37, %v2805_v39  ;;  %v2829_v1 = vsub.f32 %v6445_v63, %v2813_v19 }
0x10e0   : > { %v2830_v17 = vmul.f32 1.442695, %v2822_v31  ;;  %v2832_v32 = vmul.f32 1.442695, %v2823_v42  ;;  %v2834_v0 = vmul.f32 1.442695, %v2824_v25 }
0x10e1   : > { %v2836_v29 = vmul.f32 1.442695, %v2825_v21  ;;  %v2838_v30 = vmul.f32 1.442695, %v2826_v27  ;;  %v2828_v38 = vsub.f32 %v2704_v23, %v2809_v45  ;;  %v2840_v43 = vmul.f32 1.442695, %v2827_v52 }
0x10e2   : > { %5602 = vpow2.f32 %v2830_v17  ;;  %v2844_v44 = vmul.f32 1.442695, %v2829_v1 }
0x10e3   : > { %5604 = vpow2.f32 %v2832_v32  ;;  %v2842_v57 = vmul.f32 1.442695, %v2828_v38 }
0x10e4   : > { %5606 = vpow2.f32 %v2834_v0 }
0x10e5   : > { %5608 = vpow2.f32 %v2836_v29 }
0x10e6   : > { %5610 = vpow2.f32 %v2838_v30 }
0x10e7   : > { %5612 = vpow2.f32 %v2840_v43 }
0x10e8   : > { %5614 = vpow2.f32 %v2842_v57 }
0x10e9   : > { %5616 = vpow2.f32 %v2844_v44 }
0x10ec   : > { %v5603_v35 = vpop.eup %5602 }
0x10ed   : > { %2855 = vperm.xlu0 %5564, %v5603_v35   ;;  %v5605_v6 = vpop.eup %5604 }
0x10ee   : > { %v5607_v40 = vpop.eup %5606 }
0x10ef   : > { %v5609_v41 = vpop.eup %5608 }
0x10f0   : > { %v5611_v37 = vpop.eup %5610 }
0x10f1   : > { %2858 = vperm.xlu0 %5564, %v5605_v6   ;;  %v5613_v48 = vpop.eup %5612 }
0x10f2   : > { %v5615_v26 = vpop.eup %5614 }
0x10f3   : > { %v5617_v23 = vpop.eup %5616 }
0x10f5   : > { %2861 = vperm.xlu0 %5564, %v5607_v40  }
0x10f9   : > { %2864 = vperm.xlu0 %5564, %v5609_v41  }
0x10fd   : > { %2867 = vperm.xlu0 %5564, %v5611_v37  }
0x1101   : > { %2870 = vperm.xlu0 %5564, %v5613_v48  }
0x1105   : > { %2873 = vperm.xlu0 %5564, %v5615_v26  }
0x1109   : > { %2876 = vperm.xlu0 %5564, %v5617_v23  }
0x116c   : > { %v2856_v53 = vpop.permute.xlu0 %2855 }
0x116d   : > { %v2881_v36 = vrot.slane %v2856_v53, %v5986_v51 }
0x1170   : > { %v2859_v58 = vpop.permute.xlu0 %2858 }
0x1171   : > { %v2885_v5 = vrot.slane %v2859_v58, %v5986_v51 }
0x1173   : > { %v2910_v17 = vsel %vm772_vm11, %v2885_v5, %v2881_v36 }
0x1174   : > { %v2862_v54 = vpop.permute.xlu0 %2861 }
0x1175   : > { %v2889_v47 = vrot.slane %v2862_v54, %v5986_v51 }
0x1177   : > { %v2911_v25 = vsel %vm774_vm12, %v2889_v47, %v2910_v17 }
0x1178   : > { %v2865_v55 = vpop.permute.xlu0 %2864 }
0x1179   : > { %v2893_v61 = vrot.slane %v2865_v55, %v5986_v51 }
0x117b   : > { %v2912_v34 = vsel %vm776_vm13, %v2893_v61, %v2911_v25 }
0x117c   : > { %v2868_v63 = vpop.permute.xlu0 %2867 }
0x117d   : > { %v2897_v31 = vrot.slane %v2868_v63, %v5986_v51 }
0x117f   : > { %v2913_v21 = vsel %vm778_vm14, %v2897_v31, %v2912_v34 }
0x1180   : > { %v2871_v56 = vpop.permute.xlu0 %2870 }
0x1181   : > { %v2901_v2 = vrot.slane %v2871_v56, %v5986_v51 }
0x1183   : > { %v2914_v39 = vsel %vm780_vm15, %v2901_v2, %v2913_v21 }
0x1184   : > { %v2874_v42 = vpop.permute.xlu0 %2873 }
0x1185   : > { %v2905_v32 = vrot.slane %v2874_v42, %v5986_v51 }
0x1187   : > { %v2915_v29 = vsel %vm782_vm0, %v2905_v32, %v2914_v39 }
0x1188   : > { %v2877_v0 = vpop.permute.xlu0 %2876 }
0x1189   : > { %v2909_v27 = vrot.slane %v2877_v0, %v5986_v51 }
0x118b   : > { %v2916_v45 = vsel %vm784_vm2, %v2909_v27, %v2915_v29  ;;  %v4837_v27 = vld [vmem:[%s6908_s6 + $0x60] sm:$0xff]  ;;  %v4838_v29 = vld [vmem:[%s6908_s6 + $0x68] sm:$0xff] }
0x118c   : > { %v2918_v52 = vsel %vm787_vm3, %v2916_v45, 0.0 }
0x118d   : > { %2919 = vadd.xlane.f32.xlu0 %v2918_v52 }
0x121a   : > { %v2920_v30 = vpop.xlane.xlu0 %2919 }
0x121b   : > { %5618 = vrcp.f32 %v2920_v30 }
0x1225   : > { %v5619_v19 = vpop.eup %5618 }
0x1226   : > { %v2942_v38 = vrot.slane %v5619_v19, %v5858_v24  ;;  %v2926_v43 = vrot.slane %v5619_v19, %v5832_v15  ;;  %v2930_v44 = vrot.slane %v5619_v19, %v5837_v16  ;;  %v2934_v58 = vrot.slane %v5619_v19, %v5849_v20 }
0x1227   : > { %v2938_v55 = vrot.slane %v5619_v19, %v5868_v28  ;;  %v2946_v56 = vrot.slane %v5619_v19, %v5875_v33  ;;  %v2954_v47 = vrot.slane %v5619_v19, %v5924_v3 }
0x1228   : > { %v2967_v1 = vmul.f32 %v5611_v37, %v2942_v38  ;;  %v2963_v57 = vmul.f32 %v5603_v35, %v2926_v43  ;;  %v2964_v53 = vmul.f32 %v5605_v6, %v2930_v44  ;;  %v2965_v54 = vmul.f32 %v5607_v40, %v2934_v58  ;;  %v4841_v58 = vld [vmem:[%s6908_s6 + $0x80] sm:$0xff] }
0x1229   : > { %v2966_v63 = vmul.f32 %v5609_v41, %v2938_v55  ;;  %v2968_v5 = vmul.f32 %v5613_v48, %v2946_v56  ;;  %v2950_v37 = vrot.slane %v5619_v19, %v5927_v4  ;;  %v2970_v6 = vmul.f32 %v5617_v23, %v2954_v47 }
0x122a   : > { %2992 = vperm.xlu0 %5564, %v2967_v1   ;;  %2980 = vperm.xlu1 %5563, %v2963_v57   ;;  %v5444_v38 = vpack.c.bf16 %v4838_v29, %v4837_v27  ;;  %v4839_v1 = vld [vmem:[%s6908_s6 + $0x70] sm:$0xff]  ;;  %v4840_v57 = vld [vmem:[%s6908_s6 + $0x78] sm:$0xff] }
0x122b   : > { %v2969_v35 = vmul.f32 %v5615_v26, %v2950_v37 }
0x122e   : > { %2983 = vperm.xlu1 %5563, %v2964_v53   ;;  %v5447_v53 = vpack.c.bf16 %v4840_v57, %v4839_v1 }
0x1232   : > { %2986 = vperm.xlu1 %5563, %v2965_v54   ;;  %v4842_v54 = vld [vmem:[%s6908_s6 + $0x88] sm:$0xff] }
0x1233   : > { %v5450_v55 = vpack.c.bf16 %v4842_v54, %v4841_v58 }
0x1236   : > { %2989 = vperm.xlu1 %5563, %v2966_v63  }
0x123a   : > { %2995 = vperm.xlu1 %5563, %v2968_v5   ;;  %v3285_v5 = vadd.s32 32, %v5826_v11 }
0x123c   : > { %vm3286_vm6 = vcmp.eq.s32.totalorder %v5828_v12, %v3285_v5 }
0x123e   : > { %2998 = vperm.xlu1 %5563, %v2969_v35   ;;  %v4846_v35 = vld [vmem:[%s6909_s7 + $0x2] ss:$0 sm:$0xff] }
0x1242   : > { %3001 = vperm.xlu1 %5563, %v2970_v6  }
0x12a9   : > { %v2981_v36 = vpop.permute.xlu1 %2980  ;;  %v2993_v25 = vpop.permute.xlu0 %2992 }
0x12aa   : > { %v3006_v48 = vrot.slane %v2981_v36, %v5986_v51  ;;  %v3022_v0 = vrot.slane %v2993_v25, %v5986_v51  ;;  %v4855_v25 = vld [vmem:[%s6903_s1 + $0xb8] sm:$0xff] }
0x12ad   : > { %v2984_v61 = vpop.permute.xlu1 %2983 }
0x12ae   : > { %v3010_v42 = vrot.slane %v2984_v61, %v5986_v51 }
0x12b0   : > { %v3035_v26 = vsel %vm772_vm11, %v3010_v42, %v3006_v48  ;;  %v4851_v42 = vld [vmem:[%s6903_s1 + $0x98] sm:$0xff]  ;;  %v4854_v48 = vld [vmem:[%s6903_s1 + $0xb0] sm:$0xff] }
0x12b1   : > { %v2987_v40 = vpop.permute.xlu1 %2986 }
0x12b2   : > { %v3014_v41 = vrot.slane %v2987_v40, %v5986_v51 }
0x12b4   : > { %v3036_v32 = vsel %vm774_vm12, %v3014_v41, %v3035_v26  ;;  %v5469_v26 = vpack.c.bf16 %v4855_v25, %v4854_v48  ;;  %v4875_v25 = vld [vmem:[%s6907_s5 + $0xb0] sm:$0xff] }
0x12b5   : > { %v2990_v31 = vpop.permute.xlu1 %2989 }
0x12b6   : > { %v3018_v2 = vrot.slane %v2990_v31, %v5986_v51  ;;  %v4850_v31 = vld [vmem:[%s6903_s1 + $0x90] sm:$0xff] }
0x12b7   : > { %v5461_v41 = vpack.c.bf16 %v4851_v42, %v4850_v31 }
0x12b8   : > { %v3037_v34 = vsel %vm776_vm13, %v3018_v2, %v3036_v32 }
0x12b9   : > { %v2996_v17 = vpop.permute.xlu1 %2995  ;;  %v3038_v45 = vsel %vm778_vm14, %v3022_v0, %v3037_v34 }
0x12ba   : > { %v3026_v21 = vrot.slane %v2996_v17, %v5986_v51  ;;  %v4853_v17 = vld [vmem:[%s6903_s1 + $0xa8] sm:$0xff] }
0x12bc   : > { %v3039_v30 = vsel %vm780_vm15, %v3026_v21, %v3038_v45 }
0x12bd   : > { %v2999_v23 = vpop.permute.xlu1 %2998 }
0x12be   : > { %v3030_v39 = vrot.slane %v2999_v23, %v5986_v51 }
0x12c0   : > { %v3040_v43 = vsel %vm782_vm0, %v3030_v39, %v3039_v30 }
0x12c1   : > { %v3002_v52 = vpop.permute.xlu1 %3001 }
0x12c2   : > { %v3034_v19 = vrot.slane %v3002_v52, %v5986_v51 }
0x12c4   : > { %v3041_v44 = vsel %vm784_vm2, %v3034_v19, %v3040_v43 }
0x12c5   : > { %5225 = vmatmul.mubr.msk.f32.vlgmr.msra.gmra.mrb[18].mxu1 %vm787_vm3, %v3041_v44  ;;  %v4871_v44 = vld [vmem:[%s6907_s5 + $0x90] sm:$0xff] }
0x12c6   : > { %5445 = vmatpush3.bf16.msra.mxu1 %v5444_v38  ;;  %5239 = vmatprep.mubr.msk.f32.mxu1 %vm5709_vm5, %v5707_v13 }
0x12c7   : > { %5446 = vmatprep.subr.bf16.mxu1 %v5710_v62 }
0x12ca   : > { %5448 = vmatpush3.bf16.msra.mxu1 %v5447_v53  ;;  %v4872_v53 = vld [vmem:[%s6907_s5 + $0x98] sm:$0xff] }
0x12cb   : > { %5449 = vmatprep.subr.bf16.mxu1 %v5710_v62 }
0x12ce   : > { %5451 = vmatpush3.bf16.msra.mxu1 %v5450_v55 }
0x12cf   : > { %5257 = vmatprep.subr.mxu1 %v5707_v13 }
0x1398   : > { %v3110_v63 = vpop.f32.mrb[18].mxu1 }
0x1399   : > { %v5226_v56 = vpop.f32.mrb[19].mxu1  ;;  %5240 = vmatmul.mubr.msk.f32.vlgmr.msra.gmra.mrb[20].mxu1 %vm426_vm1, %v3110_v63 }
0x139a   : > { %5259 = vmatprep.mubr.msk.f32.mxu1 %vm5709_vm5, %v5707_v13  ;;  %5258 = vmatpush3.msk.msra.mxu1 %vm3286_vm6, %v5711_v50 }
0x139b   : > { %5462 = vmatprep.subr.bf16.mxu1 %v5461_v41 }
0x146c   : > { %v3197_v37 = vpop.f32.mrb[20].mxu1 }
0x146d   : > { %v3270_v47 = vadd.f32 %v6430_v59, %v3197_v37  ;;  %v5241_v6 = vpop.f32.mrb[21].mxu1  ;;  %v4852_v59 = vld [vmem:[%s6903_s1 + $0xa0] sm:$0xff] }
0x146e   : > { %v5465_v2 = vpack.c.bf16 %v4853_v17, %v4852_v59 }
0x146f   : > { %v3281_v36 = vadd.f32 %v4846_v35, %v3270_v47  ;;  %v5483_v35 = vpack.c.bf16 %v4872_v53, %v4871_v44 }
0x1471   : > { %vm3282_vm7 = vcmp.gt.f32.partialorder %v3281_v36, 0.0  ;;  %v3283_v61 = vmul.f32 0.01, %v3281_v36 }
0x1473   : > { %v3284_v40 = vsel %vm3282_vm7, %v3281_v36, %v3283_v61 }
0x1474   : > { %5260 = vmatmul.mubr.msk.f32.vlgmr.msra.gmra.mrb[22].mxu1 %vm787_vm3, %v3284_v40  ;;  %v4874_v40 = vld [vmem:[%s6907_s5 + $0xa8] sm:$0xff] }
0x1475   : > { %5464 = vmatpush3.bf16.msra.mxu1 %v5461_v41 }
0x1476   : > { %5466 = vmatprep.subr.bf16.mxu1 %v5465_v2 }
0x1479   : > { %5468 = vmatpush3.bf16.msra.mxu1 %v5465_v2 }
0x147a   : > { %5470 = vmatprep.subr.bf16.mxu1 %v5469_v26 }
0x147d   : > { %5472 = vmatpush3.bf16.msra.mxu1 %v5469_v26  ;;  %v4876_v26 = vld [vmem:[%s6907_s5 + $0xb8] sm:$0xff] }
0x147e   : > { %5482 = vmatprep.subr.bf16.mxu1 %v5710_v62 }
0x1547   : > { %v3359_v32 = vpop.f32.mrb[22].mxu1 }
0x1548   : > { %v6569_v23 = vadd.f32 %v3359_v32, %v6356_v60  ;;  %v5261_v34 = vpop.f32.mrb[23].mxu1 }
0x154a   : > { %5287 = vmatpush3.msra.mxu0 %v6569_v23  ;;  %v3372_v21 = vrot.slane %v6569_v23, %v5843_v18  ;;  %v3365_v0 = vcombine.high %v6569_v23, %v6569_v23 }
0x154b   : > { %5473 = vmatprep.subr.bf16.mxu0 %v5710_v62 }
0x154c   : > { %v3380_v39 = vcombine.high %v3372_v21, %v3372_v21  ;;  %v3388_v27 = vrot.slane %v3372_v21, %v5843_v18  ;;  %v3379_v29 = vrot.slane %v3365_v0, %v5843_v18  ;;  %v5489_v21 = vpack.c.bf16 %v4876_v26, %v4875_v25 }
0x154e   : > { %v3417_v45 = vrot.slane %v3388_v27, %v5832_v15  ;;  %v3402_v60 = vrot.slane %v3380_v39, %v5843_v18  ;;  %v3410_v52 = vcombine.high %v3388_v27, %v3388_v27  ;;  %v3395_v30 = vrot.slane %v3379_v29, %v5843_v18 }
0x154f   : > { %v3381_v19 = vcombine.high %v3379_v29, %v3379_v29 }
0x1550   : > { %v3454_v38 = vsub.f32 %v3417_v45, %v6569_v23  ;;  %v3421_v43 = vrot.slane %v3402_v60, %v5832_v15  ;;  %v3425_v1 = vrot.slane %v3410_v52, %v5832_v15  ;;  %v3412_v57 = vcombine.high %v3402_v60, %v3402_v60  ;;  %v4857_v45 = vld [vmem:[%s6904_s2 + $0x3] ss:$0 sm:$0xff] }
0x1551   : > { %v3433_v58 = vrot.slane %v3395_v30, %v5832_v15  ;;  %v3409_v54 = vrot.slane %v3381_v19, %v5843_v18  ;;  %v3411_v55 = vcombine.high %v3395_v30, %v3395_v30  ;;  %v4873_v18 = vld [vmem:[%s6907_s5 + $0xa0] sm:$0xff] }
0x1552   : > { %v3462_v63 = vand.u32 2147483647, %v3454_v38  ;;  %v3455_v56 = vsub.f32 %v3421_v43, %v6569_v23  ;;  %v3456_v5 = vsub.f32 %v3425_v1, %v6569_v23  ;;  %v3429_v37 = vrot.slane %v3412_v57, %v5832_v15  ;;  %v4867_v43 = vld [vmem:[%s6905_s3 + $0x3] ss:$0 sm:$0xff] }
0x1553   : > { %v3437_v47 = vrot.slane %v3409_v54, %v5832_v15  ;;  %v3413_v31 = vcombine.high %v3409_v54, %v3409_v54  ;;  %v3458_v42 = vsub.f32 %v3433_v58, %v6569_v23  ;;  %v3441_v41 = vrot.slane %v3411_v55, %v5832_v15 }
0x1554   : > { %5274 = vmatprep.mubr.msk.f32.mxu1 %vm426_vm1, %v3462_v63  ;;  %v3463_v6 = vand.u32 2147483647, %v3455_v56  ;;  %v3464_v36 = vand.u32 2147483647, %v3456_v5  ;;  %v3457_v61 = vsub.f32 %v3429_v37, %v6569_v23  ;;  %v5486_v59 = vpack.c.bf16 %v4874_v40, %v4873_v18 }
0x1555   : > { %v3459_v48 = vsub.f32 %v3437_v47, %v6569_v23  ;;  %v3445_v2 = vrot.slane %v3413_v31, %v5832_v15  ;;  %v3466_v32 = vand.u32 2147483647, %v3458_v42  ;;  %v3460_v34 = vsub.f32 %v3441_v41, %v6569_v23 }
0x1556   : > { %5275 = vmatmul.mubr.msk.f32.vlgmr.msra.gmra.mrb[24].mxu1 %vm426_vm1, %v3463_v6  ;;  %v3465_v17 = vand.u32 2147483647, %v3457_v61 }
0x1557   : > { %5277 = vmatprep.mubr.msk.f32.mxu1 %vm426_vm1, %v3464_v36  ;;  %5484 = vmatpush3.bf16.msra.mxu1 %v5483_v35  ;;  %v3467_v0 = vand.u32 2147483647, %v3459_v48  ;;  %v3461_v39 = vsub.f32 %v3445_v2, %v6569_v23  ;;  %v3468_v27 = vand.u32 2147483647, %v3460_v34 }
0x1558   : > { %5485 = vmatprep.subr.bf16.mxu1 %v5710_v62 }
0x1559   : > { %v3469_v29 = vand.u32 2147483647, %v3461_v39 }
0x155a   : > { %5278 = vmatmul.mubr.msk.f32.gmra.mrb[26].mxu1 %vm426_vm1, %v3465_v17 }
0x155b   : > { %5280 = vmatprep.mubr.msk.f32.mxu1 %vm426_vm1, %v3466_v32  ;;  %5487 = vmatpush3.bf16.msra.mxu1 %v5486_v59 }
0x155c   : > { %5488 = vmatprep.subr.bf16.mxu1 %v5710_v62 }
0x155e   : > { %5281 = vmatmul.mubr.msk.f32.gmra.mrb[28].mxu1 %vm426_vm1, %v3467_v0 }
0x155f   : > { %5283 = vmatprep.mubr.msk.f32.mxu1 %vm426_vm1, %v3468_v27  ;;  %5490 = vmatpush3.bf16.msra.mxu1 %v5489_v21 }
0x1560   : > { %5500 = vmatprep.subr.bf16.mxu1 %v5710_v62 }
0x1562   : > { %5284 = vmatmul.mubr.msk.f32.gmra.mrb[30].mxu1 %vm426_vm1, %v3469_v29 }
0x1563   : > { %5318 = vmatprep.mubr.msk.f32.mxu1 %vm5709_vm5, %v5707_v13 }
0x1566   : > { %5319 = vmatmul.mubr.msk.f32.vlgmr.msra.gmra.mrb[32].mxu1 %vm426_vm1, %v6569_v23 }
0x1567   : > { %5353 = vmatprep.mubr.msk.f32.mxu1 %vm5709_vm5, %v5707_v13 }
0x1629   : > { %v5276_v60 = vpop.f32.mrb[24].mxu1 }
0x162a   : > { %v3581_v52 = vadd.f32 %v5276_v60, %v4857_v45  ;;  %v3575_v30 = vpop.f32.mrb[25].mxu1 }
0x162b   : > { %v3576_v19 = vadd.f32 %v4857_v45, %v3575_v30 }
0x162c   : > { %vm3615_vm8 = vcmp.gt.f32.partialorder %v3581_v52, 0.0  ;;  %v3623_v38 = vmul.f32 0.01, %v3581_v52 }
0x162d   : > { %vm3614_vm9 = vcmp.gt.f32.partialorder %v3576_v19, 0.0  ;;  %v3622_v1 = vmul.f32 0.01, %v3576_v19  ;;  %v5279_v57 = vpop.f32.mrb[26].mxu1 }
0x162e   : > { %v3591_v44 = vadd.f32 %v5279_v57, %v4857_v45  ;;  %v3585_v53 = vpop.f32.mrb[27].mxu1  ;;  %v3631_v58 = vsel %vm3615_vm8, %v3581_v52, %v3623_v38 }
0x162f   : > { %v3586_v54 = vadd.f32 %v4857_v45, %v3585_v53  ;;  %v3647_v55 = vmul.f32 %v4867_v43, %v3631_v58  ;;  %v3630_v63 = vsel %vm3614_vm9, %v3576_v19, %v3622_v1 }
0x1630   : > { %vm3617_vm10 = vcmp.gt.f32.partialorder %v3591_v44, 0.0  ;;  %v3625_v56 = vmul.f32 0.01, %v3591_v44  ;;  %v3646_v5 = vmul.f32 %v4867_v43, %v3630_v63 }
0x1631   : > { %vm3616_vm6 = vcmp.gt.f32.partialorder %v3586_v54, 0.0  ;;  %v3624_v37 = vmul.f32 0.01, %v3586_v54  ;;  %v5282_v35 = vpop.f32.mrb[28].mxu1  ;;  %v3657_v47 = vsel %vm595_vm4, %v3647_v55, 0.0 }
0x1632   : > { %v3601_v6 = vadd.f32 %v5282_v35, %v4857_v45  ;;  %3658 = vadd.xlane.f32.xlu0 %v3657_v47  ;;  %v3595_v36 = vpop.f32.mrb[29].mxu1  ;;  %v3654_v61 = vsel %vm595_vm4, %v3646_v5, 0.0  ;;  %v3633_v18 = vsel %vm3617_vm10, %v3591_v44, %v3625_v56 }
0x1633   : > { %v3596_v40 = vadd.f32 %v4857_v45, %v3595_v36  ;;  %3655 = vadd.xlane.f32.xlu1 %v3654_v61  ;;  %v3649_v31 = vmul.f32 %v4867_v43, %v3633_v18  ;;  %v3632_v42 = vsel %vm3616_vm6, %v3586_v54, %v3624_v37  ;;  %v4869_v54 = vld [vmem:[%s6906_s4 + $0x3] ss:$0 sm:$0xff] }
0x1634   : > { %vm3619_vm7 = vcmp.gt.f32.partialorder %v3601_v6, 0.0  ;;  %v3627_v41 = vmul.f32 0.01, %v3601_v6  ;;  %v3648_v59 = vmul.f32 %v4867_v43, %v3632_v42 }
0x1635   : > { %vm3618_vm8 = vcmp.gt.f32.partialorder %v3596_v40, 0.0  ;;  %v3626_v17 = vmul.f32 0.01, %v3596_v40  ;;  %v5285_v48 = vpop.f32.mrb[30].mxu1  ;;  %v3663_v2 = vsel %vm595_vm4, %v3649_v31, 0.0 }
0x1636   : > { %v3611_v25 = vadd.f32 %v5285_v48, %v4857_v45  ;;  %3664 = vadd.xlane.f32.xlu0 %v3663_v2  ;;  %v3605_v26 = vpop.f32.mrb[31].mxu1  ;;  %v3660_v32 = vsel %vm595_vm4, %v3648_v59, 0.0  ;;  %v3635_v34 = vsel %vm3619_vm7, %v3601_v6, %v3627_v41 }
0x1637   : > { %v3606_v21 = vadd.f32 %v4857_v45, %v3605_v26  ;;  %3661 = vadd.xlane.f32.xlu1 %v3660_v32  ;;  %v3651_v0 = vmul.f32 %v4867_v43, %v3635_v34  ;;  %v3634_v39 = vsel %vm3618_vm8, %v3596_v40, %v3626_v17 }
0x1638   : > { %vm3621_vm9 = vcmp.gt.f32.partialorder %v3611_v25, 0.0  ;;  %v3629_v27 = vmul.f32 0.01, %v3611_v25  ;;  %v3650_v29 = vmul.f32 %v4867_v43, %v3634_v39 }
0x1639   : > { %vm3620_vm10 = vcmp.gt.f32.partialorder %v3606_v21, 0.0  ;;  %v3628_v60 = vmul.f32 0.01, %v3606_v21  ;;  %v6643_v52 = vpop.f32.mrb[32].mxu1  ;;  %v3669_v30 = vsel %vm595_vm4, %v3651_v0, 0.0 }
0x163a   : > { %3670 = vadd.xlane.f32.xlu0 %v3669_v30  ;;  %v5320_v19 = vpop.f32.mrb[33].mxu1  ;;  %v3666_v38 = vsel %vm595_vm4, %v3650_v29, 0.0  ;;  %v3637_v1 = vsel %vm3621_vm9, %v3611_v25, %v3629_v27 }
0x163b   : > { %3667 = vadd.xlane.f32.xlu1 %v3666_v38  ;;  %v3653_v57 = vmul.f32 %v4867_v43, %v3637_v1  ;;  %v3636_v45 = vsel %vm3620_vm10, %v3606_v21, %v3628_v60 }
0x163c   : > { %v3652_v44 = vmul.f32 %v4867_v43, %v3636_v45 }
0x163d   : > { %v3675_v53 = vsel %vm595_vm4, %v3653_v57, 0.0 }
0x163e   : > { %3676 = vadd.xlane.f32.xlu0 %v3675_v53  ;;  %v3672_v58 = vsel %vm595_vm4, %v3652_v44, 0.0 }
0x163f   : > { %3673 = vadd.xlane.f32.xlu1 %v3672_v58 }
0x16bf   : > { %v3659_v55 = vpop.xlane.xlu0 %3658 }
0x16c0   : > { %v3687_v63 = vadd.f32 %v4869_v54, %v3659_v55  ;;  %v3656_v56 = vpop.xlane.xlu1 %3655 }
0x16c1   : > { %v3686_v5 = vadd.f32 %v4869_v54, %v3656_v56 }
0x16c2   : > { %v3695_v37 = vsub.f32 %v3687_v63, %v5933_v7 }
0x16c3   : > { %v3694_v35 = vsub.f32 %v3686_v5, %v5937_v9  ;;  %v3665_v47 = vpop.xlane.xlu0 %3664 }
0x16c4   : > { %v3689_v43 = vadd.f32 %v4869_v54, %v3665_v47  ;;  %3714 = vperm.xlu0 %5564, %v3695_v37   ;;  %v3662_v6 = vpop.xlane.xlu1 %3661 }
0x16c5   : > { %3711 = vperm.xlu1 %5563, %v3694_v35   ;;  %v3688_v61 = vadd.f32 %v4869_v54, %v3662_v6 }
0x16c6   : > { %v3697_v36 = vsub.f32 %v3689_v43, %v5939_v10 }
0x16c7   : > { %v3671_v18 = vpop.xlane.xlu0 %3670  ;;  %v3696_v41 = vsub.f32 %v3688_v61, %v5935_v8 }
0x16c8   : > { %v3691_v40 = vadd.f32 %v4869_v54, %v3671_v18  ;;  %v3668_v31 = vpop.xlane.xlu1 %3667 }
0x16c9   : > { %3720 = vperm.xlu1 %5563, %v3697_v36   ;;  %v3690_v59 = vadd.f32 %v4869_v54, %v3668_v31 }
0x16ca   : > { %v3699_v42 = vsub.f32 %v3691_v40, %v5946_v22 }
0x16cb   : > { %v3677_v7 = vpop.xlane.xlu0 %3676  ;;  %v3698_v10 = vsub.f32 %v3690_v59, %v5941_v14 }
0x16cc   : > { %v3693_v17 = vadd.f32 %v4869_v54, %v3677_v7  ;;  %3726 = vperm.xlu0 %5564, %v3699_v42   ;;  %v3674_v9 = vpop.xlane.xlu1 %3673 }
0x16cd   : > { %3717 = vperm.xlu1 %5563, %v3696_v41   ;;  %v3692_v2 = vadd.f32 %v4869_v54, %v3674_v9 }
0x16ce   : > { %v6658_v48 = vsub.f32 %v3693_v17, %v5977_v49 }
0x16cf   : > { %v3700_v25 = vsub.f32 %v3692_v2, %v5972_v46 }
0x16d0   : > { %3732 = vperm.xlu0 %5564, %v6658_v48  }
0x16d1   : > { %3723 = vperm.xlu1 %5563, %v3698_v10  }
0x16d5   : > { %3729 = vperm.xlu1 %5563, %v3700_v25  }
0x1743   : > { %v3715_v8 = vpop.permute.xlu0 %3714 }
0x1744   : > { %v3712_v22 = vpop.permute.xlu1 %3711  ;;  %v3741_v32 = vrot.slane %v3715_v8, %v5986_v51 }
0x1745   : > { %v3737_v34 = vrot.slane %v3712_v22, %v5986_v51 }
0x1747   : > { %v3766_v14 = vsel %vm772_vm11, %v3741_v32, %v3737_v34 }
0x1748   : > { %v3721_v26 = vpop.permute.xlu1 %3720 }
0x1749   : > { %v3749_v27 = vrot.slane %v3721_v26, %v5986_v51 }
0x174b   : > { %v3727_v0 = vpop.permute.xlu0 %3726 }
0x174c   : > { %v3718_v21 = vpop.permute.xlu1 %3717  ;;  %v3757_v38 = vrot.slane %v3727_v0, %v5986_v51 }
0x174d   : > { %v3745_v49 = vrot.slane %v3718_v21, %v5986_v51 }
0x174f   : > { %v3767_v39 = vsel %vm774_vm12, %v3745_v49, %v3766_v14  ;;  %v3733_v30 = vpop.permute.xlu0 %3732 }
0x1750   : > { %v3724_v29 = vpop.permute.xlu1 %3723  ;;  %v3768_v60 = vsel %vm776_vm13, %v3749_v27, %v3767_v39  ;;  %v3765_v45 = vrot.slane %v3733_v30, %v5986_v51 }
0x1751   : > { %v3753_v46 = vrot.slane %v3724_v29, %v5986_v51 }
0x1753   : > { %v3769_v19 = vsel %vm778_vm14, %v3753_v46, %v3768_v60 }
0x1754   : > { %v3730_v1 = vpop.permute.xlu1 %3729  ;;  %v3770_v44 = vsel %vm780_vm15, %v3757_v38, %v3769_v19 }
0x1755   : > { %v3761_v57 = vrot.slane %v3730_v1, %v5986_v51 }
0x1757   : > { %v3771_v53 = vsel %vm782_vm0, %v3761_v57, %v3770_v44 }
0x1758   : > { %v3772_v58 = vsel %vm784_vm2, %v3765_v45, %v3771_v53 }
0x1759   : > { %v3774_v54 = vsel %vm787_vm3, %v3772_v58, -inf }
0x175a   : > { %3775 = vmax.xlane.f32.xlu1 %v3774_v54 }
0x17e7   : > { %v3776_v55 = vpop.xlane.xlu1 %3775 }
0x17e8   : > { %v3781_v63 = vrot.slane %v3776_v55, %v5832_v15  ;;  %v3785_v56 = vrot.slane %v3776_v55, %v5837_v16  ;;  %v3789_v5 = vrot.slane %v3776_v55, %v5849_v20  ;;  %v3793_v61 = vrot.slane %v3776_v55, %v5868_v28 }
0x17e9   : > { %v3797_v31 = vrot.slane %v3776_v55, %v5858_v24  ;;  %v3801_v17 = vrot.slane %v3776_v55, %v5875_v33  ;;  %v3809_v26 = vrot.slane %v3776_v55, %v5924_v3 }
0x17ea   : > { %v3818_v47 = vsub.f32 %v3694_v35, %v3781_v63  ;;  %v3819_v43 = vsub.f32 %v3695_v37, %v3785_v56  ;;  %v3820_v18 = vsub.f32 %v3696_v41, %v3789_v5  ;;  %v3821_v59 = vsub.f32 %v3697_v36, %v3793_v61 }
0x17eb   : > { %v3822_v9 = vsub.f32 %v3698_v10, %v3797_v31  ;;  %v3805_v37 = vrot.slane %v3776_v55, %v5927_v4  ;;  %v3823_v35 = vsub.f32 %v3699_v42, %v3801_v17  ;;  %v3825_v10 = vsub.f32 %v6658_v48, %v3809_v26 }
0x17ec   : > { %v3826_v6 = vmul.f32 1.442695, %v3818_v47  ;;  %v3828_v40 = vmul.f32 1.442695, %v3819_v43  ;;  %v3830_v7 = vmul.f32 1.442695, %v3820_v18 }
0x17ed   : > { %v3832_v2 = vmul.f32 1.442695, %v3821_v59  ;;  %v3834_v8 = vmul.f32 1.442695, %v3822_v9  ;;  %v3824_v32 = vsub.f32 %v3700_v25, %v3805_v37  ;;  %v3836_v36 = vmul.f32 1.442695, %v3823_v35 }
0x17ee   : > { %5620 = vpow2.f32 %v3826_v6  ;;  %v3840_v49 = vmul.f32 1.442695, %v3825_v10 }
0x17ef   : > { %5622 = vpow2.f32 %v3828_v40  ;;  %v3838_v21 = vmul.f32 1.442695, %v3824_v32 }
0x17f0   : > { %5624 = vpow2.f32 %v3830_v7 }
0x17f1   : > { %5626 = vpow2.f32 %v3832_v2 }
0x17f2   : > { %5628 = vpow2.f32 %v3834_v8 }
0x17f3   : > { %5630 = vpow2.f32 %v3836_v36 }
0x17f4   : > { %5632 = vpow2.f32 %v3838_v21 }
0x17f5   : > { %5634 = vpow2.f32 %v3840_v49 }
0x17f8   : > { %v5621_v22 = vpop.eup %5620 }
0x17f9   : > { %3851 = vperm.xlu0 %5564, %v5621_v22   ;;  %v5623_v41 = vpop.eup %5622 }
0x17fa   : > { %v5625_v34 = vpop.eup %5624 }
0x17fb   : > { %v5627_v0 = vpop.eup %5626 }
0x17fc   : > { %v5629_v42 = vpop.eup %5628 }
0x17fd   : > { %3854 = vperm.xlu0 %5564, %v5623_v41   ;;  %v5631_v14 = vpop.eup %5630 }
0x17fe   : > { %v5633_v39 = vpop.eup %5632 }
0x17ff   : > { %v5635_v25 = vpop.eup %5634 }
0x1801   : > { %3857 = vperm.xlu0 %5564, %v5625_v34  }
0x1805   : > { %3860 = vperm.xlu0 %5564, %v5627_v0  }
0x1809   : > { %3863 = vperm.xlu0 %5564, %v5629_v42  }
0x180d   : > { %3866 = vperm.xlu0 %5564, %v5631_v14  }
0x1811   : > { %3869 = vperm.xlu0 %5564, %v5633_v39  }
0x1815   : > { %3872 = vperm.xlu0 %5564, %v5635_v25  }
0x1878   : > { %v3852_v27 = vpop.permute.xlu0 %3851 }
0x1879   : > { %v3877_v1 = vrot.slane %v3852_v27, %v5986_v51 }
0x187c   : > { %v3855_v29 = vpop.permute.xlu0 %3854 }
0x187d   : > { %v3881_v19 = vrot.slane %v3855_v29, %v5986_v51 }
0x187f   : > { %v3906_v53 = vsel %vm772_vm11, %v3881_v19, %v3877_v1 }
0x1880   : > { %v3858_v46 = vpop.permute.xlu0 %3857 }
0x1881   : > { %v3885_v38 = vrot.slane %v3858_v46, %v5986_v51 }
0x1883   : > { %v3907_v54 = vsel %vm774_vm12, %v3885_v38, %v3906_v53  ;;  %v4879_v53 = vld [vmem:[%s6908_s6 + $0xa0] sm:$0xff] }
0x1884   : > { %v3861_v60 = vpop.permute.xlu0 %3860 }
0x1885   : > { %v3889_v57 = vrot.slane %v3861_v60, %v5986_v51 }
0x1887   : > { %v3908_v63 = vsel %vm776_vm13, %v3889_v57, %v3907_v54 }
0x1888   : > { %v3864_v48 = vpop.permute.xlu0 %3863 }
0x1889   : > { %v3893_v45 = vrot.slane %v3864_v48, %v5986_v51  ;;  %v4877_v48 = vld [vmem:[%s6908_s6 + $0x90] sm:$0xff] }
0x188b   : > { %v3909_v56 = vsel %vm778_vm14, %v3893_v45, %v3908_v63  ;;  %v4882_v63 = vld [vmem:[%s6908_s6 + $0xb8] sm:$0xff] }
0x188c   : > { %v3867_v30 = vpop.permute.xlu0 %3866 }
0x188d   : > { %v3897_v58 = vrot.slane %v3867_v30, %v5986_v51  ;;  %v4878_v30 = vld [vmem:[%s6908_s6 + $0x98] sm:$0xff] }
0x188e   : > { %v5474_v45 = vpack.c.bf16 %v4878_v30, %v4877_v48 }
0x188f   : > { %v3910_v47 = vsel %vm780_vm15, %v3897_v58, %v3909_v56  ;;  %v4880_v58 = vld [vmem:[%s6908_s6 + $0xa8] sm:$0xff] }
0x1890   : > { %v3870_v44 = vpop.permute.xlu0 %3869 }
0x1891   : > { %v3901_v55 = vrot.slane %v3870_v44, %v5986_v51 }
0x1893   : > { %v3911_v6 = vsel %vm782_vm0, %v3901_v55, %v3910_v47  ;;  %v5477_v55 = vpack.c.bf16 %v4880_v58, %v4879_v53 }
0x1894   : > { %v3873_v5 = vpop.permute.xlu0 %3872 }
0x1895   : > { %v3905_v43 = vrot.slane %v3873_v5, %v5986_v51 }
0x1897   : > { %v3912_v61 = vsel %vm784_vm2, %v3905_v43, %v3911_v6  ;;  %v4281_v43 = vadd.s32 40, %v5826_v11 }
0x1898   : > { %v3914_v18 = vsel %vm787_vm3, %v3912_v61, 0.0  ;;  %v4886_v61 = vld [vmem:[%s6909_s7 + $0x3] ss:$0 sm:$0xff] }
0x1899   : > { %3915 = vadd.xlane.f32.xlu0 %v3914_v18 }
0x1926   : > { %v3916_v40 = vpop.xlane.xlu0 %3915 }
0x1927   : > { %5636 = vrcp.f32 %v3916_v40 }
0x1931   : > { %v5637_v31 = vpop.eup %5636 }
0x1932   : > { %v3938_v59 = vrot.slane %v5637_v31, %v5858_v24  ;;  %v3922_v7 = vrot.slane %v5637_v31, %v5832_v15  ;;  %v3926_v2 = vrot.slane %v5637_v31, %v5837_v16  ;;  %v3930_v35 = vrot.slane %v5637_v31, %v5849_v20 }
0x1933   : > { %v3934_v26 = vrot.slane %v5637_v31, %v5868_v28  ;;  %v3942_v36 = vrot.slane %v5637_v31, %v5875_v33  ;;  %v3946_v10 = vrot.slane %v5637_v31, %v5927_v4  ;;  %v3950_v16 = vrot.slane %v5637_v31, %v5924_v3  ;;  %v4890_v31 = vld [vmem:[%s6903_s1 + $0xc0] sm:$0xff] }
0x1934   : > { %v3963_v17 = vmul.f32 %v5629_v42, %v3938_v59  ;;  %v3959_v9 = vmul.f32 %v5621_v22, %v3922_v7  ;;  %v3960_v37 = vmul.f32 %v5623_v41, %v3926_v2  ;;  %v3961_v8 = vmul.f32 %v5625_v34, %v3930_v35  ;;  %v4895_v35 = vld [vmem:[%s6903_s1 + $0xe8] sm:$0xff] }
0x1935   : > { %v3962_v32 = vmul.f32 %v5627_v0, %v3934_v26  ;;  %v3964_v24 = vmul.f32 %v5631_v14, %v3942_v36  ;;  %v3965_v22 = vmul.f32 %v5633_v39, %v3946_v10  ;;  %v3966_v41 = vmul.f32 %v5635_v25, %v3950_v16  ;;  %v4903_v10 = vld [vmem:[%s6907_s5 + $0xc0] sm:$0xff] }
0x1936   : > { %3988 = vperm.xlu0 %5564, %v3963_v17   ;;  %3976 = vperm.xlu1 %5563, %v3959_v9   ;;  %v4893_v9 = vld [vmem:[%s6903_s1 + $0xd8] sm:$0xff] }
0x193a   : > { %3979 = vperm.xlu1 %5563, %v3960_v37   ;;  %v4894_v37 = vld [vmem:[%s6903_s1 + $0xe0] sm:$0xff] }
0x193e   : > { %3982 = vperm.xlu1 %5563, %v3961_v8   ;;  %v5498_v8 = vpack.c.bf16 %v4895_v35, %v4894_v37 }
0x1942   : > { %3985 = vperm.xlu1 %5563, %v3962_v32  }
0x1946   : > { %3991 = vperm.xlu1 %5563, %v3964_v24  }
0x194a   : > { %3994 = vperm.xlu1 %5563, %v3965_v22   ;;  %v4904_v22 = vld [vmem:[%s6907_s5 + $0xc8] sm:$0xff] }
0x194e   : > { %3997 = vperm.xlu1 %5563, %v3966_v41   ;;  %v5510_v41 = vpack.c.bf16 %v4904_v22, %v4903_v10 }
0x19b5   : > { %v3977_v20 = vpop.permute.xlu1 %3976  ;;  %v3989_v14 = vpop.permute.xlu0 %3988 }
0x19b6   : > { %v4002_v42 = vrot.slane %v3977_v20, %v5986_v51  ;;  %v4018_v46 = vrot.slane %v3989_v14, %v5986_v51 }
0x19b9   : > { %v3980_v21 = vpop.permute.xlu1 %3979 }
0x19ba   : > { %v4006_v28 = vrot.slane %v3980_v21, %v5986_v51 }
0x19bc   : > { %v4031_v39 = vsel %vm772_vm11, %v4006_v28, %v4002_v42  ;;  %vm4282_vm11 = vcmp.eq.s32.totalorder %v5828_v12, %v4281_v43  ;;  %v4891_v12 = vld [vmem:[%s6903_s1 + $0xc8] sm:$0xff] }
0x19bd   : > { %v3983_v34 = vpop.permute.xlu1 %3982  ;;  %v5492_v7 = vpack.c.bf16 %v4891_v12, %v4890_v31  ;;  %v4910_v31 = vld [vmem:[%s6908_s6 + $0xc8] sm:$0xff] }
0x19be   : > { %v4010_v0 = vrot.slane %v3983_v34, %v5986_v51  ;;  %v4907_v34 = vld [vmem:[%s6907_s5 + $0xe0] sm:$0xff] }
0x19c0   : > { %v4032_v3 = vsel %vm774_vm12, %v4010_v0, %v4031_v39  ;;  %v4897_v0 = vld [vmem:[%s6904_s2 + $0x4] ss:$0 sm:$0xff] }
0x19c1   : > { %v3986_v49 = vpop.permute.xlu1 %3985  ;;  %v4900_v39 = vld [vmem:[%s6905_s3 + $0x4] ss:$0 sm:$0xff] }
0x19c2   : > { %v4014_v4 = vrot.slane %v3986_v49, %v5986_v51  ;;  %v4908_v49 = vld [vmem:[%s6907_s5 + $0xe8] sm:$0xff] }
0x19c3   : > { %v5516_v28 = vpack.c.bf16 %v4908_v49, %v4907_v34 }
0x19c4   : > { %v4033_v27 = vsel %vm776_vm13, %v4014_v4, %v4032_v3 }
0x19c5   : > { %v3992_v33 = vpop.permute.xlu1 %3991  ;;  %v4034_v19 = vsel %vm778_vm14, %v4018_v46, %v4033_v27  ;;  %vm4478_vm14 = vcmp.eq.s32.totalorder %v5826_v11, 0 }
0x19c6   : > { %v4022_v29 = vrot.slane %v3992_v33, %v5986_v51  ;;  %v4479_v48 = vsel %vm4478_vm14, 1e+08, %v5707_v13 }
0x19c8   : > { %v4035_v1 = vsel %vm780_vm15, %v4022_v29, %v4034_v19  ;;  %vm4481_vm15 = vcmask 7168  }
0x19c9   : > { %v3995_v25 = vpop.permute.xlu1 %3994 }
0x19ca   : > { %v4026_v60 = vrot.slane %v3995_v25, %v5986_v51 }
0x19cc   : > { %v4036_v44 = vsel %vm782_vm0, %v4026_v60, %v4035_v1  ;;  %v4902_v60 = vld [vmem:[%s6906_s4 + $0x4] ss:$0 sm:$0xff] }
0x19cd   : > { %v3998_v38 = vpop.permute.xlu1 %3997 }
0x19ce   : > { %v4030_v57 = vrot.slane %v3998_v38, %v5986_v51  ;;  %v4881_v51 = vld [vmem:[%s6908_s6 + $0xb0] sm:$0xff] }
0x19cf   : > { %v5480_v56 = vpack.c.bf16 %v4882_v63, %v4881_v51 }
0x19d0   : > { %v4037_v54 = vsel %vm784_vm2, %v4030_v57, %v4036_v44 }
0x19d1   : > { %5289 = vmatmul.mubr.msk.f32.vlgmr.msra.gmra.mrb[24].mxu0 %vm787_vm3, %v4037_v54 }
0x19d2   : > { %5475 = vmatpush3.bf16.msra.mxu0 %v5474_v45  ;;  %5303 = vmatprep.mubr.msk.f32.mxu0 %vm5709_vm5, %v5707_v13 }
0x19d3   : > { %5476 = vmatprep.subr.bf16.mxu0 %v5710_v62 }
0x19d6   : > { %5478 = vmatpush3.bf16.msra.mxu0 %v5477_v55 }
0x19d7   : > { %5479 = vmatprep.subr.bf16.mxu0 %v5710_v62 }
0x19da   : > { %5481 = vmatpush3.bf16.msra.mxu0 %v5480_v56 }
0x19db   : > { %5321 = vmatprep.subr.mxu0 %v5707_v13 }
0x1aa4   : > { %v4106_v5 = vpop.f32.mrb[24].mxu0 }
0x1aa5   : > { %v5290_v47 = vpop.f32.mrb[25].mxu0  ;;  %5304 = vmatmul.mubr.msk.f32.vlgmr.msra.gmra.mrb[26].mxu0 %vm426_vm1, %v4106_v5 }
0x1aa6   : > { %5323 = vmatprep.mubr.msk.f32.mxu0 %vm5709_vm5, %v5707_v13  ;;  %5322 = vmatpush3.msk.msra.mxu0 %vm4282_vm11, %v5711_v50 }
0x1aa7   : > { %5491 = vmatprep.subr.bf16.mxu0 %v5710_v62 }
0x1b78   : > { %v4193_v6 = vpop.f32.mrb[26].mxu0 }
0x1b79   : > { %v4266_v18 = vadd.f32 %v6643_v52, %v4193_v6  ;;  %v5305_v40 = vpop.f32.mrb[27].mxu0  ;;  %v4892_v52 = vld [vmem:[%s6903_s1 + $0xd0] sm:$0xff] }
0x1b7a   : > { %v5495_v2 = vpack.c.bf16 %v4893_v9, %v4892_v52  ;;  %v4909_v40 = vld [vmem:[%s6908_s6 + $0xc0] sm:$0xff]  ;;  %v4914_v52 = vld [vmem:[%s6908_s6 + $0xe8] sm:$0xff] }
0x1b7b   : > { %v4277_v59 = vadd.f32 %v4886_v61, %v4266_v18  ;;  %v5501_v12 = vpack.c.bf16 %v4910_v31, %v4909_v40 }
0x1b7d   : > { %vm4278_vm12 = vcmp.gt.f32.partialorder %v4277_v59, 0.0  ;;  %v4279_v50 = vmul.f32 0.01, %v4277_v59  ;;  %5502 = vmatpush3.bf16.msra.mxu1 %v5501_v12 }
0x1b7e   : > { %5503 = vmatprep.subr.bf16.mxu1 %v5710_v62 }
0x1b7f   : > { %v4280_v17 = vsel %vm4278_vm12, %v4277_v59, %v4279_v50  ;;  %v4911_v59 = vld [vmem:[%s6908_s6 + $0xd0] sm:$0xff]  ;;  %v4912_v50 = vld [vmem:[%s6908_s6 + $0xd8] sm:$0xff] }
0x1b80   : > { %5324 = vmatmul.mubr.msk.f32.vlgmr.msra.gmra.mrb[28].mxu0 %vm787_vm3, %v4280_v17  ;;  %v4913_v17 = vld [vmem:[%s6908_s6 + $0xe0] sm:$0xff] }
0x1b81   : > { %5493 = vmatpush3.bf16.msra.mxu0 %v5492_v7  ;;  %5338 = vmatprep.mubr.msk.f32.mxu0 %vm5709_vm5, %v5707_v13  ;;  %v5504_v7 = vpack.c.bf16 %v4912_v50, %v4911_v59  ;;  %v5507_v9 = vpack.c.bf16 %v4914_v52, %v4913_v17 }
0x1b82   : > { %5494 = vmatprep.subr.bf16.mxu0 %v5710_v62 }
0x1b83   : > { %5505 = vmatpush3.bf16.msra.mxu1 %v5504_v7 }
0x1b84   : > { %5506 = vmatprep.subr.bf16.mxu1 %v5710_v62 }
0x1b85   : > { %5496 = vmatpush3.bf16.msra.mxu0 %v5495_v2 }
0x1b86   : > { %5497 = vmatprep.subr.bf16.mxu0 %v5710_v62 }
0x1b87   : > { %5508 = vmatpush3.bf16.msra.mxu1 %v5507_v9 }
0x1b89   : > { %5499 = vmatpush3.bf16.msra.mxu0 %v5498_v8 }
0x1b8a   : > { %5509 = vmatprep.subr.bf16.mxu0 %v5710_v62 }
0x1c53   : > { %v4355_v26 = vpop.f32.mrb[28].mxu0 }
0x1c54   : > { %v6787_v32 = vadd.f32 %v4355_v26, %v6569_v23  ;;  %v5325_v36 = vpop.f32.mrb[29].mxu0  ;;  %v4905_v23 = vld [vmem:[%s6907_s5 + $0xd0] sm:$0xff] }
0x1c56   : > { %v4363_v24 = vrot.slane %v6787_v32, %v5832_v15  ;;  %v4906_v15 = vld [vmem:[%s6907_s5 + $0xd8] sm:$0xff] }
0x1c57   : > { %v5513_v21 = vpack.c.bf16 %v4906_v15, %v4905_v23 }
0x1c58   : > { %v4364_v16 = vsub.f32 %v4363_v24, %v6787_v32 }
0x1c5a   : > { %v4365_v20 = vand.u32 2147483647, %v4364_v16 }
0x1c5c   : > { %5339 = vmatmul.mubr.msk.f32.vlgmr.msra.gmra.mrb[30].mxu0 %vm426_vm1, %v4365_v20 }
0x1c5d   : > { %5511 = vmatpush3.bf16.msra.mxu0 %v5510_v41  ;;  %5368 = vmatprep.mubr.msk.f32.mxu0 %vm5709_vm5, %v5707_v13 }
0x1c5e   : > { %5512 = vmatprep.subr.bf16.mxu0 %v5710_v62 }
0x1c61   : > { %5514 = vmatpush3.bf16.msra.mxu0 %v5513_v21 }
0x1c62   : > { %5515 = vmatprep.subr.bf16.mxu0 %v5710_v62  ;;  %v4917_v62 = vld [vmem:[%s6909_s7 + $0x4] sm:$0x1] }
0x1c65   : > { %5517 = vmatpush3.bf16.msra.mxu0 %v5516_v28 }
0x1c68   : > { %5369 = vmatmul.mubr.msk.f32.vlgmr.msra.gmra.mrb[32].mxu0 %vm426_vm1, %v6787_v32 }
0x1d2f   : > { %v4450_v33 = vpop.f32.mrb[30].mxu0 }
0x1d30   : > { %v4451_v42 = vadd.f32 %v4897_v0, %v4450_v33  ;;  %v5340_v4 = vpop.f32.mrb[31].mxu0 }
0x1d32   : > { %vm4454_vm13 = vcmp.gt.f32.partialorder %v4451_v42, 0.0  ;;  %v4455_v14 = vmul.f32 0.01, %v4451_v42 }
0x1d34   : > { %v4456_v3 = vsel %vm4454_vm13, %v4451_v42, %v4455_v14 }
0x1d35   : > { %v4465_v25 = vmul.f32 %v4900_v39, %v4456_v3 }
0x1d37   : > { %v4466_v27 = vsel %vm595_vm4, %v4465_v25, 0.0  ;;  %vm4677_vm4 = vcmask 24576  }
0x1d38   : > { %4467 = vadd.xlane.f32.xlu1 %v4466_v27 }
0x1d3b   : > { %v4670_v29 = vpop.f32.mrb[32].mxu0 }
0x1d3c   : > { %v5370_v46 = vpop.f32.mrb[33].mxu0 }
0x1dc5   : > { %v4468_v30 = vpop.xlane.xlu1 %4467 }
0x1dc6   : > { %v4477_v19 = vadd.f32 %v4902_v60, %v4468_v30 }
0x1dc8   : > { %v4480_v38 = vsub.f32 %v4477_v19, %v4479_v48 }
0x1dca   : > { %v4482_v1 = vsel %vm4481_vm15, %v4480_v38, -inf }
0x1dcb   : > { %v4483_v57 = vrot.slane %v4482_v1, 4 }
0x1dcd   : > { %v4484_v45 = vmax.f32 %v4482_v1, %v4483_v57 }
0x1dcf   : > { %v4485_v44 = vrot.slane %v4484_v45, 2 }
0x1dd1   : > { %v4486_v53 = vmax.f32 %v4484_v45, %v4485_v44 }
0x1dd3   : > { %v4487_v58 = vrot.slane %v4486_v53, 1 }
0x1dd5   : > { %v4488_v54 = vmax.f32 %v4486_v53, %v4487_v58 }
0x1dd7   : > { %v4489_v55 = vsub.f32 %v4480_v38, %v4488_v54 }
0x1dd9   : > { %v4490_v51 = vmul.f32 1.442695, %v4489_v55 }
0x1ddb   : > { %5638 = vpow2.f32 %v4490_v51 }
0x1de5   : > { %v5639_v11 = vpop.eup %5638 }
0x1de6   : > { %v4492_v63 = vsel %vm4481_vm15, %v5639_v11, 0.0 }
0x1de7   : > { %v4493_v56 = vrot.slane %v4492_v63, 4 }
0x1de9   : > { %v4494_v5 = vadd.f32 %v4493_v56, %v4492_v63 }
0x1deb   : > { %v4495_v47 = vrot.slane %v4494_v5, 2 }
0x1ded   : > { %v4496_v13 = vadd.f32 %v4495_v47, %v4494_v5 }
0x1def   : > { %v4497_v43 = vrot.slane %v4496_v13, 1 }
0x1df1   : > { %v4498_v6 = vadd.f32 %v4497_v43, %v4496_v13 }
0x1df3   : > { %5640 = vrcp.f32 %v4498_v6 }
0x1dfd   : > { %v5641_v61 = vpop.eup %5640 }
0x1dfe   : > { %v4500_v18 = vmul.f32 %v5641_v61, %v5639_v11 }
0x1e00   : > { %4503 = vperm.xlu0 %5564, %v4500_v18  }
0x1e7f   : > { %v4504_v2 = vpop.permute.xlu0 %4503 }
0x1e80   : > { %v4506_v37 = vmul.f32 %v4504_v2, %v6787_v32 }
0x1e82   : > { %v4507_v35 = vsel %vm426_vm1, %v4506_v37, 0.0 }
0x1e83   : > { %v4508_v8 = vrot.slane %v4507_v35, 4 }
0x1e85   : > { %v4509_v26 = vadd.f32 %v4508_v8, %v4507_v35 }
0x1e87   : > { %v4510_v36 = vrot.slane %v4509_v26, 2 }
0x1e89   : > { %v4511_v24 = vadd.f32 %v4510_v36, %v4509_v26 }
0x1e8b   : > { %v4512_v10 = vrot.slane %v4511_v24, 1 }
0x1e8d   : > { %v4513_v22 = vadd.f32 %v4512_v10, %v4511_v24 }
0x1e8f   : > { %5354 = vmatmul.mubr.msk.f32.vlgmr.msra.gmra.mrb[34].mxu1 %vm426_vm1, %v4513_v22 }
0x1f62   : > { %v4597_v16 = vpop.f32.mrb[34].mxu1 }
0x1f63   : > { %v4671_v32 = vadd.f32 %v4670_v29, %v4597_v16  ;;  %v5355_v41 = vpop.f32.mrb[35].mxu1 }
0x1f65   : > { %v4676_v20 = vadd.f32 %v4917_v62, %v4671_v32 }
0x1f67   : > { %4678 = vst.msk [vmem:[%s295_s23] sm:$0x1] %vm4677_vm4, %v4676_v20 }
0x1f68   : > { %5655 = shalt.err (!%p5652_p3)
}
0x1f69   : > { %s5656_s19 = scalar_lea.hbm %s6860_s10, 16  ;;  %s5660_s22 = scalar_lea.hbm %s6910_s8, 32 }
0x1f6a   : > { %p5657_p4 = scmp.ne.s32.totalorder %s6860_s10, %s5656_s19  ;;  %p5661_p9 = scmp.lt.u32.totalorder %s6860_s10, %s6910_s8 }
0x1f6b   : > { %p5662_p10 = scmp.lt.u32.totalorder %s5660_s22, %s5656_s19  ;;  %p5664_p12 = scmp.lt.u32.totalorder %s5656_s19, %s6860_s10 }
0x1f6c   : > { %p5658_p7 = pnand %p5657_p4, %p5796_p5 }
0x1f6d   : > { %p5663_p11 = por %p5662_p10, %p5661_p9 }
0x1f6e   : > { %p5659_p8 = pneg %p5658_p7 }
0x1f6f   : > { %p5665_p13 = por %p5664_p12, %p5663_p11 }
0x1f71   : > { %p5666_p0 = pnand %p5665_p13, %p5659_p8 }
0x1f73   : > { %5669 = shalt.err (!%p5666_p0)
}
0x1f74   : > { %5518 = dma.vmem_to_hbm [thread:$0]  (%p5796_p5), %s6862_s24, 16, %s6860_s10, %s4680_s12  }
0x1f75 PF: > { %p5524_p1 = scmp.ge.s32.totalorder %s5704_s30, 2  ;;  %s4704_s26 = sand.u32 1, %s5692_s27  }
0x1f76   : > { %s4705_s13 = scalar_lea.sflag [#allocation3], %s4704_s26 }
0x1f77   : > { %p5521_p2 = pnand %p5524_p1, %p5800_p6 }
0x1f79   : > { %5687 = dma.done.wait (!%p5521_p2), %s4705_s13, 16  }
0x1f7a   : > { %5689 = vsyncadd (!%p5521_p2), %s4705_s13, 4294967280  ;;  %p18_p3 = scmp.ge.s32.totalorder %s5783_s11, 4   ;;  %s6913_s27 = smov %s5696_s28 }
0x1f7b   : > { %s6914_s28 = smov %s5700_s29  ;;  %s6915_s29 = smov %s5794_s14 }
0x1f7c   : > { %s6916_s30 = smov %s5783_s11  ;;  %20 = sbr.rel (!%p18_p3) target bundleno = 3 (0x3), region = 115 }
0x1f83   :  { %4709 = vsyncpa [#allocation3], 1 }
0x1f84   :  { %4711 = vsyncpa [#allocation3 + $0x1], 1 }

</bundles_post_ra>
